<compile_context>
chip_gen: v6e
topology: v6e:2x2x1
jax: 0.10.0
libtpu: 0.0.40
codegen_flags: <defaults>
</compile_context>

<pallas_src>
import functools
import math

import jax
import jax.numpy as jnp
import numpy as np
from jax.experimental import pallas as pl
from jax.experimental.pallas import tpu as pltpu


def _sigmoid(z):
    # exact logistic (exp -> EUP, divide -> VPU)
    return 1.0 / (1.0 + jnp.exp(-z))


# --------------------------- in-kernel math (all 2-D) ---------------------------

def _im2col(x, kt):
    """Lane-concatenate the kt row(time)-shifted windows of a (rows, L) slab.

    Batch groups (fixed row stride) are NOT re-compacted after the window
    shrink: output rows whose window straddles a group boundary hold harmless
    junk and every group's valid rows stay at the same row offset, so the whole
    temporal conv stays a single matmul with no sublane concatenation.
    """
    if kt == 1:
        return x
    r_out = x.shape[0] - (kt - 1)
    return jnp.concatenate([x[dt:dt + r_out] for dt in range(kt)], axis=1)


def _k_dense(x, w, b, act):
    """One fused (rows, K) @ (K, L) matmul + bias + activation."""
    acc = jnp.dot(x, w, preferred_element_type=jnp.float32) + b
    if act == 'GLU':
        half = acc.shape[1] // 2          # 128-aligned lane split
        return acc[:, :half] * _sigmoid(acc[:, half:])
    if act == 'sigmoid':
        return _sigmoid(acc)
    return jnp.maximum(acc, 0.0)


def _k_layernorm(x, w, b):
    """LayerNorm over the fused (nodes*channels) lane dim, eps = 1e-5."""
    mean = jnp.mean(x, axis=-1, keepdims=True)
    xc = x - mean
    var = jnp.mean(xc * xc, axis=-1, keepdims=True)
    return xc * jax.lax.rsqrt(var + 1e-5) * w + b


def _stgcn_kernel(meta, x_ref,
                  w_st1_t1, w_st1_s, w_st1_t2,
                  w_st2_t1, w_st2_s, w_st2_t2,
                  w_out_t1, w_out_t2,
                  small_ref, o_ref):
    """Whole STGCN forward for one grid step (bb batch elements folded into M)."""
    bb, kt, out_kt, stride = meta['bb'], meta['kt'], meta['out_kt'], meta['t1']
    idx = meta['idx']

    def sm(name):                         # static slice into the small-param slab
        off, r, c = idx[name]
        return small_ref[off:off + r, :c]

    x = x_ref[0]                          # (bb*t1, kt*N*C0), first im2col done in wrapper
    # ---------------- st block 1 ----------------
    x = _k_dense(x, w_st1_t1[...], sm('st1.t1b'), 'GLU')
    x = _k_dense(x, w_st1_s[...], sm('st1.sb'), 'relu')
    x = _k_dense(_im2col(x, kt), w_st1_t2[...], sm('st1.t2b'), 'relu')
    x = _k_layernorm(x, sm('st1.lnw'), sm('st1.lnb'))
    # TODO(synk): nn.Dropout is identity at inference; training-mode masking not implemented.
    # ---------------- st block 2 ----------------
    x = _k_dense(_im2col(x, kt), w_st2_t1[...], sm('st2.t1b'), 'GLU')
    x = _k_dense(x, w_st2_s[...], sm('st2.sb'), 'relu')
    x = _k_dense(_im2col(x, kt), w_st2_t2[...], sm('st2.t2b'), 'relu')
    x = _k_layernorm(x, sm('st2.lnw'), sm('st2.lnb'))
    # ---------------- output layer ----------------
    x = _k_dense(_im2col(x, out_kt), w_out_t1[...], sm('out.t1b'), 'GLU')
    x = _k_layernorm(x, sm('out.lnw'), sm('out.lnb'))
    x = _k_dense(x, w_out_t2[...], sm('out.t2b'), 'sigmoid')
    y = jnp.dot(x, sm('out.fcw'), preferred_element_type=jnp.float32) + sm('out.fcb')
    # valid rows sit at the head of each batch group (group stride = t1 rows)
    for b in range(bb):
        o_ref[b] = y[b * stride:b * stride + 1]


# ------------------------------ pallas wrapper --------------------------------

def _tensorcores_per_device():
    """2 on v7x-class devices (two TensorCores), else 1 (v5e/v6e)."""
    try:
        kind = jax.devices()[0].device_kind.lower()
        if 'v7' in kind:
            return 2
    except Exception:
        pass
    return 1


def stgcn_forward_pallas(packed, x_nchw, bb=None):
    """bb = batch elements per grid step.  Default: whole batch folded into the
    matmul M dimension on 1-TC chips; one element per TensorCore on 2-TC chips."""
    B, c0, T, N = x_nchw.shape
    nc0 = N * c0
    kt = packed['meta']['kt']
    if bb is None:
        bb = 1 if (_tensorcores_per_device() >= 2 and B > 1) else B
    assert bb in (1, B) and B % bb == 0

    # Boundary layout plumbing (XLA side): NCHW -> lane-dense node*channel
    # slabs + the first temporal conv's im2col (keeps the 16-lane concat out of
    # the kernel).
    x_btnc = jnp.transpose(x_nchw, (0, 2, 3, 1)).reshape(B, T, nc0)
    t1 = T - kt + 1
    xcol = jnp.concatenate([x_btnc[:, dt:dt + t1, :] for dt in range(kt)],
                           axis=-1)                        # (B, t1, kt*N*C0)
    k1 = kt * nc0
    xg = xcol.reshape(B // bb, bb * t1, k1)

    weights = packed['weights']
    small = packed['small']
    meta = dict(packed['meta'], bb=bb, t1=t1)

    in_specs = [pl.BlockSpec((1, bb * t1, k1), lambda g: (g, 0, 0))]
    for w in weights:
        # grid-invariant weight blocks; total weight VMEM ~3 MiB so the default
        # double-buffering is harmless at this size.
        in_specs.append(pl.BlockSpec(w.shape, lambda g: (0, 0)))
    in_specs.append(pl.BlockSpec(small.shape, lambda g: (0, 0)))

    out = pl.pallas_call(
        functools.partial(_stgcn_kernel, meta),
        out_shape=jax.ShapeDtypeStruct((B, 1, N), jnp.float32),
        grid=(B // bb,),
        in_specs=in_specs,
        out_specs=pl.BlockSpec((bb, 1, N), lambda g: (g, 0, 0)),
        compiler_params=pltpu.CompilerParams(
            dimension_semantics=("parallel",)),   # v7x: one batch element per TC
    )(xg, *weights, small)
    return out.reshape(B, 1, 1, N)                         # NCHW: (B, 1, 1, N)


# -------------------- one-time weight folding (wrapper side) -------------------

def pack_stgcn_params(params, lk, kt, bs, n):
    """Fold every mixing op into 2-D matrices on the fused node*channel lane dim,
    stack temporal-conv taps row-wise (im2col weights), and pack all small
    vectors into one (rows, 512) slab."""
    eye_n = jnp.eye(n, dtype=jnp.float32)

    def kron_in(w2):
        # (Ci, X) -> (n*Ci, n*X): block-diagonal over nodes
        ci, xdim = w2.shape
        return jnp.einsum('nm,io->nimo', eye_n, w2).reshape(n * ci, n * xdim)

    def pack_tconv(p, kt_, c_in, c_out, act):
        w, b = p['w'], p['b'][0]
        co_l = n * c_out
        glu = act == 'GLU'
        if glu:
            mats = [jnp.concatenate([kron_in(w[dt, :, :c_out]),
                                     kron_in(w[dt, :, c_out:])], axis=1)
                    for dt in range(kt_)]
            bias = jnp.concatenate([jnp.tile(b[:c_out], n), jnp.tile(b[c_out:], n)])
        else:
            mats = [kron_in(w[dt]) for dt in range(kt_)]
            bias = jnp.tile(b, n)
        # fold align(x)[:, kt-1:, :] residual into the last tap
        if c_in > c_out:
            res_w = kron_in(p['align_w'])
            res_b = jnp.tile(p['align_b'][0], n)
        elif c_in < c_out:
            res_w = kron_in(jnp.eye(c_in, c_out, dtype=jnp.float32))
            res_b = jnp.zeros((co_l,), jnp.float32)
        else:
            res_w = jnp.eye(n * c_in, dtype=jnp.float32)
            res_b = jnp.zeros((co_l,), jnp.float32)
        if glu:
            mats[kt_ - 1] = mats[kt_ - 1].at[:, :co_l].add(res_w)
            bias = bias.at[:co_l].add(res_b)
        else:
            mats[kt_ - 1] = mats[kt_ - 1] + res_w
            bias = bias + res_b
        # im2col weight: taps stacked row-wise -> one matmul per temporal conv
        return jnp.concatenate(mats, axis=0), bias.reshape(1, -1)

    def pack_sconv(p, c):
        w = jnp.einsum('knm,kio->mino', lk, p['theta']).reshape(n * c, n * c)
        w = w + jnp.eye(n * c, dtype=jnp.float32)          # + x residual
        return w, jnp.tile(p['b'][0], n).reshape(1, -1)

    weights, small_items = [], []

    def add_s(name, a):
        a = jnp.asarray(a, jnp.float32)
        if a.ndim == 1:
            a = a.reshape(1, -1)
        small_items.append((name, a))

    for blk, c in (('st1', bs[0]), ('st2', bs[1])):
        p = params[blk]
        w, b = pack_tconv(p['tconv1'], kt, c[0], c[1], 'GLU')
        weights.append(w); add_s(blk + '.t1b', b)
        w, b = pack_sconv(p['sconv'], c[1])
        weights.append(w); add_s(blk + '.sb', b)
        w, b = pack_tconv(p['tconv2'], kt, c[1], c[2], 'relu')
        weights.append(w); add_s(blk + '.t2b', b)
        add_s(blk + '.lnw', p['ln_w'].reshape(1, -1))
        add_s(blk + '.lnb', p['ln_b'].reshape(1, -1))

    po = params['out']
    c_fin = bs[1][2]
    t_o = po['tconv1']['w'].shape[0]
    w, b = pack_tconv(po['tconv1'], t_o, c_fin, c_fin, 'GLU')
    weights.append(w); add_s('out.t1b', b)
    w, b = pack_tconv(po['tconv2'], 1, c_fin, c_fin, 'sigmoid')
    weights.append(w); add_s('out.t2b', b)
    add_s('out.lnw', po['ln_w'].reshape(1, -1))
    add_s('out.lnb', po['ln_b'].reshape(1, -1))
    add_s('out.fcw', jnp.einsum('nm,co->ncmo', eye_n, po['fc_w']).reshape(n * c_fin, n))
    add_s('out.fcb', po['fc_b'])

    # pack all small params into one lane-dense slab (8-row aligned entries)
    slab_w = max(a.shape[1] for _, a in small_items)
    slab_w = ((slab_w + 127) // 128) * 128
    idx, rows, off = {}, [], 0
    for name, a in small_items:
        r, cdim = a.shape
        idx[name] = (off, r, cdim)
        r_pad = (-r) % 8
        rows.append(jnp.pad(a, ((0, r_pad), (0, slab_w - cdim))))
        off += r + r_pad
    small = jnp.concatenate(rows, axis=0)

    # weights order must match the kernel signature:
    # [st1_t1, st1_s, st1_t2, st2_t1, st2_s, st2_t2, out_t1, out_t2]
    return {'weights': weights, 'small': small,
            'meta': {'kt': kt, 'out_kt': t_o, 'idx': idx}}


# ------------------------ plain-JAX reference (BTNC) ---------------------------

def _ref_tconv(p, x, kt, c_in, c_out, act):
    if c_in > c_out:
        x_al = jnp.einsum('btni,io->btno', x, p['align_w']) + p['align_b'][0]
    elif c_in < c_out:
        x_al = jnp.pad(x, ((0, 0), (0, 0), (0, 0), (0, c_out - c_in)))
    else:
        x_al = x
    t_out = x.shape[1] - kt + 1
    x_in = x_al[:, kt - 1:]
    conv = None
    for dt in range(kt):
        term = jnp.einsum('btni,io->btno', x[:, dt:dt + t_out], p['w'][dt])
        conv = term if conv is None else conv + term
    conv = conv + p['b'][0]
    if act == 'GLU':
        return (conv[..., :c_out] + x_in) * _sigmoid(conv[..., c_out:])
    if act == 'sigmoid':
        return _sigmoid(conv + x_in)
    return jnp.maximum(conv + x_in, 0.0)


def _ref_sconv(p, lk, x, ks):
    acc = None
    for k in range(ks):
        z = jnp.einsum('btmi,io->btmo', x, p['theta'][k])
        term = jnp.einsum('nm,btmo->btno', lk[k], z)
        acc = term if acc is None else acc + term
    return jnp.maximum(acc + p['b'][0] + x, 0.0)


def _ref_ln(w, b, x):
    mean = jnp.mean(x, axis=(2, 3), keepdims=True)
    var = jnp.mean(jnp.square(x - mean), axis=(2, 3), keepdims=True)
    return (x - mean) * jax.lax.rsqrt(var + 1e-5) * w + b


def stgcn_forward_reference(params, lk, x_nchw, ks, kt, bs):
    x = jnp.transpose(x_nchw, (0, 2, 3, 1))               # NCHW -> BTNC
    for blk, c in (('st1', bs[0]), ('st2', bs[1])):
        p = params[blk]
        x = _ref_tconv(p['tconv1'], x, kt, c[0], c[1], 'GLU')
        x = _ref_sconv(p['sconv'], lk, x, ks)
        x = _ref_tconv(p['tconv2'], x, kt, c[1], c[2], 'relu')
        x = _ref_ln(p['ln_w'], p['ln_b'], x)
    c_fin = bs[1][2]
    po = params['out']
    t_o = x.shape[1]
    x = _ref_tconv(po['tconv1'], x, t_o, c_fin, c_fin, 'GLU')
    x = _ref_ln(po['ln_w'], po['ln_b'], x)
    x = _ref_tconv(po['tconv2'], x, 1, c_fin, c_fin, 'sigmoid')
    y = jnp.einsum('btni,io->btno', x, po['fc_w']) + po['fc_b'][0]
    return jnp.transpose(y, (0, 3, 1, 2))                  # (B, 1, 1, N)


# ------------------------------ parameter init --------------------------------

def init_stgcn_params(key, ks, kt, bs, T, n):
    keys = iter(jax.random.split(key, 64))

    def unif(shape, fan_in):
        bound = 1.0 / math.sqrt(fan_in)
        return jax.random.uniform(next(keys), shape, jnp.float32, -bound, bound)

    def init_tconv(c_in, c_out, kt_, act):
        p = {}
        if c_in > c_out:                      # align uses a 1x1 conv
            p['align_w'] = unif((c_in, c_out), c_in)
            p['align_b'] = unif((1, c_out), c_in)
        ctot = 2 * c_out if act == 'GLU' else c_out
        p['w'] = unif((kt_, c_in, ctot), c_in * kt_)
        p['b'] = unif((1, ctot), c_in * kt_)
        return p

    def init_block(c):
        return {
            'tconv1': init_tconv(c[0], c[1], kt, 'GLU'),
            'sconv': {'theta': unif((ks, c[1], c[1]), c[1] * ks),
                      'b': unif((1, c[1]), c[1] * ks)},
            'tconv2': init_tconv(c[1], c[2], kt, 'relu'),
            'ln_w': jnp.ones((n, c[2]), jnp.float32),
            'ln_b': jnp.zeros((n, c[2]), jnp.float32),
        }

    T_o = T - 4 * (kt - 1)
    c_fin = bs[1][2]
    return {
        'st1': init_block(bs[0]),
        'st2': init_block(bs[1]),
        'out': {
            'tconv1': init_tconv(c_fin, c_fin, T_o, 'GLU'),
            'ln_w': jnp.ones((n, c_fin), jnp.float32),
            'ln_b': jnp.zeros((n, c_fin), jnp.float32),
            'tconv2': init_tconv(c_fin, c_fin, 1, 'sigmoid'),
            'fc_w': unif((c_fin, 1), c_fin),
            'fc_b': unif((1, 1), c_fin),
        },
    }


# ----------------------------------- main --------------------------------------

if __name__ == "__main__":
    ks, kt = 3, 3
    bs = [[1, 16, 8], [8, 16, 8]]      # channel plan: exercises pad / conv1x1 / identity align
    T, n, B = 12, 16, 2

    key = jax.random.PRNGKey(0)
    k_lk, k_x, k_p = jax.random.split(key, 3)
    Lk = 0.1 * jax.random.normal(k_lk, (ks, n, n), jnp.float32)
    x = jax.random.normal(k_x, (B, bs[0][0], T, n), jnp.float32)   # NCHW: (B, C, T, N)
    params = init_stgcn_params(k_p, ks, kt, bs, T, n)

    # one-time weight folding / im2col stacking / small-param slab packing
    packed = pack_stgcn_params(params, Lk, kt, bs, n)
    y_ref = stgcn_forward_reference(params, Lk, x, ks, kt, bs)

    # auto mode: batch folded into the matmul M on 1-TC chips, grid-parallel on v7x
    y = jax.block_until_ready(stgcn_forward_pallas(packed, x))
    assert y.shape == (B, 1, 1, n), y.shape
    np.testing.assert_allclose(np.asarray(y), np.asarray(y_ref),
                               rtol=2e-4, atol=2e-4)

    # cross-check the other batch mapping (covers both layouts on any chip)
    bb_other = 1 if _tensorcores_per_device() < 2 else B
    y2 = jax.block_until_ready(stgcn_forward_pallas(packed, x, bb=bb_other))
    np.testing.assert_allclose(np.asarray(y2), np.asarray(y_ref),
                               rtol=2e-4, atol=2e-4)

    print("KERNEL_OK")
</pallas_src>

<mosaic_0001>
module attributes {stable_mosaic.version = 11 : i64} {
  func.func @_stgcn_kernel(%arg0: i32, %arg1: memref<1x20x48xf32, #tpu.memory_space<vmem>>, %arg2: memref<48x512xf32, #tpu.memory_space<vmem>>, %arg3: memref<256x256xf32, #tpu.memory_space<vmem>>, %arg4: memref<768x128xf32, #tpu.memory_space<vmem>>, %arg5: memref<384x512xf32, #tpu.memory_space<vmem>>, %arg6: memref<256x256xf32, #tpu.memory_space<vmem>>, %arg7: memref<768x128xf32, #tpu.memory_space<vmem>>, %arg8: memref<512x256xf32, #tpu.memory_space<vmem>>, %arg9: memref<128x128xf32, #tpu.memory_space<vmem>>, %arg10: memref<248x512xf32, #tpu.memory_space<vmem>>, %arg11: memref<2x1x16xf32, #tpu.memory_space<vmem>>) attributes {dimension_semantics = [#tpu.dimension_semantics<parallel>], iteration_bounds = array<i64: 1>, scalar_prefetch = 0 : i64, scratch_operands = 0 : i64, tpu.core_type = #tpu.core_type<tc>, window_params = [{transform_indices = @transform_0, window_bounds = array<i64: 1, 20, 48>}, {pipeline_mode = #tpu.pipeline_mode<synchronous>, transform_indices = @transform_1, window_bounds = array<i64: 48, 512>}, {pipeline_mode = #tpu.pipeline_mode<synchronous>, transform_indices = @transform_2, window_bounds = array<i64: 256, 256>}, {pipeline_mode = #tpu.pipeline_mode<synchronous>, transform_indices = @transform_3, window_bounds = array<i64: 768, 128>}, {pipeline_mode = #tpu.pipeline_mode<synchronous>, transform_indices = @transform_4, window_bounds = array<i64: 384, 512>}, {pipeline_mode = #tpu.pipeline_mode<synchronous>, transform_indices = @transform_5, window_bounds = array<i64: 256, 256>}, {pipeline_mode = #tpu.pipeline_mode<synchronous>, transform_indices = @transform_6, window_bounds = array<i64: 768, 128>}, {pipeline_mode = #tpu.pipeline_mode<synchronous>, transform_indices = @transform_7, window_bounds = array<i64: 512, 256>}, {pipeline_mode = #tpu.pipeline_mode<synchronous>, transform_indices = @transform_8, window_bounds = array<i64: 128, 128>}, {pipeline_mode = #tpu.pipeline_mode<synchronous>, transform_indices = @transform_9, window_bounds = array<i64: 248, 512>}, {transform_indices = @transform_10, window_bounds = array<i64: 2, 1, 16>}]} {
    %c0 = arith.constant 0 : index
    %c0_0 = arith.constant 0 : index
    %c0_1 = arith.constant 0 : index
    %0 = vector.load %arg1[%c0, %c0_0, %c0_1] : memref<1x20x48xf32, #tpu.memory_space<vmem>>, vector<1x20x48xf32>
    %1 = vector.shape_cast %0 : vector<1x20x48xf32> to vector<20x48xf32>
    %c0_2 = arith.constant 0 : index
    %c0_3 = arith.constant 0 : index
    %2 = vector.load %arg2[%c0_2, %c0_3] : memref<48x512xf32, #tpu.memory_space<vmem>>, vector<48x512xf32>
    %c0_4 = arith.constant 0 : index
    %c0_5 = arith.constant 0 : index
    %3 = vector.load %arg10[%c0_4, %c0_5] : memref<248x512xf32, #tpu.memory_space<vmem>>, vector<1x512xf32>
    %cst = arith.constant dense<0.000000e+00> : vector<20x512xf32>
    %4 = tpu.matmul %1, %2, %cst {dimension_numbers = #tpu.dot_dimension_numbers<[1], [0], [0], [1], [0, 0, 1, 1], [], []>} : vector<20x48xf32>, vector<48x512xf32>, vector<20x512xf32> -> vector<20x512xf32>
    %5 = vector.broadcast %3 : vector<1x512xf32> to vector<20x512xf32>
    %6 = arith.addf %4, %5 : vector<20x512xf32>
    %7 = vector.extract_strided_slice %6 {offsets = [0, 0], sizes = [20, 256], strides = [1, 1]} : vector<20x512xf32> to vector<20x256xf32>
    %8 = vector.extract_strided_slice %6 {offsets = [0, 256], sizes = [20, 256], strides = [1, 1]} : vector<20x512xf32> to vector<20x256xf32>
    %cst_6 = arith.constant 0.000000e+00 : f32
    %9 = vector.broadcast %cst_6 : f32 to vector<20x256xf32>
    %10 = arith.subf %9, %8 : vector<20x256xf32>
    %11 = math.exp %10 : vector<20x256xf32>
    %cst_7 = arith.constant 1.000000e+00 : f32
    %12 = vector.broadcast %cst_7 : f32 to vector<20x256xf32>
    %13 = arith.addf %12, %11 : vector<20x256xf32>
    %cst_8 = arith.constant 1.000000e+00 : f32
    %14 = vector.broadcast %cst_8 : f32 to vector<20x256xf32>
    %15 = arith.divf %14, %13 : vector<20x256xf32>
    %16 = arith.mulf %7, %15 : vector<20x256xf32>
    %c0_9 = arith.constant 0 : index
    %c0_10 = arith.constant 0 : index
    %17 = vector.load %arg3[%c0_9, %c0_10] : memref<256x256xf32, #tpu.memory_space<vmem>>, vector<256x256xf32>
    %c8 = arith.constant 8 : index
    %c0_11 = arith.constant 0 : index
    %18 = vector.load %arg10[%c8, %c0_11] : memref<248x512xf32, #tpu.memory_space<vmem>>, vector<1x256xf32>
    %cst_12 = arith.constant dense<0.000000e+00> : vector<20x256xf32>
    %19 = tpu.matmul %16, %17, %cst_12 {dimension_numbers = #tpu.dot_dimension_numbers<[1], [0], [0], [1], [0, 0, 1, 1], [], []>} : vector<20x256xf32>, vector<256x256xf32>, vector<20x256xf32> -> vector<20x256xf32>
    %20 = vector.broadcast %18 : vector<1x256xf32> to vector<20x256xf32>
    %21 = arith.addf %19, %20 : vector<20x256xf32>
    %cst_13 = arith.constant 0.000000e+00 : f32
    %22 = vector.broadcast %cst_13 : f32 to vector<20x256xf32>
    %23 = arith.maximumf %21, %22 : vector<20x256xf32>
    %24 = vector.extract_strided_slice %23 {offsets = [0, 0], sizes = [18, 256], strides = [1, 1]} : vector<20x256xf32> to vector<18x256xf32>
    %25 = vector.extract_strided_slice %23 {offsets = [1, 0], sizes = [18, 256], strides = [1, 1]} : vector<20x256xf32> to vector<18x256xf32>
    %26 = vector.extract_strided_slice %23 {offsets = [2, 0], sizes = [18, 256], strides = [1, 1]} : vector<20x256xf32> to vector<18x256xf32>
    %27 = tpu.concatenate %24, %25, %26 in 1 : vector<18x256xf32>, vector<18x256xf32>, vector<18x256xf32> -> vector<18x768xf32>
    %c0_14 = arith.constant 0 : index
    %c0_15 = arith.constant 0 : index
    %28 = vector.load %arg4[%c0_14, %c0_15] : memref<768x128xf32, #tpu.memory_space<vmem>>, vector<768x128xf32>
    %c16 = arith.constant 16 : index
    %c0_16 = arith.constant 0 : index
    %29 = vector.load %arg10[%c16, %c0_16] : memref<248x512xf32, #tpu.memory_space<vmem>>, vector<1x128xf32>
    %cst_17 = arith.constant dense<0.000000e+00> : vector<18x128xf32>
    %30 = tpu.matmul %27, %28, %cst_17 {dimension_numbers = #tpu.dot_dimension_numbers<[1], [0], [0], [1], [0, 0, 1, 1], [], []>} : vector<18x768xf32>, vector<768x128xf32>, vector<18x128xf32> -> vector<18x128xf32>
    %31 = vector.broadcast %29 : vector<1x128xf32> to vector<18x128xf32>
    %32 = arith.addf %30, %31 : vector<18x128xf32>
    %cst_18 = arith.constant 0.000000e+00 : f32
    %33 = vector.broadcast %cst_18 : f32 to vector<18x128xf32>
    %34 = arith.maximumf %32, %33 : vector<18x128xf32>
    %c24 = arith.constant 24 : index
    %c0_19 = arith.constant 0 : index
    %35 = vector.load %arg10[%c24, %c0_19] : memref<248x512xf32, #tpu.memory_space<vmem>>, vector<1x128xf32>
    %c32 = arith.constant 32 : index
    %c0_20 = arith.constant 0 : index
    %36 = vector.load %arg10[%c32, %c0_20] : memref<248x512xf32, #tpu.memory_space<vmem>>, vector<1x128xf32>
    %cst_21 = arith.constant dense<0.000000e+00> : vector<18xf32>
    %37 = vector.multi_reduction <add>, %34, %cst_21 [1] : vector<18x128xf32> to vector<18xf32>
    %38 = vector.shape_cast %37 : vector<18xf32> to vector<18x1xf32>
    %cst_22 = arith.constant 1.280000e+02 : f32
    %39 = vector.broadcast %cst_22 : f32 to vector<18x1xf32>
    %40 = arith.divf %38, %39 : vector<18x1xf32>
    %41 = vector.broadcast %40 : vector<18x1xf32> to vector<18x128xf32>
    %42 = arith.subf %34, %41 : vector<18x128xf32>
    %43 = arith.mulf %42, %42 : vector<18x128xf32>
    %cst_23 = arith.constant dense<0.000000e+00> : vector<18xf32>
    %44 = vector.multi_reduction <add>, %43, %cst_23 [1] : vector<18x128xf32> to vector<18xf32>
    %45 = vector.shape_cast %44 : vector<18xf32> to vector<18x1xf32>
    %cst_24 = arith.constant 1.280000e+02 : f32
    %46 = vector.broadcast %cst_24 : f32 to vector<18x1xf32>
    %47 = arith.divf %45, %46 : vector<18x1xf32>
    %cst_25 = arith.constant 9.99999974E-6 : f32
    %48 = vector.broadcast %cst_25 : f32 to vector<18x1xf32>
    %49 = arith.addf %47, %48 : vector<18x1xf32>
    %50 = math.rsqrt %49 : vector<18x1xf32>
    %51 = vector.broadcast %50 : vector<18x1xf32> to vector<18x128xf32>
    %52 = arith.mulf %42, %51 : vector<18x128xf32>
    %53 = vector.broadcast %35 : vector<1x128xf32> to vector<18x128xf32>
    %54 = arith.mulf %52, %53 : vector<18x128xf32>
    %55 = vector.broadcast %36 : vector<1x128xf32> to vector<18x128xf32>
    %56 = arith.addf %54, %55 : vector<18x128xf32>
    %57 = vector.extract_strided_slice %56 {offsets = [0, 0], sizes = [16, 128], strides = [1, 1]} : vector<18x128xf32> to vector<16x128xf32>
    %58 = vector.extract_strided_slice %56 {offsets = [1, 0], sizes = [16, 128], strides = [1, 1]} : vector<18x128xf32> to vector<16x128xf32>
    %59 = vector.extract_strided_slice %56 {offsets = [2, 0], sizes = [16, 128], strides = [1, 1]} : vector<18x128xf32> to vector<16x128xf32>
    %60 = tpu.concatenate %57, %58, %59 in 1 : vector<16x128xf32>, vector<16x128xf32>, vector<16x128xf32> -> vector<16x384xf32>
    %c0_26 = arith.constant 0 : index
    %c0_27 = arith.constant 0 : index
    %61 = vector.load %arg5[%c0_26, %c0_27] : memref<384x512xf32, #tpu.memory_space<vmem>>, vector<384x512xf32>
    %c40 = arith.constant 40 : index
    %c0_28 = arith.constant 0 : index
    %62 = vector.load %arg10[%c40, %c0_28] : memref<248x512xf32, #tpu.memory_space<vmem>>, vector<1x512xf32>
    %cst_29 = arith.constant dense<0.000000e+00> : vector<16x512xf32>
    %63 = tpu.matmul %60, %61, %cst_29 {dimension_numbers = #tpu.dot_dimension_numbers<[1], [0], [0], [1], [0, 0, 1, 1], [], []>} : vector<16x384xf32>, vector<384x512xf32>, vector<16x512xf32> -> vector<16x512xf32>
    %64 = vector.broadcast %62 : vector<1x512xf32> to vector<16x512xf32>
    %65 = arith.addf %63, %64 : vector<16x512xf32>
    %66 = vector.extract_strided_slice %65 {offsets = [0, 0], sizes = [16, 256], strides = [1, 1]} : vector<16x512xf32> to vector<16x256xf32>
    %67 = vector.extract_strided_slice %65 {offsets = [0, 256], sizes = [16, 256], strides = [1, 1]} : vector<16x512xf32> to vector<16x256xf32>
    %cst_30 = arith.constant 0.000000e+00 : f32
    %68 = vector.broadcast %cst_30 : f32 to vector<16x256xf32>
    %69 = arith.subf %68, %67 : vector<16x256xf32>
    %70 = math.exp %69 : vector<16x256xf32>
    %cst_31 = arith.constant 1.000000e+00 : f32
    %71 = vector.broadcast %cst_31 : f32 to vector<16x256xf32>
    %72 = arith.addf %71, %70 : vector<16x256xf32>
    %cst_32 = arith.constant 1.000000e+00 : f32
    %73 = vector.broadcast %cst_32 : f32 to vector<16x256xf32>
    %74 = arith.divf %73, %72 : vector<16x256xf32>
    %75 = arith.mulf %66, %74 : vector<16x256xf32>
    %c0_33 = arith.constant 0 : index
    %c0_34 = arith.constant 0 : index
    %76 = vector.load %arg6[%c0_33, %c0_34] : memref<256x256xf32, #tpu.memory_space<vmem>>, vector<256x256xf32>
    %c48 = arith.constant 48 : index
    %c0_35 = arith.constant 0 : index
    %77 = vector.load %arg10[%c48, %c0_35] : memref<248x512xf32, #tpu.memory_space<vmem>>, vector<1x256xf32>
    %cst_36 = arith.constant dense<0.000000e+00> : vector<16x256xf32>
    %78 = tpu.matmul %75, %76, %cst_36 {dimension_numbers = #tpu.dot_dimension_numbers<[1], [0], [0], [1], [0, 0, 1, 1], [], []>} : vector<16x256xf32>, vector<256x256xf32>, vector<16x256xf32> -> vector<16x256xf32>
    %79 = vector.broadcast %77 : vector<1x256xf32> to vector<16x256xf32>
    %80 = arith.addf %78, %79 : vector<16x256xf32>
    %cst_37 = arith.constant 0.000000e+00 : f32
    %81 = vector.broadcast %cst_37 : f32 to vector<16x256xf32>
    %82 = arith.maximumf %80, %81 : vector<16x256xf32>
    %83 = vector.extract_strided_slice %82 {offsets = [0, 0], sizes = [14, 256], strides = [1, 1]} : vector<16x256xf32> to vector<14x256xf32>
    %84 = vector.extract_strided_slice %82 {offsets = [1, 0], sizes = [14, 256], strides = [1, 1]} : vector<16x256xf32> to vector<14x256xf32>
    %85 = vector.extract_strided_slice %82 {offsets = [2, 0], sizes = [14, 256], strides = [1, 1]} : vector<16x256xf32> to vector<14x256xf32>
    %86 = tpu.concatenate %83, %84, %85 in 1 : vector<14x256xf32>, vector<14x256xf32>, vector<14x256xf32> -> vector<14x768xf32>
    %c0_38 = arith.constant 0 : index
    %c0_39 = arith.constant 0 : index
    %87 = vector.load %arg7[%c0_38, %c0_39] : memref<768x128xf32, #tpu.memory_space<vmem>>, vector<768x128xf32>
    %c56 = arith.constant 56 : index
    %c0_40 = arith.constant 0 : index
    %88 = vector.load %arg10[%c56, %c0_40] : memref<248x512xf32, #tpu.memory_space<vmem>>, vector<1x128xf32>
    %cst_41 = arith.constant dense<0.000000e+00> : vector<14x128xf32>
    %89 = tpu.matmul %86, %87, %cst_41 {dimension_numbers = #tpu.dot_dimension_numbers<[1], [0], [0], [1], [0, 0, 1, 1], [], []>} : vector<14x768xf32>, vector<768x128xf32>, vector<14x128xf32> -> vector<14x128xf32>
    %90 = vector.broadcast %88 : vector<1x128xf32> to vector<14x128xf32>
    %91 = arith.addf %89, %90 : vector<14x128xf32>
    %cst_42 = arith.constant 0.000000e+00 : f32
    %92 = vector.broadcast %cst_42 : f32 to vector<14x128xf32>
    %93 = arith.maximumf %91, %92 : vector<14x128xf32>
    %c64 = arith.constant 64 : index
    %c0_43 = arith.constant 0 : index
    %94 = vector.load %arg10[%c64, %c0_43] : memref<248x512xf32, #tpu.memory_space<vmem>>, vector<1x128xf32>
    %c72 = arith.constant 72 : index
    %c0_44 = arith.constant 0 : index
    %95 = vector.load %arg10[%c72, %c0_44] : memref<248x512xf32, #tpu.memory_space<vmem>>, vector<1x128xf32>
    %cst_45 = arith.constant dense<0.000000e+00> : vector<14xf32>
    %96 = vector.multi_reduction <add>, %93, %cst_45 [1] : vector<14x128xf32> to vector<14xf32>
    %97 = vector.shape_cast %96 : vector<14xf32> to vector<14x1xf32>
    %cst_46 = arith.constant 1.280000e+02 : f32
    %98 = vector.broadcast %cst_46 : f32 to vector<14x1xf32>
    %99 = arith.divf %97, %98 : vector<14x1xf32>
    %100 = vector.broadcast %99 : vector<14x1xf32> to vector<14x128xf32>
    %101 = arith.subf %93, %100 : vector<14x128xf32>
    %102 = arith.mulf %101, %101 : vector<14x128xf32>
    %cst_47 = arith.constant dense<0.000000e+00> : vector<14xf32>
    %103 = vector.multi_reduction <add>, %102, %cst_47 [1] : vector<14x128xf32> to vector<14xf32>
    %104 = vector.shape_cast %103 : vector<14xf32> to vector<14x1xf32>
    %cst_48 = arith.constant 1.280000e+02 : f32
    %105 = vector.broadcast %cst_48 : f32 to vector<14x1xf32>
    %106 = arith.divf %104, %105 : vector<14x1xf32>
    %cst_49 = arith.constant 9.99999974E-6 : f32
    %107 = vector.broadcast %cst_49 : f32 to vector<14x1xf32>
    %108 = arith.addf %106, %107 : vector<14x1xf32>
    %109 = math.rsqrt %108 : vector<14x1xf32>
    %110 = vector.broadcast %109 : vector<14x1xf32> to vector<14x128xf32>
    %111 = arith.mulf %101, %110 : vector<14x128xf32>
    %112 = vector.broadcast %94 : vector<1x128xf32> to vector<14x128xf32>
    %113 = arith.mulf %111, %112 : vector<14x128xf32>
    %114 = vector.broadcast %95 : vector<1x128xf32> to vector<14x128xf32>
    %115 = arith.addf %113, %114 : vector<14x128xf32>
    %116 = vector.extract_strided_slice %115 {offsets = [0, 0], sizes = [11, 128], strides = [1, 1]} : vector<14x128xf32> to vector<11x128xf32>
    %117 = vector.extract_strided_slice %115 {offsets = [1, 0], sizes = [11, 128], strides = [1, 1]} : vector<14x128xf32> to vector<11x128xf32>
    %118 = vector.extract_strided_slice %115 {offsets = [2, 0], sizes = [11, 128], strides = [1, 1]} : vector<14x128xf32> to vector<11x128xf32>
    %119 = vector.extract_strided_slice %115 {offsets = [3, 0], sizes = [11, 128], strides = [1, 1]} : vector<14x128xf32> to vector<11x128xf32>
    %120 = tpu.concatenate %116, %117, %118, %119 in 1 : vector<11x128xf32>, vector<11x128xf32>, vector<11x128xf32>, vector<11x128xf32> -> vector<11x512xf32>
    %c0_50 = arith.constant 0 : index
    %c0_51 = arith.constant 0 : index
    %121 = vector.load %arg8[%c0_50, %c0_51] : memref<512x256xf32, #tpu.memory_space<vmem>>, vector<512x256xf32>
    %c80 = arith.constant 80 : index
    %c0_52 = arith.constant 0 : index
    %122 = vector.load %arg10[%c80, %c0_52] : memref<248x512xf32, #tpu.memory_space<vmem>>, vector<1x256xf32>
    %cst_53 = arith.constant dense<0.000000e+00> : vector<11x256xf32>
    %123 = tpu.matmul %120, %121, %cst_53 {dimension_numbers = #tpu.dot_dimension_numbers<[1], [0], [0], [1], [0, 0, 1, 1], [], []>} : vector<11x512xf32>, vector<512x256xf32>, vector<11x256xf32> -> vector<11x256xf32>
    %124 = vector.broadcast %122 : vector<1x256xf32> to vector<11x256xf32>
    %125 = arith.addf %123, %124 : vector<11x256xf32>
    %126 = vector.extract_strided_slice %125 {offsets = [0, 0], sizes = [11, 128], strides = [1, 1]} : vector<11x256xf32> to vector<11x128xf32>
    %127 = vector.extract_strided_slice %125 {offsets = [0, 128], sizes = [11, 128], strides = [1, 1]} : vector<11x256xf32> to vector<11x128xf32>
    %cst_54 = arith.constant 0.000000e+00 : f32
    %128 = vector.broadcast %cst_54 : f32 to vector<11x128xf32>
    %129 = arith.subf %128, %127 : vector<11x128xf32>
    %130 = math.exp %129 : vector<11x128xf32>
    %cst_55 = arith.constant 1.000000e+00 : f32
    %131 = vector.broadcast %cst_55 : f32 to vector<11x128xf32>
    %132 = arith.addf %131, %130 : vector<11x128xf32>
    %cst_56 = arith.constant 1.000000e+00 : f32
    %133 = vector.broadcast %cst_56 : f32 to vector<11x128xf32>
    %134 = arith.divf %133, %132 : vector<11x128xf32>
    %135 = arith.mulf %126, %134 : vector<11x128xf32>
    %c96 = arith.constant 96 : index
    %c0_57 = arith.constant 0 : index
    %136 = vector.load %arg10[%c96, %c0_57] : memref<248x512xf32, #tpu.memory_space<vmem>>, vector<1x128xf32>
    %c104 = arith.constant 104 : index
    %c0_58 = arith.constant 0 : index
    %137 = vector.load %arg10[%c104, %c0_58] : memref<248x512xf32, #tpu.memory_space<vmem>>, vector<1x128xf32>
    %cst_59 = arith.constant dense<0.000000e+00> : vector<11xf32>
    %138 = vector.multi_reduction <add>, %135, %cst_59 [1] : vector<11x128xf32> to vector<11xf32>
    %139 = vector.shape_cast %138 : vector<11xf32> to vector<11x1xf32>
    %cst_60 = arith.constant 1.280000e+02 : f32
    %140 = vector.broadcast %cst_60 : f32 to vector<11x1xf32>
    %141 = arith.divf %139, %140 : vector<11x1xf32>
    %142 = vector.broadcast %141 : vector<11x1xf32> to vector<11x128xf32>
    %143 = arith.subf %135, %142 : vector<11x128xf32>
    %144 = arith.mulf %143, %143 : vector<11x128xf32>
    %cst_61 = arith.constant dense<0.000000e+00> : vector<11xf32>
    %145 = vector.multi_reduction <add>, %144, %cst_61 [1] : vector<11x128xf32> to vector<11xf32>
    %146 = vector.shape_cast %145 : vector<11xf32> to vector<11x1xf32>
    %cst_62 = arith.constant 1.280000e+02 : f32
    %147 = vector.broadcast %cst_62 : f32 to vector<11x1xf32>
    %148 = arith.divf %146, %147 : vector<11x1xf32>
    %cst_63 = arith.constant 9.99999974E-6 : f32
    %149 = vector.broadcast %cst_63 : f32 to vector<11x1xf32>
    %150 = arith.addf %148, %149 : vector<11x1xf32>
    %151 = math.rsqrt %150 : vector<11x1xf32>
    %152 = vector.broadcast %151 : vector<11x1xf32> to vector<11x128xf32>
    %153 = arith.mulf %143, %152 : vector<11x128xf32>
    %154 = vector.broadcast %136 : vector<1x128xf32> to vector<11x128xf32>
    %155 = arith.mulf %153, %154 : vector<11x128xf32>
    %156 = vector.broadcast %137 : vector<1x128xf32> to vector<11x128xf32>
    %157 = arith.addf %155, %156 : vector<11x128xf32>
    %c0_64 = arith.constant 0 : index
    %c0_65 = arith.constant 0 : index
    %158 = vector.load %arg9[%c0_64, %c0_65] : memref<128x128xf32, #tpu.memory_space<vmem>>, vector<128x128xf32>
    %c88 = arith.constant 88 : index
    %c0_66 = arith.constant 0 : index
    %159 = vector.load %arg10[%c88, %c0_66] : memref<248x512xf32, #tpu.memory_space<vmem>>, vector<1x128xf32>
    %cst_67 = arith.constant dense<0.000000e+00> : vector<11x128xf32>
    %160 = tpu.matmul %157, %158, %cst_67 {dimension_numbers = #tpu.dot_dimension_numbers<[1], [0], [0], [1], [0, 0, 1, 1], [], []>} : vector<11x128xf32>, vector<128x128xf32>, vector<11x128xf32> -> vector<11x128xf32>
    %161 = vector.broadcast %159 : vector<1x128xf32> to vector<11x128xf32>
    %162 = arith.addf %160, %161 : vector<11x128xf32>
    %cst_68 = arith.constant 0.000000e+00 : f32
    %163 = vector.broadcast %cst_68 : f32 to vector<11x128xf32>
    %164 = arith.subf %163, %162 : vector<11x128xf32>
    %165 = math.exp %164 : vector<11x128xf32>
    %cst_69 = arith.constant 1.000000e+00 : f32
    %166 = vector.broadcast %cst_69 : f32 to vector<11x128xf32>
    %167 = arith.addf %166, %165 : vector<11x128xf32>
    %cst_70 = arith.constant 1.000000e+00 : f32
    %168 = vector.broadcast %cst_70 : f32 to vector<11x128xf32>
    %169 = arith.divf %168, %167 : vector<11x128xf32>
    %c112 = arith.constant 112 : index
    %c0_71 = arith.constant 0 : index
    %170 = vector.load %arg10[%c112, %c0_71] : memref<248x512xf32, #tpu.memory_space<vmem>>, vector<128x16xf32>
    %cst_72 = arith.constant dense<0.000000e+00> : vector<11x16xf32>
    %171 = tpu.matmul %169, %170, %cst_72 {dimension_numbers = #tpu.dot_dimension_numbers<[1], [0], [0], [1], [0, 0, 1, 1], [], []>} : vector<11x128xf32>, vector<128x16xf32>, vector<11x16xf32> -> vector<11x16xf32>
    %c240 = arith.constant 240 : index
    %c0_73 = arith.constant 0 : index
    %172 = vector.load %arg10[%c240, %c0_73] : memref<248x512xf32, #tpu.memory_space<vmem>>, vector<1x1xf32>
    %173 = vector.broadcast %172 : vector<1x1xf32> to vector<11x16xf32>
    %174 = arith.addf %171, %173 : vector<11x16xf32>
    %175 = vector.extract_strided_slice %174 {offsets = [0, 0], sizes = [1, 16], strides = [1, 1]} : vector<11x16xf32> to vector<1x16xf32>
    %c0_74 = arith.constant 0 : index
    %c0_75 = arith.constant 0 : index
    %c0_76 = arith.constant 0 : index
    %176 = vector.load %arg11[%c0_74, %c0_75, %c0_76] : memref<2x1x16xf32, #tpu.memory_space<vmem>>, vector<1x1x16xf32>
    %177 = vector.shape_cast %176 : vector<1x1x16xf32> to vector<1x16xf32>
    %178 = vector.shape_cast %175 : vector<1x16xf32> to vector<1x1x16xf32>
    tpu.vector_store %arg11[%c0_74, %c0_75, %c0_76], %178 {strides = array<i32>} : memref<2x1x16xf32, #tpu.memory_space<vmem>>, vector<1x1x16xf32>,
    %179 = vector.extract_strided_slice %174 {offsets = [10, 0], sizes = [1, 16], strides = [1, 1]} : vector<11x16xf32> to vector<1x16xf32>
    %c1 = arith.constant 1 : index
    %c0_77 = arith.constant 0 : index
    %c0_78 = arith.constant 0 : index
    %180 = vector.load %arg11[%c1, %c0_77, %c0_78] : memref<2x1x16xf32, #tpu.memory_space<vmem>>, vector<1x1x16xf32>
    %181 = vector.shape_cast %180 : vector<1x1x16xf32> to vector<1x16xf32>
    %182 = vector.shape_cast %179 : vector<1x16xf32> to vector<1x1x16xf32>
    tpu.vector_store %arg11[%c1, %c0_77, %c0_78], %182 {strides = array<i32>} : memref<2x1x16xf32, #tpu.memory_space<vmem>>, vector<1x1x16xf32>,
    return
  }
  func.func @transform_0(%arg0: i32) -> (i32, i32, i32) {
    %c0_i32 = arith.constant 0 : i32
    %c0_i32_0 = arith.constant 0 : i32
    %c0_i32_1 = arith.constant 0 : i32
    return %arg0, %c0_i32, %c0_i32_0 : i32, i32, i32
  }
  func.func @transform_1(%arg0: i32) -> (i32, i32) {
    %c0_i32 = arith.constant 0 : i32
    %c0_i32_0 = arith.constant 0 : i32
    %c0_i32_1 = arith.constant 0 : i32
    return %c0_i32, %c0_i32_0 : i32, i32
  }
  func.func @transform_2(%arg0: i32) -> (i32, i32) {
    %c0_i32 = arith.constant 0 : i32
    %c0_i32_0 = arith.constant 0 : i32
    %c0_i32_1 = arith.constant 0 : i32
    return %c0_i32, %c0_i32_0 : i32, i32
  }
  func.func @transform_3(%arg0: i32) -> (i32, i32) {
    %c0_i32 = arith.constant 0 : i32
    %c0_i32_0 = arith.constant 0 : i32
    %c0_i32_1 = arith.constant 0 : i32
    return %c0_i32, %c0_i32_0 : i32, i32
  }
  func.func @transform_4(%arg0: i32) -> (i32, i32) {
    %c0_i32 = arith.constant 0 : i32
    %c0_i32_0 = arith.constant 0 : i32
    %c0_i32_1 = arith.constant 0 : i32
    return %c0_i32, %c0_i32_0 : i32, i32
  }
  func.func @transform_5(%arg0: i32) -> (i32, i32) {
    %c0_i32 = arith.constant 0 : i32
    %c0_i32_0 = arith.constant 0 : i32
    %c0_i32_1 = arith.constant 0 : i32
    return %c0_i32, %c0_i32_0 : i32, i32
  }
  func.func @transform_6(%arg0: i32) -> (i32, i32) {
    %c0_i32 = arith.constant 0 : i32
    %c0_i32_0 = arith.constant 0 : i32
    %c0_i32_1 = arith.constant 0 : i32
    return %c0_i32, %c0_i32_0 : i32, i32
  }
  func.func @transform_7(%arg0: i32) -> (i32, i32) {
    %c0_i32 = arith.constant 0 : i32
    %c0_i32_0 = arith.constant 0 : i32
    %c0_i32_1 = arith.constant 0 : i32
    return %c0_i32, %c0_i32_0 : i32, i32
  }
  func.func @transform_8(%arg0: i32) -> (i32, i32) {
    %c0_i32 = arith.constant 0 : i32
    %c0_i32_0 = arith.constant 0 : i32
    %c0_i32_1 = arith.constant 0 : i32
    return %c0_i32, %c0_i32_0 : i32, i32
  }
  func.func @transform_9(%arg0: i32) -> (i32, i32) {
    %c0_i32 = arith.constant 0 : i32
    %c0_i32_0 = arith.constant 0 : i32
    %c0_i32_1 = arith.constant 0 : i32
    return %c0_i32, %c0_i32_0 : i32, i32
  }
  func.func @transform_10(%arg0: i32) -> (i32, i32, i32) {
    %c0_i32 = arith.constant 0 : i32
    %c0_i32_0 = arith.constant 0 : i32
    %c0_i32_1 = arith.constant 0 : i32
    return %arg0, %c0_i32, %c0_i32_0 : i32, i32, i32
  }
}

</mosaic_0001>

<bundles_post_ra>
// kernel: tpu_custom_call.1
= control target key start
LH: loop header
LB: loop body
LE: loop exit
PB: predicated region body
PF: predicated region fallthrough
CT: control target
= control target key end

     0   :  { %15 = vsyncpa [#allocation3], 0  ;;  %s3711_s0 = inlined_call_operand.vmem [shape: f32[1,20,48], index: 0, kind: input, shape index: {}]   ;;  %s3712_s1 = inlined_call_operand.hbm [shape: f32[48,512], index: 1, kind: input, shape index: {}]   ;;  %s3713_s2 = inlined_call_operand.hbm [shape: f32[256,256], index: 2, kind: input, shape index: {}]   ;;  %s3714_s3 = inlined_call_operand.hbm [shape: f32[768,128], index: 3, kind: input, shape index: {}]   ;;  %s3715_s4 = inlined_call_operand.hbm [shape: f32[384,512], index: 4, kind: input, shape index: {}]   ;;  %s3716_s5 = inlined_call_operand.hbm [shape: f32[256,256], index: 5, kind: input, shape index: {}]   ;;  %s3717_s6 = inlined_call_operand.hbm [shape: f32[768,128], index: 6, kind: input, shape index: {}]   ;;  %s3718_s7 = inlined_call_operand.hbm [shape: f32[512,256], index: 7, kind: input, shape index: {}]   ;;  %s3719_s8 = inlined_call_operand.hbm [shape: f32[128,128], index: 8, kind: input, shape index: {}]   ;;  %s3720_s9 = inlined_call_operand.hbm [shape: f32[248,512], index: 9, kind: input, shape index: {}]   ;;  %s3721_s10 = inlined_call_operand.hbm [shape: f32[2,1,16], index: 10, kind: output, shape index: {}]  }
   0x1   :  { %16 = vsyncpa [#allocation6], 0 }
   0x2   :  { %17 = vsyncpa [#allocation9], 0 }
   0x3   :  { %18 = vsyncpa [#allocation12], 0 }
   0x4   :  { %19 = vsyncpa [#allocation15], 0 }
   0x5   :  { %20 = vsyncpa [#allocation4], 0  ;;  %s3356_s13 = smov [#allocation5]  }
   0x6   :  { %s40_s14 = sshll.u32 %s3356_s13, 4  ;;  %s41_s14 = int_to_ptr.vmem [resolvable:$true] %s40_s14 }
   0x7   :  { %s3152_s15 = scalar_lea.vmem %s41_s14, 8192  ;;  %p3157_p1 = scmp.lt.s32.totalorder %s41_s14, %s41_s14 }
   0x8   :  { %p3153_p0 = scmp.ne.s32.totalorder %s41_s14, %s3152_s15  ;;  %p3158_p2 = scmp.lt.s32.totalorder %s3152_s15, %s3152_s15 }
   0xa   :  { %p3159_p3 = por %p3158_p2, %p3157_p1 }
   0xc   :  { %p3160_p4 = pnand %p3159_p3, %p3153_p0 }
   0xe   :  { %3163 = shalt.err (!%p3160_p4)
}
   0xf   :  { %s3357_s16 = smov 256   ;;  %s3358_s17 = smov 16  }
  0x10   :  { %46 = dma.hbm_to_vmem [thread:$0]  %s3713_s2, 8192, %s41_s14, [#allocation6], %s3357_s16, %s3357_s16, %s3358_s17  }
  0x11   :  { %s3359_s20 = smov [#allocation8]  }
  0x12   :  { %s64_s21 = sshll.u32 %s3359_s20, 4  ;;  %s65_s21 = int_to_ptr.vmem [resolvable:$true] %s64_s21 }
  0x13   :  { %s3172_s22 = scalar_lea.vmem %s65_s21, 24576  ;;  %p3177_p6 = scmp.lt.s32.totalorder %s65_s21, %s65_s21 }
  0x14   :  { %p3173_p5 = scmp.ne.s32.totalorder %s65_s21, %s3172_s22  ;;  %p3178_p7 = scmp.lt.s32.totalorder %s3172_s22, %s3172_s22 }
  0x16   :  { %p3179_p8 = por %p3178_p7, %p3177_p6 }
  0x18   :  { %p3180_p9 = pnand %p3179_p8, %p3173_p5 }
  0x1a   :  { %3183 = shalt.err (!%p3180_p9)
}
  0x1b   :  { %s3360_s23 = smov 512   ;;  %s3361_s24 = smov 32  }
  0x1c   :  { %70 = dma.hbm_to_vmem [thread:$0]  %s3715_s4, 24576, %s65_s21, [#allocation9], %s3360_s23, %s3360_s23, %s3361_s24  }
  0x1d   :  { %s3362_s2 = smov [#allocation11]   ;;  %s3363_s28 = smov [#allocation14]  }
  0x1e   :  { %s88_s27 = sshll.u32 %s3362_s2, 4  ;;  %s112_s29 = sshll.u32 %s3363_s28, 4  ;;  %s89_s27 = int_to_ptr.vmem [resolvable:$true] %s88_s27  ;;  %s113_s29 = int_to_ptr.vmem [resolvable:$true] %s112_s29 }
  0x1f   :  { %s3192_s30 = scalar_lea.vmem %s89_s27, 12288  ;;  %p3197_p11 = scmp.lt.s32.totalorder %s89_s27, %s89_s27 }
  0x20   :  { %p3193_p10 = scmp.ne.s32.totalorder %s89_s27, %s3192_s30  ;;  %p3198_p12 = scmp.lt.s32.totalorder %s3192_s30, %s3192_s30 }
  0x22   :  { %p3199_p13 = por %p3198_p12, %p3197_p11 }
  0x24   :  { %p3200_p0 = pnand %p3199_p13, %p3193_p10 }
  0x26   :  { %3203 = shalt.err (!%p3200_p0)
}
  0x27   :  { %s3364_s11 = smov 128   ;;  %s3365_s12 = smov 8  }
  0x28   :  { %94 = dma.hbm_to_vmem [thread:$0]  %s3717_s6, 12288, %s89_s27, [#allocation12], %s3364_s11, %s3364_s11, %s3365_s12  }
  0x29   :  { %s3212_s14 = scalar_lea.vmem %s113_s29, 2048  ;;  %p3217_p2 = scmp.lt.s32.totalorder %s113_s29, %s113_s29 }
  0x2a   :  { %p3213_p1 = scmp.ne.s32.totalorder %s113_s29, %s3212_s14  ;;  %p3218_p3 = scmp.lt.s32.totalorder %s3212_s14, %s3212_s14 }
  0x2c   :  { %p3219_p4 = por %p3218_p3, %p3217_p2 }
  0x2e   :  { %p3220_p5 = pnand %p3219_p4, %p3213_p1 }
  0x30   :  { %3223 = shalt.err (!%p3220_p5)
}
  0x31   :  { %118 = dma.hbm_to_vmem [thread:$0]  %s3719_s8, 2048, %s113_s29, [#allocation15], %s3364_s11, %s3364_s11, %s3365_s12  }
  0x32   :  { %s3366_s19 = smov [#allocation2]   ;;  %s3367_s21 = smov [#allocation7]  }
  0x33   :  { %s28_s20 = sshll.u32 %s3366_s19, 4  ;;  %s52_s22 = sshll.u32 %s3367_s21, 4  ;;  %s29_s20 = int_to_ptr.vmem [resolvable:$true] %s28_s20  ;;  %s53_s22 = int_to_ptr.vmem [resolvable:$true] %s52_s22 }
  0x34   :  { %s3232_s6 = scalar_lea.vmem %s29_s20, 3072  ;;  %p3237_p7 = scmp.lt.s32.totalorder %s29_s20, %s29_s20 }
  0x35   :  { %p3233_p6 = scmp.ne.s32.totalorder %s29_s20, %s3232_s6  ;;  %p3238_p8 = scmp.lt.s32.totalorder %s3232_s6, %s3232_s6 }
  0x37   :  { %p3239_p9 = por %p3238_p8, %p3237_p7 }
  0x39   :  { %p3240_p10 = pnand %p3239_p9, %p3233_p6 }
  0x3b   :  { %3243 = shalt.err (!%p3240_p10)
}
  0x3c   :  { %34 = dma.hbm_to_vmem [thread:$0]  %s3712_s1, 3072, %s29_s20, [#allocation3], %s3360_s23, %s3360_s23, %s3361_s24  }
  0x3d   :  { %s3252_s8 = scalar_lea.vmem %s53_s22, 12288  ;;  %p3257_p12 = scmp.lt.s32.totalorder %s53_s22, %s53_s22 }
  0x3e   :  { %p3253_p11 = scmp.ne.s32.totalorder %s53_s22, %s3252_s8  ;;  %p3258_p13 = scmp.lt.s32.totalorder %s3252_s8, %s3252_s8 }
  0x40   :  { %p3259_p0 = por %p3258_p13, %p3257_p12 }
  0x42   :  { %p3260_p1 = pnand %p3259_p0, %p3253_p11 }
  0x44   :  { %3263 = shalt.err (!%p3260_p1)
}
  0x45   :  { %58 = dma.hbm_to_vmem [thread:$0]  %s3714_s3, 12288, %s53_s22, [#allocation6], %s3364_s11, %s3364_s11, %s3365_s12  }
  0x46   :  { %s3368_s28 = smov [#allocation10]   ;;  %s3369_s30 = smov [#allocation13]  }
  0x47   :  { %s76_s29 = sshll.u32 %s3368_s28, 4  ;;  %s100_s13 = sshll.u32 %s3369_s30, 4  ;;  %s77_s29 = int_to_ptr.vmem [resolvable:$true] %s76_s29  ;;  %s101_s13 = int_to_ptr.vmem [resolvable:$true] %s100_s13 }
  0x48   :  { %s3272_s1 = scalar_lea.vmem %s77_s29, 8192  ;;  %p3277_p3 = scmp.lt.s32.totalorder %s77_s29, %s77_s29 }
  0x49   :  { %p3273_p2 = scmp.ne.s32.totalorder %s77_s29, %s3272_s1  ;;  %p3278_p4 = scmp.lt.s32.totalorder %s3272_s1, %s3272_s1 }
  0x4b   :  { %p3279_p5 = por %p3278_p4, %p3277_p3 }
  0x4d   :  { %p3280_p6 = pnand %p3279_p5, %p3273_p2 }
  0x4f   :  { %3283 = shalt.err (!%p3280_p6)
}
  0x50   :  { %82 = dma.hbm_to_vmem [thread:$0]  %s3716_s5, 8192, %s77_s29, [#allocation9], %s3357_s16, %s3357_s16, %s3358_s17  }
  0x51   :  { %s3292_s3 = scalar_lea.vmem %s101_s13, 16384  ;;  %p3297_p8 = scmp.lt.s32.totalorder %s101_s13, %s101_s13 }
  0x52   :  { %p3293_p7 = scmp.ne.s32.totalorder %s101_s13, %s3292_s3  ;;  %p3298_p9 = scmp.lt.s32.totalorder %s3292_s3, %s3292_s3 }
  0x54   :  { %p3299_p10 = por %p3298_p9, %p3297_p8 }
  0x56   :  { %p3300_p11 = pnand %p3299_p10, %p3293_p7 }
  0x58   :  { %3303 = shalt.err (!%p3300_p11)
}
  0x59   :  { %106 = dma.hbm_to_vmem [thread:$0]  %s3718_s7, 16384, %s101_s13, [#allocation12], %s3357_s16, %s3357_s16, %s3358_s17  }
  0x5a   :  { %s3370_s15 = smov [#allocation16]  }
  0x5b   :  { %s124_s18 = sshll.u32 %s3370_s15, 4  ;;  %s125_s18 = int_to_ptr.vmem [resolvable:$true] %s124_s18 }
  0x5c   :  { %s3312_s19 = scalar_lea.vmem %s125_s18, 15872  ;;  %p3317_p13 = scmp.lt.s32.totalorder %s125_s18, %s125_s18 }
  0x5d   :  { %p3313_p12 = scmp.ne.s32.totalorder %s125_s18, %s3312_s19  ;;  %p3318_p0 = scmp.lt.s32.totalorder %s3312_s19, %s3312_s19 }
  0x5f   :  { %p3319_p1 = por %p3318_p0, %p3317_p13 }
  0x61   :  { %p3320_p2 = pnand %p3319_p1, %p3313_p12 }
  0x63   :  { %3323 = shalt.err (!%p3320_p2)
}
  0x64   :  { %130 = dma.hbm_to_vmem [thread:$0]  %s3720_s9, 15872, %s125_s18, [#allocation15], %s3360_s23, %s3360_s23, %s3361_s24  }
  0x65   :  { %3344 = dma.done.wait [#allocation3], 3072  }
  0x66   :  { %3345 = vsyncadd [#allocation3], 4294964224 }
  0x67   :  { %3346 = dma.done.wait [#allocation6], 20480  }
  0x68   :  { %3347 = vsyncadd [#allocation6], 4294946816 }
  0x69   :  { %3348 = dma.done.wait [#allocation9], 32768  }
  0x6a   :  { %3349 = vsyncadd [#allocation9], 4294934528 }
  0x6b   :  { %3350 = dma.done.wait [#allocation12], 28672  }
  0x6c   :  { %3351 = vsyncadd [#allocation12], 4294938624 }
  0x6d   :  { %3352 = dma.done.wait [#allocation15], 17920  }
  0x6e   :  { %3353 = vsyncadd [#allocation15], 4294949376  ;;  %v3371_v0 = vmov 0.0   ;;  %v184_v1 = vld [vmem:[#allocation2 + $0xb8] sm:$0xff]  ;;  %v183_v2 = vld [vmem:[#allocation2 + $0xb0] sm:$0xff]  ;;  %vm207_vm0 = vcmask 392192  }
  0x6f   :  { %364 = vmatprep.mubr.f32.mxu1 %v3371_v0  ;;  %281 = vmatprep.mubr.f32.mxu0 %v3371_v0  ;;  %v180_v3 = vld [vmem:[#allocation2 + $0x98] sm:$0xff]  ;;  %v179_v4 = vld [vmem:[#allocation2 + $0x90] sm:$0xff]  ;;  %v182_v9 = vld [vmem:[#allocation2 + $0xa8] sm:$0xff]  ;;  %vm614_vm1 = vcmask 1045504   ;;  %vm597_vm2 = vcmask 1046528   ;;  %vm977_vm3 = vcmask 1041408  }
  0x70   :  { %320 = vmatprep.subr.mxu1 %v184_v1  ;;  %v176_v5 = vld [vmem:[#allocation2 + $0x78] sm:$0xff]  ;;  %v175_v6 = vld [vmem:[#allocation2 + $0x70] sm:$0xff]  ;;  %v181_v10 = vld [vmem:[#allocation2 + $0xa0] sm:$0xff]  ;;  %237 = vmatprep.subr.mxu0 %v182_v9  ;;  %vm2132_vm4 = vcmask 1044480   ;;  %vm2451_vm5 = vcmask 1042432   ;;  %vm2682_vm6 = vcmask 124930  }
  0x71   :  { %321 = vmatpush1.msra.mxu1 %v183_v2  ;;  %v172_v7 = vld [vmem:[#allocation2 + $0x58] sm:$0xff]  ;;  %v171_v8 = vld [vmem:[#allocation2 + $0x50] sm:$0xff]  ;;  %v178_v11 = vld [vmem:[#allocation2 + $0x88] sm:$0xff]  ;;  %238 = vmatpush1.msra.mxu0 %v181_v10  ;;  %vm2679_vm7 = vcmask 122880  }
  0x72   :  { %322 = vmatprep.subr.mxu1 %v180_v3  ;;  %v168_v12 = vld [vmem:[#allocation2 + $0x38] sm:$0xff]  ;;  %v177_v13 = vld [vmem:[#allocation2 + $0x80] sm:$0xff]  ;;  %v167_v14 = vld [vmem:[#allocation2 + $0x30] sm:$0xff]  ;;  %239 = vmatprep.subr.mxu0 %v178_v11 }
  0x73   :  { %323 = vmatpush1.msra.mxu1 %v179_v4  ;;  %v174_v15 = vld [vmem:[#allocation2 + $0x68] sm:$0xff]  ;;  %v164_v16 = vld [vmem:[#allocation2 + $0x18] sm:$0xff]  ;;  %v173_v17 = vld [vmem:[#allocation2 + $0x60] sm:$0xff]  ;;  %240 = vmatpush1.msra.mxu0 %v177_v13 }
  0x74   :  { %324 = vmatprep.subr.mxu1 %v176_v5  ;;  %v163_v18 = vld [vmem:[#allocation2 + $0x10] sm:$0xff]  ;;  %v170_v19 = vld [vmem:[#allocation2 + $0x48] sm:$0xff]  ;;  %v158_v20 = vld [vmem:[%s3711_s0] sm:$0xff]  ;;  %241 = vmatprep.subr.mxu0 %v174_v15 }
  0x75   :  { %325 = vmatpush1.msra.mxu1 %v175_v6  ;;  %v169_v21 = vld [vmem:[#allocation2 + $0x40] sm:$0xff]  ;;  %242 = vmatpush1.msra.mxu0 %v173_v17  ;;  %v166_v22 = vld [vmem:[#allocation2 + $0x28] sm:$0xff]  ;;  %v456_v27 = vld [vmem:[#allocation5 + $0xf8] sm:$0xff] }
  0x76   :  { %326 = vmatprep.subr.mxu1 %v172_v7  ;;  %243 = vmatprep.subr.mxu0 %v170_v19  ;;  %v165_v23 = vld [vmem:[#allocation2 + $0x20] sm:$0xff]  ;;  %v162_v24 = vld [vmem:[#allocation2 + $0x8] sm:$0xff]  ;;  %v455_v28 = vld [vmem:[#allocation5 + $0xf0] sm:$0xff] }
  0x77   :  { %327 = vmatpush1.msra.mxu1 %v171_v8  ;;  %244 = vmatpush1.msra.mxu0 %v169_v21  ;;  %v159_v25 = vld [vmem:[%s3711_s0 + $0x8] sm:$0xff]  ;;  %v161_v26 = vld [vmem:[#allocation2] sm:$0xff]  ;;  %v160_v29 = vld [vmem:[%s3711_s0 + $0x10] sm:$0xf]  ;;  %s3373_s0 = smov [#allocation17]  }
  0x78   :  { %328 = vmatprep.subr.mxu1 %v168_v12  ;;  %245 = vmatprep.subr.mxu0 %v166_v22  ;;  %v454_v30 = vld [vmem:[#allocation5 + $0xe8] sm:$0xff]  ;;  %v453_v31 = vld [vmem:[#allocation5 + $0xe0] sm:$0xff]  ;;  %v452_v32 = vld [vmem:[#allocation5 + $0xd8] sm:$0xff]  ;;  %s2689_s22 = sshll.u32 %s3373_s0, 4  ;;  %s2690_s22 = int_to_ptr.vmem [resolvable:$true] %s2689_s22 }
  0x79   :  { %329 = vmatpush1.msra.mxu1 %v167_v14  ;;  %246 = vmatpush1.msra.mxu0 %v165_v23  ;;  %v451_v33 = vld [vmem:[#allocation5 + $0xd0] sm:$0xff]  ;;  %v450_v34 = vld [vmem:[#allocation5 + $0xc8] sm:$0xff]  ;;  %v449_v35 = vld [vmem:[#allocation5 + $0xc0] sm:$0xff]  ;;  %s3324_s6 = scalar_lea.vmem %s2690_s22, 32  ;;  %p3329_p4 = scmp.lt.s32.totalorder %s2690_s22, %s2690_s22 }
  0x7a   :  { %330 = vmatprep.subr.mxu1 %v164_v16  ;;  %247 = vmatprep.subr.mxu0 %v162_v24  ;;  %v448_v36 = vld [vmem:[#allocation5 + $0xb8] sm:$0xff]  ;;  %v447_v37 = vld [vmem:[#allocation5 + $0xb0] sm:$0xff]  ;;  %v446_v38 = vld [vmem:[#allocation5 + $0xa8] sm:$0xff]  ;;  %p3325_p3 = scmp.ne.s32.totalorder %s2690_s22, %s3324_s6  ;;  %p3330_p5 = scmp.lt.s32.totalorder %s3324_s6, %s3324_s6 }
  0x7b   :  { %331 = vmatpush1.msra.mxu1 %v163_v18  ;;  %248 = vmatpush1.msra.mxu0 %v161_v26  ;;  %v445_v39 = vld [vmem:[#allocation5 + $0xa0] sm:$0xff]  ;;  %v444_v40 = vld [vmem:[#allocation5 + $0x98] sm:$0xff]  ;;  %v443_v41 = vld [vmem:[#allocation5 + $0x90] sm:$0xff] }
  0x7c   :  { %2708 = vmatmul.mubr.msk.f32.vlgmr.msra.gmra.mxu1 %vm207_vm0, %v158_v20  ;;  %2705 = vmatmul.mubr.msk.f32.vlgmr.msra.gmra.mxu0 %vm207_vm0, %v158_v20  ;;  %v442_v42 = vld [vmem:[#allocation5 + $0x88] sm:$0xff]  ;;  %v441_v43 = vld [vmem:[#allocation5 + $0x80] sm:$0xff]  ;;  %v440_v44 = vld [vmem:[#allocation5 + $0x78] sm:$0xff]  ;;  %p3331_p6 = por %p3330_p5, %p3329_p4 }
  0x7d   :  { %370 = vmatprep.mubr.f32.mxu1 %v3371_v0  ;;  %287 = vmatprep.mubr.f32.mxu0 %v3371_v0  ;;  %v439_v45 = vld [vmem:[#allocation5 + $0x70] sm:$0xff]  ;;  %v438_v46 = vld [vmem:[#allocation5 + $0x68] sm:$0xff]  ;;  %v437_v47 = vld [vmem:[#allocation5 + $0x60] sm:$0xff] }
  0x7e   :  { %502 = vmatprep.subr.mxu0 %v456_v27  ;;  %v436_v48 = vld [vmem:[#allocation5 + $0x58] sm:$0xff]  ;;  %v435_v49 = vld [vmem:[#allocation5 + $0x50] sm:$0xff]  ;;  %v434_v50 = vld [vmem:[#allocation5 + $0x48] sm:$0xff]  ;;  %p3332_p7 = pnand %p3331_p6, %p3325_p3 }
  0x7f   :  { %503 = vmatpush1.msra.mxu0 %v455_v28  ;;  %v433_v51 = vld [vmem:[#allocation5 + $0x40] sm:$0xff]  ;;  %v432_v52 = vld [vmem:[#allocation5 + $0x38] sm:$0xff]  ;;  %v431_v53 = vld [vmem:[#allocation5 + $0x30] sm:$0xff] }
  0x80   :  { %2709 = vmatmul.mubr.msk.f32.gmra.mxu1 %vm207_vm0, %v159_v25  ;;  %504 = vmatprep.subr.mxu0 %v454_v30  ;;  %v430_v54 = vld [vmem:[#allocation5 + $0x28] sm:$0xff]  ;;  %v429_v55 = vld [vmem:[#allocation5 + $0x20] sm:$0xff]  ;;  %v428_v56 = vld [vmem:[#allocation5 + $0x18] sm:$0xff] }
  0x81   :  { %376 = vmatprep.mubr.f32.mxu1 %v3371_v0  ;;  %2706 = vmatmul.mubr.msk.f32.gmra.mxu0 %vm207_vm0, %v159_v25  ;;  %v427_v57 = vld [vmem:[#allocation5 + $0x10] sm:$0xff]  ;;  %v426_v58 = vld [vmem:[#allocation5 + $0x8] sm:$0xff]  ;;  %v425_v59 = vld [vmem:[#allocation5] sm:$0xff] }
  0x82   :  { %293 = vmatprep.mubr.f32.mxu0 %v3371_v0  ;;  %505 = vmatpush1.msra.mxu0 %v453_v31  ;;  %v488_v60 = vld [vmem:[#allocation5 + $0x1f8] sm:$0xff]  ;;  %v487_v61 = vld [vmem:[#allocation5 + $0x1f0] sm:$0xff]  ;;  %v486_v62 = vld [vmem:[#allocation5 + $0x1e8] sm:$0xff] }
  0x83   :  { %506 = vmatprep.subr.mxu0 %v452_v32  ;;  %v485_v63 = vld [vmem:[#allocation5 + $0x1e0] sm:$0xff]  ;;  %v484_v1 = vld [vmem:[#allocation5 + $0x1d8] sm:$0xff]  ;;  %v483_v2 = vld [vmem:[#allocation5 + $0x1d0] sm:$0xff] }
  0x84   :  { %2710 = vmatmul.mubr.msk.f32.gmra.mxu1 %vm207_vm0, %v160_v29  ;;  %507 = vmatpush1.msra.mxu0 %v451_v33  ;;  %v482_v3 = vld [vmem:[#allocation5 + $0x1c8] sm:$0xff]  ;;  %v481_v4 = vld [vmem:[#allocation5 + $0x1c0] sm:$0xff]  ;;  %v480_v5 = vld [vmem:[#allocation5 + $0x1b8] sm:$0xff] }
  0x85   :  { %2707 = vmatmul.mubr.msk.f32.gmra.mxu0 %vm207_vm0, %v160_v29  ;;  %508 = vmatprep.subr.mxu0 %v450_v34  ;;  %v479_v6 = vld [vmem:[#allocation5 + $0x1b0] sm:$0xff]  ;;  %v478_v7 = vld [vmem:[#allocation5 + $0x1a8] sm:$0xff]  ;;  %v477_v8 = vld [vmem:[#allocation5 + $0x1a0] sm:$0xff] }
  0x86   :  { %509 = vmatpush1.msra.mxu0 %v449_v35  ;;  %v476_v9 = vld [vmem:[#allocation5 + $0x198] sm:$0xff]  ;;  %v475_v10 = vld [vmem:[#allocation5 + $0x190] sm:$0xff]  ;;  %v474_v11 = vld [vmem:[#allocation5 + $0x188] sm:$0xff] }
  0x87   :  { %510 = vmatprep.subr.mxu0 %v448_v36  ;;  %v473_v12 = vld [vmem:[#allocation5 + $0x180] sm:$0xff]  ;;  %v472_v13 = vld [vmem:[#allocation5 + $0x178] sm:$0xff]  ;;  %v471_v14 = vld [vmem:[#allocation5 + $0x170] sm:$0xff] }
  0x88   :  { %511 = vmatpush1.msra.mxu0 %v447_v37  ;;  %v470_v15 = vld [vmem:[#allocation5 + $0x168] sm:$0xff]  ;;  %v469_v16 = vld [vmem:[#allocation5 + $0x160] sm:$0xff]  ;;  %v468_v17 = vld [vmem:[#allocation5 + $0x158] sm:$0xff] }
  0x89   :  { %512 = vmatprep.subr.mxu0 %v446_v38  ;;  %v467_v18 = vld [vmem:[#allocation5 + $0x150] sm:$0xff]  ;;  %v466_v19 = vld [vmem:[#allocation5 + $0x148] sm:$0xff]  ;;  %v465_v20 = vld [vmem:[#allocation5 + $0x140] sm:$0xff] }
  0x8a   :  { %513 = vmatpush1.msra.mxu0 %v445_v39  ;;  %v464_v21 = vld [vmem:[#allocation5 + $0x138] sm:$0xff]  ;;  %v463_v22 = vld [vmem:[#allocation5 + $0x130] sm:$0xff]  ;;  %v462_v23 = vld [vmem:[#allocation5 + $0x128] sm:$0xff] }
  0x8b   :  { %514 = vmatprep.subr.mxu0 %v444_v40  ;;  %v461_v24 = vld [vmem:[#allocation5 + $0x120] sm:$0xff]  ;;  %v460_v25 = vld [vmem:[#allocation5 + $0x118] sm:$0xff]  ;;  %v459_v26 = vld [vmem:[#allocation5 + $0x110] sm:$0xff] }
  0x8c   :  { %515 = vmatpush1.msra.mxu0 %v443_v41  ;;  %v458_v27 = vld [vmem:[#allocation5 + $0x108] sm:$0xff]  ;;  %v457_v28 = vld [vmem:[#allocation5 + $0x100] sm:$0xff]  ;;  %v662_v29 = vld [vmem:[#allocation7 + $0xf8] sm:$0xff] }
  0x8d   :  { %516 = vmatprep.subr.mxu0 %v442_v42  ;;  %v646_v30 = vld [vmem:[#allocation7 + $0x78] sm:$0xff]  ;;  %v661_v31 = vld [vmem:[#allocation7 + $0xf0] sm:$0xff]  ;;  %2711 = vmatprep.subr.mxu1 %v662_v29  ;;  %v660_v33 = vld [vmem:[#allocation7 + $0xe8] sm:$0xff] }
  0x8e   :  { %517 = vmatpush1.msra.mxu0 %v441_v43  ;;  %v645_v32 = vld [vmem:[#allocation7 + $0x70] sm:$0xff]  ;;  %2712 = vmatpush3.msra.mxu1 %v646_v30  ;;  %v644_v34 = vld [vmem:[#allocation7 + $0x68] sm:$0xff]  ;;  %v726_v35 = vld [vmem:[#allocation7 + $0x2f8] sm:$0xff] }
  0x8f   :  { %518 = vmatprep.subr.mxu0 %v440_v44  ;;  %2713 = vmatprep.subr.mxu1 %v661_v31  ;;  %v659_v36 = vld [vmem:[#allocation7 + $0xe0] sm:$0xff]  ;;  %v658_v38 = vld [vmem:[#allocation7 + $0xd8] sm:$0xff]  ;;  %v657_v40 = vld [vmem:[#allocation7 + $0xd0] sm:$0xff] }
  0x90   :  { %519 = vmatpush1.msra.mxu0 %v439_v45  ;;  %2714 = vmatpush3.msra.mxu1 %v645_v32  ;;  %v643_v37 = vld [vmem:[#allocation7 + $0x60] sm:$0xff]  ;;  %v642_v39 = vld [vmem:[#allocation7 + $0x58] sm:$0xff]  ;;  %v641_v41 = vld [vmem:[#allocation7 + $0x50] sm:$0xff] }
  0x91   :  { %520 = vmatprep.subr.mxu0 %v438_v46  ;;  %2715 = vmatprep.subr.mxu1 %v660_v33  ;;  %v656_v42 = vld [vmem:[#allocation7 + $0xc8] sm:$0xff]  ;;  %v655_v44 = vld [vmem:[#allocation7 + $0xc0] sm:$0xff]  ;;  %v654_v46 = vld [vmem:[#allocation7 + $0xb8] sm:$0xff] }
  0x92   :  { %521 = vmatpush1.msra.mxu0 %v437_v47  ;;  %2716 = vmatpush3.msra.mxu1 %v644_v34  ;;  %v640_v43 = vld [vmem:[#allocation7 + $0x48] sm:$0xff]  ;;  %v639_v45 = vld [vmem:[#allocation7 + $0x40] sm:$0xff]  ;;  %v638_v47 = vld [vmem:[#allocation7 + $0x38] sm:$0xff] }
  0x93   :  { %522 = vmatprep.subr.mxu0 %v436_v48  ;;  %2717 = vmatprep.subr.mxu1 %v659_v36  ;;  %v653_v48 = vld [vmem:[#allocation7 + $0xb0] sm:$0xff] }
  0x94   :  { %523 = vmatpush1.msra.mxu0 %v435_v49  ;;  %2718 = vmatpush3.msra.mxu1 %v643_v37  ;;  %v637_v49 = vld [vmem:[#allocation7 + $0x30] sm:$0xff] }
  0x95   :  { %524 = vmatprep.subr.mxu0 %v434_v50  ;;  %2719 = vmatprep.subr.mxu1 %v658_v38  ;;  %v652_v50 = vld [vmem:[#allocation7 + $0xa8] sm:$0xff] }
  0x96   :  { %525 = vmatpush1.msra.mxu0 %v433_v51  ;;  %2720 = vmatpush3.msra.mxu1 %v642_v39  ;;  %v636_v51 = vld [vmem:[#allocation7 + $0x28] sm:$0xff] }
  0x97   :  { %526 = vmatprep.subr.mxu0 %v432_v52  ;;  %2721 = vmatprep.subr.mxu1 %v657_v40  ;;  %v651_v52 = vld [vmem:[#allocation7 + $0xa0] sm:$0xff] }
  0x98   :  { %527 = vmatpush1.msra.mxu0 %v431_v53  ;;  %2722 = vmatpush3.msra.mxu1 %v641_v41  ;;  %v635_v53 = vld [vmem:[#allocation7 + $0x20] sm:$0xff] }
  0x99   :  { %528 = vmatprep.subr.mxu0 %v430_v54  ;;  %2723 = vmatprep.subr.mxu1 %v656_v42  ;;  %v650_v54 = vld [vmem:[#allocation7 + $0x98] sm:$0xff] }
  0x9a   :  { %529 = vmatpush1.msra.mxu0 %v429_v55  ;;  %2724 = vmatpush3.msra.mxu1 %v640_v43  ;;  %v187_v55 = vlaneseq }
  0x9b   :  { %530 = vmatprep.subr.mxu0 %v428_v56  ;;  %2725 = vmatprep.subr.mxu1 %v655_v44 }
  0x9c   :  { %531 = vmatpush1.msra.mxu0 %v427_v57  ;;  %2726 = vmatpush3.msra.mxu1 %v639_v45  ;;  %v3505_v56 = vshrl.u32 %v187_v55, 7  ;;  %v725_v55 = vld [vmem:[#allocation7 + $0x2f0] sm:$0xff] }
  0x9d   :  { %532 = vmatprep.subr.mxu0 %v426_v58  ;;  %2727 = vmatprep.subr.mxu1 %v654_v46  ;;  %v185_v58 = vld [vmem:[#allocation16] ss:$8 sm:$0xf] }
  0x9e   :  { %533 = vmatpush1.msra.mxu0 %v425_v59  ;;  %2728 = vmatpush3.msra.mxu1 %v638_v47  ;;  %v197_v57 = vsub.s32 2, %v3505_v56  ;;  %v201_v59 = vsub.s32 3, %v3505_v56  ;;  %v3514_v34 = vsub.s32 0, %v3505_v56  ;;  %v3517_v37 = vsub.s32 1, %v3505_v56 }
  0x9f   :  { %534 = vmatprep.subr.mxu0 %v488_v60  ;;  %2729 = vmatprep.subr.mxu1 %v653_v48 }
  0xa0   :  { %535 = vmatpush2.msra.mxu0 %v487_v61  ;;  %2730 = vmatpush3.msra.mxu1 %v637_v49  ;;  %v198_v60 = vrot.slane %v185_v58, %v197_v57  ;;  %v202_v61 = vrot.slane %v185_v58, %v201_v59  ;;  %v190_v40 = vrot.slane %v185_v58, %v3514_v34 }
  0xa1   :  { %536 = vmatprep.subr.mxu0 %v486_v62  ;;  %2731 = vmatprep.subr.mxu1 %v652_v50  ;;  %v194_v42 = vrot.slane %v185_v58, %v3517_v37 }
  0xa2   :  { %537 = vmatpush2.msra.mxu0 %v485_v63  ;;  %2732 = vmatpush3.msra.mxu1 %v636_v51 }
  0xa3   :  { %538 = vmatprep.subr.mxu0 %v484_v1  ;;  %2733 = vmatprep.subr.mxu1 %v651_v52 }
  0xa4   :  { %539 = vmatpush2.msra.mxu0 %v483_v2  ;;  %2734 = vmatpush3.msra.mxu1 %v635_v53 }
  0xa5   :  { %540 = vmatprep.subr.mxu0 %v482_v3  ;;  %2735 = vmatprep.subr.mxu1 %v650_v54  ;;  %v710_v54 = vld [vmem:[#allocation7 + $0x278] sm:$0xff] }
  0xa6   :  { %541 = vmatpush2.msra.mxu0 %v481_v4 }
  0xa7   :  { %542 = vmatprep.subr.mxu0 %v480_v5 }
  0xa8   :  { %543 = vmatpush2.msra.mxu0 %v479_v6 }
  0xa9   :  { %544 = vmatprep.subr.mxu0 %v478_v7 }
  0xaa   :  { %545 = vmatpush2.msra.mxu0 %v477_v8 }
  0xab   :  { %546 = vmatprep.subr.mxu0 %v476_v9 }
  0xac   :  { %547 = vmatpush2.msra.mxu0 %v475_v10 }
  0xad   :  { %548 = vmatprep.subr.mxu0 %v474_v11 }
  0xae   :  { %549 = vmatpush2.msra.mxu0 %v473_v12 }
  0xaf   :  { %550 = vmatprep.subr.mxu0 %v472_v13 }
  0xb0   :  { %551 = vmatpush2.msra.mxu0 %v471_v14 }
  0xb1   :  { %552 = vmatprep.subr.mxu0 %v470_v15 }
  0xb2   :  { %553 = vmatpush2.msra.mxu0 %v469_v16 }
  0xb3   :  { %554 = vmatprep.subr.mxu0 %v468_v17 }
  0xb4   :  { %555 = vmatpush2.msra.mxu0 %v467_v18 }
  0xb5   :  { %556 = vmatprep.subr.mxu0 %v466_v19 }
  0xb6   :  { %557 = vmatpush2.msra.mxu0 %v465_v20 }
  0xb7   :  { %558 = vmatprep.subr.mxu0 %v464_v21 }
  0xb8   :  { %559 = vmatpush2.msra.mxu0 %v463_v22 }
  0xb9   :  { %560 = vmatprep.subr.mxu0 %v462_v23 }
  0xba   :  { %561 = vmatpush2.msra.mxu0 %v461_v24 }
  0xbb   :  { %562 = vmatprep.subr.mxu0 %v460_v25 }
  0xbc   :  { %563 = vmatpush2.msra.mxu0 %v459_v26 }
  0xbd   :  { %564 = vmatprep.subr.mxu0 %v458_v27 }
  0xbe   :  { %565 = vmatpush2.msra.mxu0 %v457_v28 }
  0xbf   :  { %2793 = vmatprep.subr.mxu0 %v726_v35 }
 0x13c   :  { %v366_v62 = vpop.f32.mrf.mxu1  ;;  %v283_v26 = vpop.f32.mrf.mxu0 }
 0x13d   :  { %v367_v63 = vadd.f32 %v366_v62, %v198_v60  ;;  %v284_v43 = vadd.f32 %v283_v26, %v190_v40  ;;  %v716_v26 = vld [vmem:[#allocation7 + $0x2a8] sm:$0xff] }
 0x13e   :  { %v368_v1 = vpop.f32.mrf.mxu1  ;;  %v285_v31 = vpop.f32.mrf.mxu0 }
 0x13f   :  { %v383_v2 = vsub.f32 0.0, %v367_v63  ;;  %v369_v3 = vadd.f32 %v368_v1, %v202_v61  ;;  %v286_v46 = vadd.f32 %v285_v31, %v194_v42  ;;  %v709_v63 = vld [vmem:[#allocation7 + $0x270] sm:$0xff]  ;;  %v631_v31 = vld [vmem:[#allocation7] sm:$0xff] }
 0x140   :  { %v372_v4 = vpop.f32.mrf.mxu1 }
 0x141   :  { %v389_v5 = vmul.f32 1.442695, %v383_v2  ;;  %v384_v6 = vsub.f32 0.0, %v369_v3  ;;  %v373_v7 = vadd.f32 %v372_v4, %v198_v60  ;;  %v289_v35 = vpop.f32.mrf.mxu0  ;;  %v724_v2 = vld [vmem:[#allocation7 + $0x2e8] sm:$0xff] }
 0x142   :  { %v374_v8 = vpop.f32.mrf.mxu1  ;;  %v290_v48 = vadd.f32 %v289_v35, %v190_v40  ;;  %v708_v4 = vld [vmem:[#allocation7 + $0x268] sm:$0xff]  ;;  %v714_v35 = vld [vmem:[#allocation7 + $0x298] sm:$0xff] }
 0x143   :  { %3074 = vpow2.f32 %v389_v5  ;;  %v391_v9 = vmul.f32 1.442695, %v384_v6  ;;  %v385_v10 = vsub.f32 0.0, %v373_v7  ;;  %v375_v11 = vadd.f32 %v374_v8, %v202_v61  ;;  %v291_v41 = vpop.f32.mrf.mxu0  ;;  %v723_v5 = vld [vmem:[#allocation7 + $0x2e0] sm:$0xff] }
 0x144   :  { %v378_v12 = vpop.f32.mrf.mxu1  ;;  %v292_v50 = vadd.f32 %v291_v41, %v194_v42  ;;  %v707_v8 = vld [vmem:[#allocation7 + $0x260] sm:$0xff]  ;;  %v696_v41 = vld [vmem:[#allocation7 + $0x208] sm:$0xff] }
 0x145   :  { %3076 = vpow2.f32 %v391_v9  ;;  %v393_v13 = vmul.f32 1.442695, %v385_v10  ;;  %v386_v14 = vsub.f32 0.0, %v375_v11  ;;  %v379_v15 = vadd.f32 %v378_v12, %v198_v60  ;;  %v295_v44 = vpop.f32.mrf.mxu0  ;;  %v722_v10 = vld [vmem:[#allocation7 + $0x2d8] sm:$0xff]  ;;  %v721_v12 = vld [vmem:[#allocation7 + $0x2d0] sm:$0xff] }
 0x146   :  { %v380_v16 = vpop.f32.mrf.mxu1  ;;  %v296_v62 = vadd.f32 %v295_v44, %v190_v40  ;;  %v706_v11 = vld [vmem:[#allocation7 + $0x258] sm:$0xff]  ;;  %v712_v40 = vld [vmem:[#allocation7 + $0x288] sm:$0xff] }
 0x147   :  { %3078 = vpow2.f32 %v393_v13  ;;  %v395_v17 = vmul.f32 1.442695, %v386_v14  ;;  %v387_v18 = vsub.f32 0.0, %v379_v15  ;;  %v381_v19 = vadd.f32 %v380_v16, %v202_v61  ;;  %v297_v53 = vpop.f32.mrf.mxu0  ;;  %v705_v13 = vld [vmem:[#allocation7 + $0x250] sm:$0xff]  ;;  %v720_v14 = vld [vmem:[#allocation7 + $0x2c8] sm:$0xff]  ;;  %v719_v16 = vld [vmem:[#allocation7 + $0x2c0] sm:$0xff] }
 0x148   :  { %v298_v1 = vadd.f32 %v297_v53, %v194_v42  ;;  %v704_v15 = vld [vmem:[#allocation7 + $0x248] sm:$0xff]  ;;  %v711_v42 = vld [vmem:[#allocation7 + $0x280] sm:$0xff] }
 0x149   :  { %3080 = vpow2.f32 %v395_v17  ;;  %v397_v20 = vmul.f32 1.442695, %v387_v18  ;;  %v388_v21 = vsub.f32 0.0, %v381_v19  ;;  %v703_v17 = vld [vmem:[#allocation7 + $0x240] sm:$0xff]  ;;  %v718_v18 = vld [vmem:[#allocation7 + $0x2b8] sm:$0xff] }
 0x14a   :  { %v634_v19 = vld [vmem:[#allocation7 + $0x18] sm:$0xff]  ;;  %v490_v44 = vld [vmem:[#allocation16 + $0x20] ss:$8 sm:$0x3] }
 0x14b   :  { %3082 = vpow2.f32 %v397_v20  ;;  %v399_v22 = vmul.f32 1.442695, %v388_v21  ;;  %v702_v20 = vld [vmem:[#allocation7 + $0x238] sm:$0xff]  ;;  %2736 = vmatpush3.msra.mxu1 %v634_v19  ;;  %v649_v21 = vld [vmem:[#allocation7 + $0x90] sm:$0xff] }
 0x14c   :  { %2737 = vmatprep.subr.mxu1 %v649_v21  ;;  %v690_v19 = vld [vmem:[#allocation7 + $0x1d8] sm:$0xff] }
 0x14d   :  { %3084 = vpow2.f32 %v399_v22  ;;  %v717_v22 = vld [vmem:[#allocation7 + $0x2b0] sm:$0xff] }
 0x150   :  { %v3075_v23 = vpop.eup %3074 }
 0x151   :  { %v401_v24 = vadd.f32 1.0, %v3075_v23  ;;  %v633_v23 = vld [vmem:[#allocation7 + $0x10] sm:$0xff] }
 0x152   :  { %v3077_v25 = vpop.eup %3076  ;;  %2738 = vmatpush3.msra.mxu1 %v633_v23  ;;  %v674_v23 = vld [vmem:[#allocation7 + $0x158] sm:$0xff] }
 0x153   :  { %v402_v27 = vadd.f32 1.0, %v3077_v25  ;;  %3086 = vrcp.f32 %v401_v24  ;;  %v701_v24 = vld [vmem:[#allocation7 + $0x230] sm:$0xff]  ;;  %v648_v25 = vld [vmem:[#allocation7 + $0x88] sm:$0xff] }
 0x154   :  { %v3079_v28 = vpop.eup %3078  ;;  %2739 = vmatprep.subr.mxu1 %v648_v25 }
 0x155   :  { %3088 = vrcp.f32 %v402_v27  ;;  %v403_v29 = vadd.f32 1.0, %v3079_v28  ;;  %v632_v27 = vld [vmem:[#allocation7 + $0x8] sm:$0xff] }
 0x156   :  { %v3081_v30 = vpop.eup %3080  ;;  %v700_v28 = vld [vmem:[#allocation7 + $0x228] sm:$0xff]  ;;  %2740 = vmatpush3.msra.mxu1 %v632_v27 }
 0x157   :  { %3090 = vrcp.f32 %v403_v29  ;;  %v404_v32 = vadd.f32 1.0, %v3081_v30  ;;  %v647_v29 = vld [vmem:[#allocation7 + $0x80] sm:$0xff] }
 0x158   :  { %v3083_v33 = vpop.eup %3082  ;;  %v715_v30 = vld [vmem:[#allocation7 + $0x2a0] sm:$0xff]  ;;  %2741 = vmatprep.subr.mxu1 %v647_v29  ;;  %v688_v29 = vld [vmem:[#allocation7 + $0x1c8] sm:$0xff] }
 0x159   :  { %3092 = vrcp.f32 %v404_v32  ;;  %v405_v36 = vadd.f32 1.0, %v3083_v33  ;;  %v699_v32 = vld [vmem:[#allocation7 + $0x220] sm:$0xff]  ;;  %2742 = vmatpush3.msra.mxu1 %v631_v31  ;;  %v694_v33 = vld [vmem:[#allocation7 + $0x1f8] sm:$0xff] }
 0x15a   :  { %v3085_v38 = vpop.eup %3084  ;;  %2752 = vmatprep.subr.mxu1 %v694_v33  ;;  %v687_v31 = vld [vmem:[#allocation7 + $0x1c0] sm:$0xff]  ;;  %v686_v33 = vld [vmem:[#allocation7 + $0x1b8] sm:$0xff] }
 0x15b   :  { %3094 = vrcp.f32 %v405_v36  ;;  %v406_v39 = vadd.f32 1.0, %v3085_v38  ;;  %v698_v36 = vld [vmem:[#allocation7 + $0x218] sm:$0xff]  ;;  %v713_v38 = vld [vmem:[#allocation7 + $0x290] sm:$0xff] }
 0x15d   :  { %3096 = vrcp.f32 %v406_v39  ;;  %v697_v39 = vld [vmem:[#allocation7 + $0x210] sm:$0xff] }
 0x160   :  { %v3087_v45 = vpop.eup %3086 }
 0x161   :  { %v419_v52 = vmul.f32 %v3087_v45, %v284_v43  ;;  %v695_v43 = vld [vmem:[#allocation7 + $0x200] sm:$0xff]  ;;  %v495_v45 = vrot.slane %v490_v44, %v3514_v34 }
 0x162   :  { %v3089_v47 = vpop.eup %3088 }
 0x163   :  { %v420_v49 = vmul.f32 %v3089_v47, %v286_v46  ;;  %v499_v46 = vrot.slane %v490_v44, %v3517_v37  ;;  %v666_v44 = vld [vmem:[#allocation7 + $0x118] sm:$0xff] }
 0x164   :  { %v3091_v51 = vpop.eup %3090 }
 0x165   :  { %566 = vmatprep.mubr.f32.mxu0 %v420_v49  ;;  %v421_v61 = vmul.f32 %v3091_v51, %v290_v48 }
 0x166   :  { %v3093_v60 = vpop.eup %3092  ;;  %567 = vmatmul.mubr.f32.vlgmr.msra.gmra.mxu0 %v419_v52 }
 0x167   :  { %v422_v58 = vmul.f32 %v3093_v60, %v292_v50  ;;  %2794 = vmatpush3.msra.mxu0 %v710_v54  ;;  %v678_v60 = vld [vmem:[#allocation7 + $0x178] sm:$0xff] }
 0x168   :  { %v3095_v3 = vpop.eup %3094  ;;  %2795 = vmatprep.subr.mxu0 %v725_v55 }
 0x169   :  { %572 = vmatprep.mubr.f32.mxu0 %v422_v58  ;;  %2796 = vmatpush3.msra.mxu0 %v709_v63  ;;  %v423_v7 = vmul.f32 %v3095_v3, %v296_v62  ;;  %v693_v63 = vld [vmem:[#allocation7 + $0x1f0] sm:$0xff] }
 0x16a   :  { %v3097_v6 = vpop.eup %3096  ;;  %573 = vmatmul.mubr.f32.gmra.mxu0 %v421_v61  ;;  %2797 = vmatprep.subr.mxu0 %v724_v2 }
 0x16b   :  { %v424_v9 = vmul.f32 %v3097_v6, %v298_v1  ;;  %2798 = vmatpush3.msra.mxu0 %v708_v4  ;;  %v677_v1 = vld [vmem:[#allocation7 + $0x170] sm:$0xff]  ;;  %v692_v4 = vld [vmem:[#allocation7 + $0x1e8] sm:$0xff] }
 0x16c   :  { %2799 = vmatprep.subr.mxu0 %v723_v5 }
 0x16d   :  { %578 = vmatprep.mubr.f32.mxu0 %v424_v9  ;;  %2800 = vmatpush3.msra.mxu0 %v707_v8 }
 0x16e   :  { %579 = vmatmul.mubr.f32.gmra.mxu0 %v423_v7  ;;  %2801 = vmatprep.subr.mxu0 %v722_v10  ;;  %v676_v7 = vld [vmem:[#allocation7 + $0x168] sm:$0xff] }
 0x16f   :  { %2802 = vmatpush3.msra.mxu0 %v706_v11 }
 0x170   :  { %2803 = vmatprep.subr.mxu0 %v721_v12  ;;  %v691_v12 = vld [vmem:[#allocation7 + $0x1e0] sm:$0xff] }
 0x171   :  { %2804 = vmatpush3.msra.mxu0 %v705_v13 }
 0x172   :  { %2805 = vmatprep.subr.mxu0 %v720_v14  ;;  %v675_v14 = vld [vmem:[#allocation7 + $0x160] sm:$0xff] }
 0x173   :  { %2806 = vmatpush3.msra.mxu0 %v704_v15 }
 0x174   :  { %2807 = vmatprep.subr.mxu0 %v719_v16 }
 0x175   :  { %2808 = vmatpush3.msra.mxu0 %v703_v17 }
 0x176   :  { %2809 = vmatprep.subr.mxu0 %v718_v18 }
 0x177   :  { %2810 = vmatpush3.msra.mxu0 %v702_v20 }
 0x178   :  { %2811 = vmatprep.subr.mxu0 %v717_v22 }
 0x179   :  { %2812 = vmatpush3.msra.mxu0 %v701_v24  ;;  %v689_v24 = vld [vmem:[#allocation7 + $0x1d0] sm:$0xff] }
 0x17a   :  { %2813 = vmatprep.subr.mxu0 %v716_v26  ;;  %v673_v26 = vld [vmem:[#allocation7 + $0x150] sm:$0xff] }
 0x17b   :  { %2814 = vmatpush3.msra.mxu0 %v700_v28 }
 0x17c   :  { %2815 = vmatprep.subr.mxu0 %v715_v30  ;;  %v672_v30 = vld [vmem:[#allocation7 + $0x148] sm:$0xff] }
 0x17d   :  { %2816 = vmatpush3.msra.mxu0 %v699_v32  ;;  %v671_v32 = vld [vmem:[#allocation7 + $0x140] sm:$0xff] }
 0x17e   :  { %2817 = vmatprep.subr.mxu0 %v714_v35  ;;  %v670_v35 = vld [vmem:[#allocation7 + $0x138] sm:$0xff] }
 0x17f   :  { %2818 = vmatpush3.msra.mxu0 %v698_v36  ;;  %v685_v36 = vld [vmem:[#allocation7 + $0x1b0] sm:$0xff] }
 0x180   :  { %2819 = vmatprep.subr.mxu0 %v713_v38  ;;  %v669_v38 = vld [vmem:[#allocation7 + $0x130] sm:$0xff] }
 0x181   :  { %2820 = vmatpush3.msra.mxu0 %v697_v39  ;;  %v684_v39 = vld [vmem:[#allocation7 + $0x1a8] sm:$0xff] }
 0x182   :  { %2821 = vmatprep.subr.mxu0 %v712_v40  ;;  %v668_v40 = vld [vmem:[#allocation7 + $0x128] sm:$0xff] }
 0x183   :  { %2822 = vmatpush3.msra.mxu0 %v696_v41  ;;  %v683_v41 = vld [vmem:[#allocation7 + $0x1a0] sm:$0xff] }
 0x184   :  { %2823 = vmatprep.subr.mxu0 %v711_v42  ;;  %v667_v42 = vld [vmem:[#allocation7 + $0x120] sm:$0xff] }
 0x185   :  { %2824 = vmatpush3.msra.mxu0 %v695_v43  ;;  %v682_v43 = vld [vmem:[#allocation7 + $0x198] sm:$0xff] }
 0x226   :  { %v568_v47 = vpop.f32.mrf.mxu0 }
 0x227   :  { %v569_v48 = vadd.f32 %v568_v47, %v495_v45  ;;  %v680_v47 = vld [vmem:[#allocation7 + $0x188] sm:$0xff] }
 0x228   :  { %v570_v49 = vpop.f32.mrf.mxu0 }
 0x229   :  { %v571_v50 = vadd.f32 %v570_v49, %v499_v46  ;;  %v3523_v54 = vmax.f32 %v569_v48, 0.0  ;;  %v664_v48 = vld [vmem:[#allocation7 + $0x108] sm:$0xff] }
 0x22a   :  { %v574_v51 = vpop.f32.mrf.mxu0 }
 0x22b   :  { %v586_v52 = vmax.f32 %v571_v50, 0.0  ;;  %v575_v53 = vadd.f32 %v574_v51, %v495_v45  ;;  %v615_v13 = vrot.slane %v3523_v54, 2  ;;  %v679_v50 = vld [vmem:[#allocation7 + $0x180] sm:$0xff] }
 0x22c   :  { %v576_v55 = vpop.f32.mrf.mxu0 }
 0x22d   :  { %v3525_v61 = vmax.f32 %v575_v53, 0.0  ;;  %v577_v62 = vadd.f32 %v576_v55, %v499_v46  ;;  %792 = vmatprep.mubr.f32.mxu1 %v586_v52  ;;  %v618_v5 = vrot.slane %v586_v52, 2  ;;  %v601_v20 = vrot.slane %v586_v52, 1  ;;  %v663_v52 = vld [vmem:[#allocation7 + $0x100] sm:$0xff] }
 0x22e   :  { %v580_v58 = vpop.f32.mrf.mxu0  ;;  %793 = vmatmul.mubr.f32.vlgmr.msra.gmra.mxu1 %v3523_v54  ;;  %v598_v53 = vrot.slane %v3523_v54, 1 }
 0x22f   :  { %v3528_v2 = vmax.f32 %v577_v62, 0.0  ;;  %v581_v3 = vadd.f32 %v580_v58, %v495_v45  ;;  %2753 = vmatpush3.msra.mxu1 %v678_v60  ;;  %v616_v8 = vrot.slane %v3525_v61, 2  ;;  %v681_v45 = vld [vmem:[#allocation7 + $0x190] sm:$0xff]  ;;  %v599_v49 = vrot.slane %v3525_v61, 1 }
 0x230   :  { %2754 = vmatprep.subr.mxu1 %v693_v63  ;;  %v582_v6 = vpop.f32.mrf.mxu0 }
 0x231   :  { %v619_v9 = vrot.slane %v3528_v2, 2  ;;  %v3532_v10 = vmax.f32 %v581_v3, 0.0  ;;  %v583_v11 = vadd.f32 %v582_v6, %v499_v46  ;;  %2755 = vmatpush3.msra.mxu1 %v677_v1  ;;  %797 = vmatprep.mubr.f32.mxu1 %v3528_v2  ;;  %v602_v15 = vrot.slane %v3528_v2, 1  ;;  %v665_v46 = vld [vmem:[#allocation7 + $0x110] sm:$0xff] }
 0x232   :  { %2756 = vmatprep.subr.mxu1 %v692_v4  ;;  %798 = vmatmul.mubr.f32.gmra.mxu1 %v3525_v61  ;;  %v617_v22 = vsel %vm614_vm1, %v615_v13, %v616_v8  ;;  %v600_v60 = vsel %vm597_vm2, %v598_v53, %v599_v49  ;;  %v1070_v53 = vld [vmem:[#allocation8 + $0x128] sm:$0xff] }
 0x233   :  { %v621_v16 = vrot.slane %v3532_v10, 2  ;;  %v3539_v17 = vmax.f32 %v583_v11, 0.0  ;;  %2757 = vmatpush3.msra.mxu1 %v676_v7  ;;  %v620_v18 = vsel %vm614_vm1, %v618_v5, %v619_v9  ;;  %v603_v25 = vsel %vm597_vm2, %v601_v20, %v602_v15 }
 0x234   :  { %2758 = vmatprep.subr.mxu1 %v691_v12  ;;  %952 = vmatprep.mubr.f32.mxu0 %v620_v18  ;;  %v604_v55 = vrot.slane %v3532_v10, 1 }
 0x235   :  { %v623_v21 = vrot.slane %v3539_v17, 2  ;;  %2759 = vmatpush3.msra.mxu1 %v675_v14  ;;  %802 = vmatprep.mubr.f32.mxu1 %v3539_v17  ;;  %v622_v28 = vsel %vm614_vm1, %v616_v8, %v621_v16  ;;  %v606_v51 = vrot.slane %v3539_v17, 1 }
 0x236   :  { %2760 = vmatprep.subr.mxu1 %v690_v19  ;;  %953 = vmatmul.mubr.f32.vlgmr.msra.gmra.mxu0 %v617_v22  ;;  %v605_v62 = vsel %vm597_vm2, %v599_v49, %v604_v55  ;;  %v1078_v49 = vld [vmem:[#allocation8 + $0x168] sm:$0xff] }
 0x237   :  { %803 = vmatmul.mubr.f32.gmra.mxu1 %v3532_v10  ;;  %v624_v27 = vsel %vm614_vm1, %v619_v9, %v623_v21  ;;  %v607_v61 = vsel %vm597_vm2, %v602_v15, %v606_v51  ;;  %v727_v9 = vld [vmem:[#allocation16 + $0x40] ss:$0 sm:$0xff] }
 0x238   :  { %2761 = vmatpush3.msra.mxu1 %v674_v23  ;;  %872 = vmatprep.mubr.f32.mxu1 %v603_v25 }
 0x239   :  { %2762 = vmatprep.subr.mxu1 %v689_v24  ;;  %957 = vmatprep.mubr.f32.mxu0 %v624_v27 }
 0x23a   :  { %2763 = vmatpush3.msra.mxu1 %v673_v26  ;;  %958 = vmatmul.mubr.f32.gmra.mxu0 %v622_v28 }
 0x23b   :  { %2764 = vmatprep.subr.mxu1 %v688_v29  ;;  %962 = vmatprep.mubr.f32.mxu0 %v623_v21 }
 0x23c   :  { %2765 = vmatpush3.msra.mxu1 %v672_v30 }
 0x23d   :  { %2766 = vmatprep.subr.mxu1 %v687_v31 }
 0x23e   :  { %2767 = vmatpush3.msra.mxu1 %v671_v32  ;;  %963 = vmatmul.mubr.f32.gmra.mxu0 %v621_v16 }
 0x23f   :  { %2768 = vmatprep.subr.mxu1 %v686_v33  ;;  %1389 = vmatprep.mubr.f32.mxu0 %v3371_v0 }
 0x240   :  { %2769 = vmatpush3.msra.mxu1 %v670_v35 }
 0x241   :  { %2770 = vmatprep.subr.mxu1 %v685_v36 }
 0x242   :  { %2771 = vmatpush3.msra.mxu1 %v669_v38 }
 0x243   :  { %2772 = vmatprep.subr.mxu1 %v684_v39 }
 0x244   :  { %2773 = vmatpush3.msra.mxu1 %v668_v40 }
 0x245   :  { %2774 = vmatprep.subr.mxu1 %v683_v41  ;;  %v1094_v41 = vld [vmem:[#allocation8 + $0x1e8] sm:$0xff] }
 0x246   :  { %2775 = vmatpush3.msra.mxu1 %v667_v42  ;;  %v1093_v42 = vld [vmem:[#allocation8 + $0x1e0] sm:$0xff] }
 0x247   :  { %2776 = vmatprep.subr.mxu1 %v682_v43  ;;  %v1090_v43 = vld [vmem:[#allocation8 + $0x1c8] sm:$0xff] }
 0x248   :  { %2777 = vmatpush3.msra.mxu1 %v666_v44  ;;  %v1089_v44 = vld [vmem:[#allocation8 + $0x1c0] sm:$0xff] }
 0x249   :  { %2778 = vmatprep.subr.mxu1 %v681_v45  ;;  %v1086_v45 = vld [vmem:[#allocation8 + $0x1a8] sm:$0xff] }
 0x24a   :  { %2779 = vmatpush3.msra.mxu1 %v665_v46  ;;  %v1085_v46 = vld [vmem:[#allocation8 + $0x1a0] sm:$0xff] }
 0x24b   :  { %2780 = vmatprep.subr.mxu1 %v680_v47  ;;  %v1082_v47 = vld [vmem:[#allocation8 + $0x188] sm:$0xff] }
 0x24c   :  { %2781 = vmatpush3.msra.mxu1 %v664_v48  ;;  %v1081_v48 = vld [vmem:[#allocation8 + $0x180] sm:$0xff] }
 0x24d   :  { %2782 = vmatprep.subr.mxu1 %v679_v50  ;;  %v1077_v50 = vld [vmem:[#allocation8 + $0x160] sm:$0xff] }
 0x24e   :  { %2783 = vmatpush3.msra.mxu1 %v663_v52  ;;  %v1073_v52 = vld [vmem:[#allocation8 + $0x140] sm:$0xff] }
 0x24f   :  { %873 = vmatmul.mubr.f32.vlgmr.msra.gmra.mxu1 %v600_v60  ;;  %1248 = vmatprep.subr.mxu1 %v1094_v41  ;;  %v1069_v60 = vld [vmem:[#allocation8 + $0x120] sm:$0xff]  ;;  %v1146_v41 = vld [vmem:[#allocation8 + $0x388] sm:$0xff] }
 0x250   :  { %877 = vmatprep.mubr.f32.mxu1 %v607_v61  ;;  %1249 = vmatpush1.msra.mxu1 %v1093_v42  ;;  %v1221_v61 = vld [vmem:[#allocation8 + $0x5e0] sm:$0xff] }
 0x251   :  { %1250 = vmatprep.subr.mxu1 %v1090_v43  ;;  %v1209_v42 = vld [vmem:[#allocation8 + $0x580] sm:$0xff] }
 0x252   :  { %1251 = vmatpush1.msra.mxu1 %v1089_v44  ;;  %v1145_v43 = vld [vmem:[#allocation8 + $0x380] sm:$0xff]  ;;  %v1206_v44 = vld [vmem:[#allocation8 + $0x568] sm:$0xff] }
 0x253   :  { %878 = vmatmul.mubr.f32.gmra.mxu1 %v605_v62  ;;  %1252 = vmatprep.subr.mxu1 %v1086_v45  ;;  %v1066_v62 = vld [vmem:[#allocation8 + $0x108] sm:$0xff] }
 0x254   :  { %882 = vmatprep.mubr.f32.mxu1 %v606_v51  ;;  %1253 = vmatpush1.msra.mxu1 %v1085_v46  ;;  %v1074_v51 = vld [vmem:[#allocation8 + $0x148] sm:$0xff]  ;;  %v1205_v46 = vld [vmem:[#allocation8 + $0x560] sm:$0xff] }
 0x255   :  { %1254 = vmatprep.subr.mxu1 %v1082_v47  ;;  %v1142_v45 = vld [vmem:[#allocation8 + $0x368] sm:$0xff]  ;;  %v1141_v47 = vld [vmem:[#allocation8 + $0x360] sm:$0xff] }
 0x256   :  { %1255 = vmatpush1.msra.mxu1 %v1081_v48  ;;  %v1202_v48 = vld [vmem:[#allocation8 + $0x548] sm:$0xff] }
 0x257   :  { %883 = vmatmul.mubr.f32.gmra.mxu1 %v604_v55  ;;  %1256 = vmatprep.subr.mxu1 %v1078_v49  ;;  %v1222_v55 = vld [vmem:[#allocation8 + $0x5e8] sm:$0xff] }
 0x258   :  { %1257 = vmatpush1.msra.mxu1 %v1077_v50  ;;  %1325 = vmatprep.subr.mxu0 %v1222_v55  ;;  %v1138_v49 = vld [vmem:[#allocation8 + $0x348] sm:$0xff]  ;;  %v1201_v50 = vld [vmem:[#allocation8 + $0x540] sm:$0xff] }
 0x259   :  { %1258 = vmatprep.subr.mxu1 %v1074_v51  ;;  %1326 = vmatpush1.msra.mxu0 %v1221_v61  ;;  %v1137_v51 = vld [vmem:[#allocation8 + $0x340] sm:$0xff]  ;;  %v1194_v61 = vld [vmem:[#allocation8 + $0x508] sm:$0xff] }
 0x25a   :  { %1259 = vmatpush1.msra.mxu1 %v1073_v52  ;;  %v1198_v52 = vld [vmem:[#allocation8 + $0x528] sm:$0xff]  ;;  %v1197_v55 = vld [vmem:[#allocation8 + $0x520] sm:$0xff] }
 0x25b   :  { %1260 = vmatprep.subr.mxu1 %v1070_v53  ;;  %v1134_v53 = vld [vmem:[#allocation8 + $0x328] sm:$0xff] }
 0x25c   :  { %1261 = vmatpush1.msra.mxu1 %v1069_v60  ;;  %v1133_v60 = vld [vmem:[#allocation8 + $0x320] sm:$0xff] }
 0x25d   :  { %1262 = vmatprep.subr.mxu1 %v1066_v62  ;;  %v1130_v62 = vld [vmem:[#allocation8 + $0x308] sm:$0xff] }
 0x2ee   :  { %v2743_v63 = vpop.f32.mrf.mxu1 }
 0x2f0   :  { %v2744_v54 = vpop.f32.mrf.mxu1 }
 0x2f1   :  { %v2745_v8 = vadd.f32 %v2744_v54, %v2743_v63  ;;  %v1065_v63 = vld [vmem:[#allocation8 + $0x100] sm:$0xff]  ;;  %v1062_v54 = vld [vmem:[#allocation8 + $0xe8] sm:$0xff] }
 0x2f2   :  { %v2746_v58 = vpop.f32.mrf.mxu1  ;;  %1263 = vmatpush1.msra.mxu1 %v1065_v63  ;;  %v1193_v63 = vld [vmem:[#allocation8 + $0x500] sm:$0xff] }
 0x2f3   :  { %v795_v12 = vadd.f32 %v2745_v8, %v727_v9  ;;  %1264 = vmatprep.subr.mxu1 %v1062_v54  ;;  %v1046_v8 = vld [vmem:[#allocation8 + $0x68] sm:$0xff]  ;;  %v1129_v54 = vld [vmem:[#allocation8 + $0x300] sm:$0xff] }
 0x2f4   :  { %v2747_v1 = vpop.f32.mrf.mxu1 }
 0x2f5   :  { %v2748_v13 = vadd.f32 %v2747_v1, %v2746_v58  ;;  %v1061_v58 = vld [vmem:[#allocation8 + $0xe0] sm:$0xff]  ;;  %v1058_v1 = vld [vmem:[#allocation8 + $0xc8] sm:$0xff] }
 0x2f6   :  { %v2825_v3 = vpop.f32.mrf.mxu0  ;;  %1265 = vmatpush1.msra.mxu1 %v1061_v58  ;;  %v1190_v58 = vld [vmem:[#allocation8 + $0x4e8] sm:$0xff] }
 0x2f7   :  { %v2749_v4 = vpop.f32.mrf.mxu1  ;;  %v800_v20 = vadd.f32 %v2748_v13, %v727_v9  ;;  %1266 = vmatprep.subr.mxu1 %v1058_v1  ;;  %v1034_v13 = vld [vmem:[#allocation8 + $0x8] sm:$0xff] }
 0x2f8   :  { %v2826_v5 = vpop.f32.mrf.mxu0  ;;  %v1126_v1 = vld [vmem:[#allocation8 + $0x2e8] sm:$0xff] }
 0x2f9   :  { %v2750_v7 = vpop.f32.mrf.mxu1  ;;  %v2827_v16 = vadd.f32 %v2826_v5, %v2825_v3  ;;  %v1057_v3 = vld [vmem:[#allocation8 + $0xc0] sm:$0xff] }
 0x2fa   :  { %v2828_v6 = vpop.f32.mrf.mxu0  ;;  %v2751_v21 = vadd.f32 %v2750_v7, %v2749_v4  ;;  %v1054_v4 = vld [vmem:[#allocation8 + $0xa8] sm:$0xff]  ;;  %v1053_v5 = vld [vmem:[#allocation8 + $0xa0] sm:$0xff]  ;;  %1267 = vmatpush1.msra.mxu1 %v1057_v3 }
 0x2fb   :  { %1268 = vmatprep.subr.mxu1 %v1054_v4  ;;  %v1049_v7 = vld [vmem:[#allocation8 + $0x80] sm:$0xff] }
 0x2fc   :  { %v2829_v10 = vpop.f32.mrf.mxu0  ;;  %v805_v30 = vadd.f32 %v2751_v21, %v727_v9  ;;  %1269 = vmatpush1.msra.mxu1 %v1053_v5  ;;  %v1045_v9 = vld [vmem:[#allocation8 + $0x60] sm:$0xff]  ;;  %v1186_v5 = vld [vmem:[#allocation8 + $0x4c8] sm:$0xff] }
 0x2fd   :  { %v2830_v25 = vadd.f32 %v2829_v10, %v2828_v6  ;;  %v1050_v6 = vld [vmem:[#allocation8 + $0x88] sm:$0xff]  ;;  %v1041_v10 = vld [vmem:[#allocation8 + $0x40] sm:$0xff] }
 0x2fe   :  { %v2831_v18 = vpop.f32.mrf.mxu0  ;;  %1270 = vmatprep.subr.mxu1 %v1050_v6  ;;  %v1189_v3 = vld [vmem:[#allocation8 + $0x4e0] sm:$0xff]  ;;  %v1122_v6 = vld [vmem:[#allocation8 + $0x2c8] sm:$0xff] }
 0x2ff   :  { %1271 = vmatpush1.msra.mxu1 %v1049_v7  ;;  %v1125_v4 = vld [vmem:[#allocation8 + $0x2e0] sm:$0xff] }
 0x300   :  { %v2832_v28 = vpop.f32.mrf.mxu0  ;;  %1272 = vmatprep.subr.mxu1 %v1046_v8  ;;  %v1185_v7 = vld [vmem:[#allocation8 + $0x4c0] sm:$0xff] }
 0x301   :  { %v2833_v33 = vadd.f32 %v2832_v28, %v2831_v18  ;;  %1273 = vmatpush1.msra.mxu1 %v1045_v9  ;;  %v1121_v8 = vld [vmem:[#allocation8 + $0x2c0] sm:$0xff]  ;;  %v1182_v9 = vld [vmem:[#allocation8 + $0x4a8] sm:$0xff] }
 0x30f   :  { %v2784_v2 = vpop.f32.mrf.mxu1 }
 0x311   :  { %v2785_v11 = vpop.f32.mrf.mxu1 }
 0x312   :  { %v2786_v14 = vadd.f32 %v2785_v11, %v2784_v2  ;;  %v1042_v2 = vld [vmem:[#allocation8 + $0x48] sm:$0xff] }
 0x313   :  { %v2787_v15 = vpop.f32.mrf.mxu1  ;;  %v1038_v11 = vld [vmem:[#allocation8 + $0x28] sm:$0xff]  ;;  %1274 = vmatprep.subr.mxu1 %v1042_v2 }
 0x314   :  { %v875_v17 = vadd.f32 %v2786_v14, %v795_v12  ;;  %v1037_v12 = vld [vmem:[#allocation8 + $0x20] sm:$0xff]  ;;  %1275 = vmatpush1.msra.mxu1 %v1041_v10  ;;  %v1118_v2 = vld [vmem:[#allocation8 + $0x2a8] sm:$0xff] }
 0x315   :  { %v2788_v19 = vpop.f32.mrf.mxu1  ;;  %1276 = vmatprep.subr.mxu1 %v1038_v11  ;;  %v1033_v14 = vld [vmem:[#allocation8] sm:$0xff] }
 0x316   :  { %v2789_v22 = vadd.f32 %v2788_v19, %v2787_v15  ;;  %v3561_v23 = vadd.f32 %v2827_v16, %v875_v17  ;;  %1277 = vmatpush1.msra.mxu1 %v1037_v12  ;;  %v1158_v15 = vld [vmem:[#allocation8 + $0x3e8] sm:$0xff]  ;;  %v1181_v10 = vld [vmem:[#allocation8 + $0x4a0] sm:$0xff] }
 0x317   :  { %v2790_v24 = vpop.f32.mrf.mxu1  ;;  %1278 = vmatprep.subr.mxu1 %v1034_v13  ;;  %v1117_v11 = vld [vmem:[#allocation8 + $0x2a0] sm:$0xff]  ;;  %v1178_v12 = vld [vmem:[#allocation8 + $0x488] sm:$0xff] }
 0x318   :  { %v880_v26 = vadd.f32 %v2789_v22, %v800_v20  ;;  %v968_v27 = vmax.f32 %v3561_v23, 0.0  ;;  %1279 = vmatpush1.msra.mxu1 %v1033_v14  ;;  %v1114_v13 = vld [vmem:[#allocation8 + $0x288] sm:$0xff]  ;;  %v1177_v14 = vld [vmem:[#allocation8 + $0x480] sm:$0xff] }
 0x319   :  { %v2791_v29 = vpop.f32.mrf.mxu1  ;;  %1280 = vmatprep.subr.mxu1 %v1158_v15  ;;  %v1113_v15 = vld [vmem:[#allocation8 + $0x280] sm:$0xff] }
 0x31a   :  { %v2792_v31 = vadd.f32 %v2791_v29, %v2790_v24  ;;  %973 = vadd.xlane.f32.xlu0 %v968_v27  ;;  %v3566_v32 = vadd.f32 %v2830_v25, %v880_v26  ;;  %v1157_v29 = vld [vmem:[#allocation8 + $0x3e0] sm:$0xff] }
 0x31b   :  { %1281 = vmatpush2.msra.mxu1 %v1157_v29  ;;  %v1165_v29 = vld [vmem:[#allocation8 + $0x420] sm:$0xff] }
 0x31c   :  { %v885_v35 = vadd.f32 %v2792_v31, %v805_v30  ;;  %v969_v36 = vmax.f32 %v3566_v32, 0.0  ;;  %v1218_v30 = vld [vmem:[#allocation8 + $0x5c8] sm:$0xff]  ;;  %v1217_v32 = vld [vmem:[#allocation8 + $0x5c0] sm:$0xff] }
 0x31d   :  { %v1154_v31 = vld [vmem:[#allocation8 + $0x3c8] sm:$0xff]  ;;  %1327 = vmatprep.subr.mxu0 %v1218_v30  ;;  %v1101_v30 = vld [vmem:[#allocation8 + $0x220] sm:$0xff] }
 0x31e   :  { %975 = vadd.xlane.f32.xlu0 %v969_v36  ;;  %v3571_v38 = vadd.f32 %v2833_v33, %v885_v35  ;;  %1282 = vmatprep.subr.mxu1 %v1154_v31  ;;  %v1153_v33 = vld [vmem:[#allocation8 + $0x3c0] sm:$0xff]  ;;  %v1214_v35 = vld [vmem:[#allocation8 + $0x5a8] sm:$0xff] }
 0x31f   :  { %1328 = vmatpush1.msra.mxu0 %v1217_v32  ;;  %1283 = vmatpush2.msra.mxu1 %v1153_v33  ;;  %v1162_v31 = vld [vmem:[#allocation8 + $0x408] sm:$0xff]  ;;  %v1161_v33 = vld [vmem:[#allocation8 + $0x400] sm:$0xff] }
 0x320   :  { %v970_v39 = vmax.f32 %v3571_v38, 0.0  ;;  %v1213_v38 = vld [vmem:[#allocation8 + $0x5a0] sm:$0xff]  ;;  %1329 = vmatprep.subr.mxu0 %v1214_v35  ;;  %v1098_v32 = vld [vmem:[#allocation8 + $0x208] sm:$0xff] }
 0x321   :  { %1330 = vmatpush1.msra.mxu0 %v1213_v38  ;;  %v1097_v35 = vld [vmem:[#allocation8 + $0x200] sm:$0xff]  ;;  %v1224_v38 = vld [vmem:[#allocation8 + $0x5f8] sm:$0xff] }
 0x322   :  { %v978_v40 = vsel %vm977_vm3, %v970_v39, 0.0 }
 0x323   :  { %979 = vadd.xlane.f32.xlu1 %v978_v40  ;;  %v1210_v40 = vld [vmem:[#allocation8 + $0x588] sm:$0xff] }
 0x324   :  { %1331 = vmatprep.subr.mxu0 %v1210_v40 }
 0x325   :  { %1332 = vmatpush1.msra.mxu0 %v1209_v42 }
 0x326   :  { %1333 = vmatprep.subr.mxu0 %v1206_v44 }
 0x327   :  { %1334 = vmatpush1.msra.mxu0 %v1205_v46 }
 0x328   :  { %1335 = vmatprep.subr.mxu0 %v1202_v48 }
 0x329   :  { %1336 = vmatpush1.msra.mxu0 %v1201_v50 }
 0x32a   :  { %1337 = vmatprep.subr.mxu0 %v1198_v52 }
 0x32b   :  { %1338 = vmatpush1.msra.mxu0 %v1197_v55 }
 0x32c   :  { %1339 = vmatprep.subr.mxu0 %v1194_v61 }
 0x32d   :  { %1340 = vmatpush1.msra.mxu0 %v1193_v63 }
 0x32e   :  { %1341 = vmatprep.subr.mxu0 %v1190_v58 }
 0x32f   :  { %1342 = vmatpush1.msra.mxu0 %v1189_v3 }
 0x330   :  { %1343 = vmatprep.subr.mxu0 %v1186_v5 }
 0x331   :  { %1344 = vmatpush1.msra.mxu0 %v1185_v7  ;;  %v1223_v7 = vld [vmem:[#allocation8 + $0x5f0] sm:$0xff] }
 0x332   :  { %1345 = vmatprep.subr.mxu0 %v1182_v9  ;;  %v1091_v9 = vld [vmem:[#allocation8 + $0x1d0] sm:$0xff] }
 0x333   :  { %1346 = vmatpush1.msra.mxu0 %v1181_v10  ;;  %v1088_v10 = vld [vmem:[#allocation8 + $0x1b8] sm:$0xff] }
 0x334   :  { %1347 = vmatprep.subr.mxu0 %v1178_v12  ;;  %v1087_v12 = vld [vmem:[#allocation8 + $0x1b0] sm:$0xff] }
 0x335   :  { %1348 = vmatpush1.msra.mxu0 %v1177_v14  ;;  %v1084_v14 = vld [vmem:[#allocation8 + $0x198] sm:$0xff] }
 0x3a3   :  { %v974_v16 = vpop.xlane.xlu0 %973 }
 0x3a4   :  { %v982_v17 = vmul.f32 0.0078125, %v974_v16  ;;  %v1174_v16 = vld [vmem:[#allocation8 + $0x468] sm:$0xff] }
 0x3a5   :  { %1349 = vmatprep.subr.mxu0 %v1174_v16 }
 0x3a6   :  { %v3579_v18 = vsub.f32 %v968_v27, %v982_v17  ;;  %v1110_v17 = vld [vmem:[#allocation8 + $0x268] sm:$0xff] }
 0x3a7   :  { %v976_v19 = vpop.xlane.xlu0 %975 }
 0x3a8   :  { %v983_v20 = vmul.f32 0.0078125, %v976_v19  ;;  %v988_v21 = vmul.f32 %v3579_v18, %v3579_v18  ;;  %v1173_v19 = vld [vmem:[#allocation8 + $0x460] sm:$0xff] }
 0x3a9   :  { %1350 = vmatpush1.msra.mxu0 %v1173_v19 }
 0x3aa   :  { %v3585_v22 = vsub.f32 %v969_v36, %v983_v20  ;;  %991 = vadd.xlane.f32.xlu1 %v988_v21  ;;  %v1150_v36 = vld [vmem:[#allocation8 + $0x3a8] sm:$0xff]  ;;  %v1109_v20 = vld [vmem:[#allocation8 + $0x260] sm:$0xff] }
 0x3ab   :  { %1284 = vmatprep.subr.mxu1 %v1150_v36  ;;  %v1170_v21 = vld [vmem:[#allocation8 + $0x448] sm:$0xff]  ;;  %v1096_v36 = vld [vmem:[#allocation8 + $0x1f8] sm:$0xff] }
 0x3ac   :  { %v980_v24 = vpop.xlane.xlu1 %979  ;;  %v989_v25 = vmul.f32 %v3585_v22, %v3585_v22  ;;  %1351 = vmatprep.subr.mxu0 %v1170_v21  ;;  %v1212_v21 = vld [vmem:[#allocation8 + $0x598] sm:$0xff] }
 0x3ad   :  { %v984_v26 = vmul.f32 0.0078125, %v980_v24  ;;  %v1106_v24 = vld [vmem:[#allocation8 + $0x248] sm:$0xff] }
 0x3ae   :  { %993 = vadd.xlane.f32.xlu0 %v989_v25  ;;  %v1169_v25 = vld [vmem:[#allocation8 + $0x440] sm:$0xff] }
 0x3af   :  { %v3591_v23 = vsub.f32 %v970_v39, %v984_v26  ;;  %v1149_v39 = vld [vmem:[#allocation8 + $0x3a0] sm:$0xff]  ;;  %1352 = vmatpush1.msra.mxu0 %v1169_v25  ;;  %v1080_v25 = vld [vmem:[#allocation8 + $0x178] sm:$0xff] }
 0x3b0   :  { %1285 = vmatpush2.msra.mxu1 %v1149_v39  ;;  %v1105_v26 = vld [vmem:[#allocation8 + $0x240] sm:$0xff] }
 0x3b1   :  { %v990_v27 = vmul.f32 %v3591_v23, %v3591_v23  ;;  %1286 = vmatprep.subr.mxu1 %v1146_v41 }
 0x3b2   :  { %1287 = vmatpush2.msra.mxu1 %v1145_v43 }
 0x3b3   :  { %v995_v28 = vsel %vm977_vm3, %v990_v27, 0.0  ;;  %1288 = vmatprep.subr.mxu1 %v1142_v45  ;;  %v1166_v27 = vld [vmem:[#allocation8 + $0x428] sm:$0xff] }
 0x3b4   :  { %996 = vadd.xlane.f32.xlu1 %v995_v28  ;;  %1289 = vmatpush2.msra.mxu1 %v1141_v47  ;;  %v1102_v28 = vld [vmem:[#allocation8 + $0x228] sm:$0xff] }
 0x3b5   :  { %1290 = vmatprep.subr.mxu1 %v1138_v49  ;;  %1353 = vmatprep.subr.mxu0 %v1166_v27  ;;  %v971_v49 = vld [vmem:[#allocation16 + $0x60] ss:$0 sm:$0xff]  ;;  %v1079_v27 = vld [vmem:[#allocation8 + $0x170] sm:$0xff] }
 0x3b6   :  { %1291 = vmatpush2.msra.mxu1 %v1137_v51  ;;  %1354 = vmatpush1.msra.mxu0 %v1165_v29  ;;  %v972_v51 = vld [vmem:[#allocation16 + $0x80] ss:$0 sm:$0xff]  ;;  %v1076_v29 = vld [vmem:[#allocation8 + $0x158] sm:$0xff] }
 0x3b7   :  { %1292 = vmatprep.subr.mxu1 %v1134_v53  ;;  %1355 = vmatprep.subr.mxu0 %v1162_v31  ;;  %v1075_v31 = vld [vmem:[#allocation8 + $0x150] sm:$0xff] }
 0x3b8   :  { %1293 = vmatpush2.msra.mxu1 %v1133_v60  ;;  %1356 = vmatpush1.msra.mxu0 %v1161_v33  ;;  %v1072_v33 = vld [vmem:[#allocation8 + $0x138] sm:$0xff] }
 0x3b9   :  { %1294 = vmatprep.subr.mxu1 %v1130_v62  ;;  %1402 = vmatprep.subr.mxu0 %v1096_v36  ;;  %v1071_v36 = vld [vmem:[#allocation8 + $0x130] sm:$0xff] }
 0x3ba   :  { %1295 = vmatpush2.msra.mxu1 %v1129_v54 }
 0x3bb   :  { %1296 = vmatprep.subr.mxu1 %v1126_v1 }
 0x3bc   :  { %1297 = vmatpush2.msra.mxu1 %v1125_v4  ;;  %v1095_v4 = vld [vmem:[#allocation8 + $0x1f0] sm:$0xff] }
 0x3bd   :  { %1298 = vmatprep.subr.mxu1 %v1122_v6  ;;  %v1092_v6 = vld [vmem:[#allocation8 + $0x1d8] sm:$0xff] }
 0x3be   :  { %1299 = vmatpush2.msra.mxu1 %v1121_v8 }
 0x3bf   :  { %1300 = vmatprep.subr.mxu1 %v1118_v2  ;;  %v1220_v2 = vld [vmem:[#allocation8 + $0x5d8] sm:$0xff] }
 0x3c0   :  { %1301 = vmatpush2.msra.mxu1 %v1117_v11  ;;  %v1219_v11 = vld [vmem:[#allocation8 + $0x5d0] sm:$0xff] }
 0x3c1   :  { %1302 = vmatprep.subr.mxu1 %v1114_v13  ;;  %v1216_v13 = vld [vmem:[#allocation8 + $0x5b8] sm:$0xff] }
 0x3c2   :  { %1303 = vmatpush2.msra.mxu1 %v1113_v15 }
 0x3c3   :  { %1304 = vmatprep.subr.mxu1 %v1110_v17  ;;  %v1215_v17 = vld [vmem:[#allocation8 + $0x5b0] sm:$0xff] }
 0x3c4   :  { %1305 = vmatpush2.msra.mxu1 %v1109_v20 }
 0x3c5   :  { %1306 = vmatprep.subr.mxu1 %v1106_v24  ;;  %v1083_v24 = vld [vmem:[#allocation8 + $0x190] sm:$0xff] }
 0x3c6   :  { %1307 = vmatpush2.msra.mxu1 %v1105_v26  ;;  %v1211_v26 = vld [vmem:[#allocation8 + $0x590] sm:$0xff] }
 0x3c7   :  { %1308 = vmatprep.subr.mxu1 %v1102_v28  ;;  %v1208_v28 = vld [vmem:[#allocation8 + $0x578] sm:$0xff] }
 0x3c8   :  { %1309 = vmatpush2.msra.mxu1 %v1101_v30  ;;  %v1207_v30 = vld [vmem:[#allocation8 + $0x570] sm:$0xff] }
 0x3c9   :  { %1310 = vmatprep.subr.mxu1 %v1098_v32  ;;  %v1204_v32 = vld [vmem:[#allocation8 + $0x558] sm:$0xff] }
 0x3ca   :  { %1311 = vmatpush2.msra.mxu1 %v1097_v35  ;;  %v1203_v35 = vld [vmem:[#allocation8 + $0x550] sm:$0xff] }
 0x3cb   :  { %1479 = vmatprep.subr.mxu1 %v1224_v38  ;;  %v1200_v38 = vld [vmem:[#allocation8 + $0x538] sm:$0xff] }
 0x433   :  { %v992_v39 = vpop.xlane.xlu1 %991 }
 0x434   :  { %v998_v40 = vmul.f32 0.0078125, %v992_v39  ;;  %v1068_v39 = vld [vmem:[#allocation8 + $0x118] sm:$0xff] }
 0x436   :  { %v1001_v41 = vadd.f32 1e-05, %v998_v40  ;;  %v1199_v40 = vld [vmem:[#allocation8 + $0x530] sm:$0xff] }
 0x437   :  { %v994_v42 = vpop.xlane.xlu0 %993 }
 0x438   :  { %3098 = vrsqrt.f32 %v1001_v41  ;;  %v999_v43 = vmul.f32 0.0078125, %v994_v42  ;;  %v1067_v41 = vld [vmem:[#allocation8 + $0x110] sm:$0xff]  ;;  %v1196_v42 = vld [vmem:[#allocation8 + $0x518] sm:$0xff] }
 0x43a   :  { %v1002_v44 = vadd.f32 1e-05, %v999_v43  ;;  %v1064_v43 = vld [vmem:[#allocation8 + $0xf8] sm:$0xff] }
 0x43c   :  { %3100 = vrsqrt.f32 %v1002_v44  ;;  %v1195_v44 = vld [vmem:[#allocation8 + $0x510] sm:$0xff] }
 0x43d   :  { %v997_v45 = vpop.xlane.xlu1 %996 }
 0x43e   :  { %v1000_v46 = vmul.f32 0.0078125, %v997_v45  ;;  %v1063_v45 = vld [vmem:[#allocation8 + $0xf0] sm:$0xff] }
 0x440   :  { %v1003_v47 = vadd.f32 1e-05, %v1000_v46  ;;  %v1192_v46 = vld [vmem:[#allocation8 + $0x4f8] sm:$0xff] }
 0x442   :  { %3102 = vrsqrt.f32 %v1003_v47  ;;  %v1060_v47 = vld [vmem:[#allocation8 + $0xd8] sm:$0xff] }
 0x445   :  { %v3099_v48 = vpop.eup %3098 }
 0x446   :  { %v1007_v50 = vmul.f32 %v3099_v48, %v3579_v18  ;;  %v1191_v48 = vld [vmem:[#allocation8 + $0x4f0] sm:$0xff] }
 0x448   :  { %v1010_v52 = vmul.f32 %v1007_v50, %v971_v49  ;;  %v1188_v50 = vld [vmem:[#allocation8 + $0x4d8] sm:$0xff] }
 0x449   :  { %v3101_v53 = vpop.eup %3100 }
 0x44a   :  { %v1008_v55 = vmul.f32 %v3101_v53, %v3585_v22  ;;  %v3598_v60 = vadd.f32 %v1010_v52, %v972_v51  ;;  %v1187_v52 = vld [vmem:[#allocation8 + $0x4d0] sm:$0xff] }
 0x44b   :  { %v1055_v53 = vld [vmem:[#allocation8 + $0xb0] sm:$0xff] }
 0x44c   :  { %v1011_v61 = vmul.f32 %v1008_v55, %v971_v49  ;;  %v1019_v54 = vrot.slane %v3598_v60, 1  ;;  %v1026_v1 = vrot.slane %v3598_v60, 2  ;;  %v1184_v55 = vld [vmem:[#allocation8 + $0x4b8] sm:$0xff] }
 0x44e   :  { %v3600_v62 = vadd.f32 %v1011_v61, %v972_v51  ;;  %v1052_v61 = vld [vmem:[#allocation8 + $0x98] sm:$0xff] }
 0x44f   :  { %v3103_v63 = vpop.eup %3102 }
 0x450   :  { %v1020_v58 = vrot.slane %v3600_v62, 1  ;;  %v1027_v3 = vrot.slane %v3600_v62, 2  ;;  %v1009_v18 = vmul.f32 %v3103_v63, %v3591_v23  ;;  %v1183_v63 = vld [vmem:[#allocation8 + $0x4b0] sm:$0xff] }
 0x452   :  { %v1021_v5 = vsel %vm597_vm2, %v1019_v54, %v1020_v58  ;;  %v3609_v22 = vsel %vm614_vm1, %v1026_v1, %v1027_v3  ;;  %v1012_v8 = vmul.f32 %v1009_v18, %v971_v49  ;;  %v1059_v49 = vld [vmem:[#allocation8 + $0xd0] sm:$0xff]  ;;  %v1048_v1 = vld [vmem:[#allocation8 + $0x78] sm:$0xff] }
 0x453   :  { %1312 = vmatprep.mubr.f32.mxu1 %v1021_v5  ;;  %1390 = vmatmul.mubr.f32.vlgmr.msra.gmra.mxu0 %v3609_v22  ;;  %v1051_v54 = vld [vmem:[#allocation8 + $0x90] sm:$0xff] }
 0x454   :  { %1403 = vmatpush1.msra.mxu0 %v1095_v4  ;;  %1313 = vmatmul.mubr.f32.vlgmr.msra.gmra.mxu1 %v3598_v60  ;;  %v1015_v23 = vadd.f32 %v1012_v8, %v972_v51  ;;  %v1056_v51 = vld [vmem:[#allocation8 + $0xb8] sm:$0xff]  ;;  %v1047_v18 = vld [vmem:[#allocation8 + $0x70] sm:$0xff] }
 0x455   :  { %1404 = vmatprep.subr.mxu0 %v1092_v6  ;;  %1480 = vmatpush1.msra.mxu1 %v1223_v7  ;;  %v1176_v4 = vld [vmem:[#allocation8 + $0x478] sm:$0xff]  ;;  %v1175_v6 = vld [vmem:[#allocation8 + $0x470] sm:$0xff] }
 0x456   :  { %1405 = vmatpush1.msra.mxu0 %v1091_v9  ;;  %1481 = vmatprep.subr.mxu1 %v1220_v2  ;;  %v1022_v15 = vrot.slane %v1015_v23, 1  ;;  %v1029_v16 = vrot.slane %v1015_v23, 2  ;;  %v1043_v7 = vld [vmem:[#allocation8 + $0x50] sm:$0xff]  ;;  %v1172_v8 = vld [vmem:[#allocation8 + $0x458] sm:$0xff] }
 0x457   :  { %1406 = vmatprep.subr.mxu0 %v1088_v10  ;;  %1482 = vmatpush1.msra.mxu1 %v1219_v11  ;;  %v1040_v9 = vld [vmem:[#allocation8 + $0x38] sm:$0xff]  ;;  %v1171_v2 = vld [vmem:[#allocation8 + $0x450] sm:$0xff] }
 0x458   :  { %1407 = vmatpush1.msra.mxu0 %v1087_v12  ;;  %1483 = vmatprep.subr.mxu1 %v1216_v13  ;;  %v3614_v19 = vsel %vm597_vm2, %v1020_v58, %v1022_v15  ;;  %v3617_v20 = vsel %vm614_vm1, %v1027_v3, %v1029_v16  ;;  %v1180_v58 = vld [vmem:[#allocation8 + $0x498] sm:$0xff]  ;;  %v1179_v3 = vld [vmem:[#allocation8 + $0x490] sm:$0xff] }
 0x459   :  { %1395 = vmatprep.mubr.f32.mxu0 %v3371_v0  ;;  %1408 = vmatprep.subr.mxu0 %v1084_v14  ;;  %v1039_v10 = vld [vmem:[#allocation8 + $0x30] sm:$0xff]  ;;  %v1168_v11 = vld [vmem:[#allocation8 + $0x438] sm:$0xff] }
 0x45a   :  { %1484 = vmatpush1.msra.mxu1 %v1215_v17  ;;  %1318 = vmatprep.mubr.f32.mxu1 %v3614_v19  ;;  %v1036_v23 = vld [vmem:[#allocation8 + $0x18] sm:$0xff]  ;;  %v1167_v12 = vld [vmem:[#allocation8 + $0x430] sm:$0xff] }
 0x45b   :  { %1396 = vmatmul.mubr.f32.gmra.mxu0 %v3617_v20  ;;  %1485 = vmatprep.subr.mxu1 %v1212_v21  ;;  %v1035_v13 = vld [vmem:[#allocation8 + $0x10] sm:$0xff]  ;;  %v1164_v14 = vld [vmem:[#allocation8 + $0x418] sm:$0xff] }
 0x45c   :  { %1409 = vmatpush1.msra.mxu0 %v1083_v24  ;;  %1319 = vmatmul.mubr.f32.gmra.mxu1 %v3600_v62  ;;  %v1160_v15 = vld [vmem:[#allocation8 + $0x3f8] sm:$0xff]  ;;  %v1163_v16 = vld [vmem:[#allocation8 + $0x410] sm:$0xff] }
 0x45d   :  { %1410 = vmatprep.subr.mxu0 %v1080_v25  ;;  %1466 = vmatprep.mubr.f32.mxu0 %v1021_v5  ;;  %v1044_v5 = vld [vmem:[#allocation8 + $0x58] sm:$0xff]  ;;  %v1159_v17 = vld [vmem:[#allocation8 + $0x3f0] sm:$0xff] }
 0x45e   :  { %1486 = vmatpush1.msra.mxu1 %v1211_v26  ;;  %1411 = vmatpush1.msra.mxu0 %v1079_v27  ;;  %v1156_v21 = vld [vmem:[#allocation8 + $0x3d8] sm:$0xff]  ;;  %v1155_v24 = vld [vmem:[#allocation8 + $0x3d0] sm:$0xff] }
 0x45f   :  { %1487 = vmatprep.subr.mxu1 %v1208_v28  ;;  %1412 = vmatprep.subr.mxu0 %v1076_v29  ;;  %v1152_v25 = vld [vmem:[#allocation8 + $0x3b8] sm:$0xff]  ;;  %v1151_v26 = vld [vmem:[#allocation8 + $0x3b0] sm:$0xff] }
 0x460   :  { %1488 = vmatpush1.msra.mxu1 %v1207_v30  ;;  %1413 = vmatpush1.msra.mxu0 %v1075_v31  ;;  %v1148_v27 = vld [vmem:[#allocation8 + $0x398] sm:$0xff]  ;;  %v1147_v28 = vld [vmem:[#allocation8 + $0x390] sm:$0xff] }
 0x461   :  { %1489 = vmatprep.subr.mxu1 %v1204_v32  ;;  %1414 = vmatprep.subr.mxu0 %v1072_v33  ;;  %v1144_v29 = vld [vmem:[#allocation8 + $0x378] sm:$0xff]  ;;  %v1143_v30 = vld [vmem:[#allocation8 + $0x370] sm:$0xff] }
 0x462   :  { %1490 = vmatpush1.msra.mxu1 %v1203_v35  ;;  %1415 = vmatpush1.msra.mxu0 %v1071_v36  ;;  %v1140_v31 = vld [vmem:[#allocation8 + $0x358] sm:$0xff]  ;;  %v1139_v32 = vld [vmem:[#allocation8 + $0x350] sm:$0xff] }
 0x463   :  { %1491 = vmatprep.subr.mxu1 %v1200_v38  ;;  %1416 = vmatprep.subr.mxu0 %v1068_v39  ;;  %v1135_v33 = vld [vmem:[#allocation8 + $0x330] sm:$0xff]  ;;  %v1128_v36 = vld [vmem:[#allocation8 + $0x2f8] sm:$0xff] }
 0x464   :  { %1492 = vmatpush1.msra.mxu1 %v1199_v40  ;;  %1417 = vmatpush1.msra.mxu0 %v1067_v41  ;;  %v1131_v35 = vld [vmem:[#allocation8 + $0x310] sm:$0xff]  ;;  %v1120_v40 = vld [vmem:[#allocation8 + $0x2b8] sm:$0xff] }
 0x465   :  { %1493 = vmatprep.subr.mxu1 %v1196_v42  ;;  %1418 = vmatprep.subr.mxu0 %v1064_v43  ;;  %v1127_v38 = vld [vmem:[#allocation8 + $0x2f0] sm:$0xff]  ;;  %v1116_v42 = vld [vmem:[#allocation8 + $0x298] sm:$0xff] }
 0x466   :  { %1494 = vmatpush1.msra.mxu1 %v1195_v44  ;;  %1419 = vmatpush1.msra.mxu0 %v1063_v45  ;;  %v1123_v39 = vld [vmem:[#allocation8 + $0x2d0] sm:$0xff]  ;;  %v1112_v44 = vld [vmem:[#allocation8 + $0x278] sm:$0xff] }
 0x467   :  { %1495 = vmatprep.subr.mxu1 %v1192_v46  ;;  %1420 = vmatprep.subr.mxu0 %v1060_v47  ;;  %v1119_v41 = vld [vmem:[#allocation8 + $0x2b0] sm:$0xff]  ;;  %v1108_v46 = vld [vmem:[#allocation8 + $0x258] sm:$0xff] }
 0x468   :  { %1496 = vmatpush1.msra.mxu1 %v1191_v48  ;;  %1421 = vmatpush1.msra.mxu0 %v1059_v49  ;;  %v1115_v43 = vld [vmem:[#allocation8 + $0x290] sm:$0xff]  ;;  %v1104_v48 = vld [vmem:[#allocation8 + $0x238] sm:$0xff] }
 0x469   :  { %1497 = vmatprep.subr.mxu1 %v1188_v50  ;;  %1422 = vmatprep.subr.mxu0 %v1056_v51  ;;  %v1111_v45 = vld [vmem:[#allocation8 + $0x270] sm:$0xff]  ;;  %v1100_v50 = vld [vmem:[#allocation8 + $0x218] sm:$0xff] }
 0x46a   :  { %1498 = vmatpush1.msra.mxu1 %v1187_v52  ;;  %1423 = vmatpush1.msra.mxu0 %v1055_v53  ;;  %v1107_v47 = vld [vmem:[#allocation8 + $0x250] sm:$0xff]  ;;  %v1615_v52 = vld [vmem:[#allocation10 + $0xf8] sm:$0xff] }
 0x46b   :  { %1499 = vmatprep.subr.mxu1 %v1184_v55  ;;  %1424 = vmatprep.subr.mxu0 %v1052_v61  ;;  %v1103_v49 = vld [vmem:[#allocation8 + $0x230] sm:$0xff]  ;;  %v1613_v55 = vld [vmem:[#allocation10 + $0xe8] sm:$0xff]  ;;  %v1612_v61 = vld [vmem:[#allocation10 + $0xe0] sm:$0xff] }
 0x46c   :  { %1500 = vmatpush1.msra.mxu1 %v1183_v63  ;;  %1425 = vmatpush1.msra.mxu0 %v1051_v54  ;;  %v1099_v51 = vld [vmem:[#allocation8 + $0x210] sm:$0xff]  ;;  %v1611_v63 = vld [vmem:[#allocation10 + $0xd8] sm:$0xff] }
 0x46d   :  { %1501 = vmatprep.subr.mxu1 %v1180_v58  ;;  %1426 = vmatprep.subr.mxu0 %v1048_v1  ;;  %v1614_v53 = vld [vmem:[#allocation10 + $0xf0] sm:$0xff]  ;;  %v1609_v58 = vld [vmem:[#allocation10 + $0xc8] sm:$0xff]  ;;  %v1608_v1 = vld [vmem:[#allocation10 + $0xc0] sm:$0xff] }
 0x46e   :  { %1502 = vmatpush1.msra.mxu1 %v1179_v3  ;;  %1427 = vmatpush1.msra.mxu0 %v1047_v18  ;;  %v1610_v54 = vld [vmem:[#allocation10 + $0xd0] sm:$0xff]  ;;  %v1607_v3 = vld [vmem:[#allocation10 + $0xb8] sm:$0xff] }
 0x46f   :  { %1503 = vmatprep.subr.mxu1 %v1176_v4  ;;  %1428 = vmatprep.subr.mxu0 %v1044_v5  ;;  %v1603_v18 = vld [vmem:[#allocation10 + $0x98] sm:$0xff]  ;;  %v1602_v4 = vld [vmem:[#allocation10 + $0x90] sm:$0xff]  ;;  %v1601_v5 = vld [vmem:[#allocation10 + $0x88] sm:$0xff] }
 0x470   :  { %1504 = vmatpush1.msra.mxu1 %v1175_v6  ;;  %1429 = vmatpush1.msra.mxu0 %v1043_v7  ;;  %v1600_v6 = vld [vmem:[#allocation10 + $0x80] sm:$0xff]  ;;  %v1599_v7 = vld [vmem:[#allocation10 + $0x78] sm:$0xff] }
 0x471   :  { %1505 = vmatprep.subr.mxu1 %v1172_v8  ;;  %1430 = vmatprep.subr.mxu0 %v1040_v9  ;;  %v1598_v8 = vld [vmem:[#allocation10 + $0x70] sm:$0xff]  ;;  %v1597_v9 = vld [vmem:[#allocation10 + $0x68] sm:$0xff] }
 0x472   :  { %1506 = vmatpush1.msra.mxu1 %v1171_v2  ;;  %1431 = vmatpush1.msra.mxu0 %v1039_v10  ;;  %v1596_v2 = vld [vmem:[#allocation10 + $0x60] sm:$0xff]  ;;  %v1595_v10 = vld [vmem:[#allocation10 + $0x58] sm:$0xff] }
 0x473   :  { %1507 = vmatprep.subr.mxu1 %v1168_v11  ;;  %1432 = vmatprep.subr.mxu0 %v1036_v23  ;;  %v1594_v11 = vld [vmem:[#allocation10 + $0x50] sm:$0xff]  ;;  %v1593_v23 = vld [vmem:[#allocation10 + $0x48] sm:$0xff] }
 0x474   :  { %1508 = vmatpush1.msra.mxu1 %v1167_v12  ;;  %1433 = vmatpush1.msra.mxu0 %v1035_v13  ;;  %v1592_v12 = vld [vmem:[#allocation10 + $0x40] sm:$0xff]  ;;  %v1591_v13 = vld [vmem:[#allocation10 + $0x38] sm:$0xff] }
 0x475   :  { %1509 = vmatprep.subr.mxu1 %v1164_v14  ;;  %1434 = vmatprep.subr.mxu0 %v1160_v15  ;;  %v1590_v14 = vld [vmem:[#allocation10 + $0x30] sm:$0xff]  ;;  %v1589_v15 = vld [vmem:[#allocation10 + $0x28] sm:$0xff] }
 0x476   :  { %1510 = vmatpush1.msra.mxu1 %v1163_v16  ;;  %1543 = vmatprep.mubr.f32.mxu1 %v3371_v0  ;;  %v1588_v16 = vld [vmem:[#allocation10 + $0x20] sm:$0xff] }
 0x477   :  { %1435 = vmatpush2.msra.mxu0 %v1159_v17  ;;  %1544 = vmatmul.mubr.f32.vlgmr.msra.gmra.mxu1 %v3609_v22  ;;  %v1136_v22 = vld [vmem:[#allocation8 + $0x338] sm:$0xff] }
 0x478   :  { %1436 = vmatprep.subr.mxu0 %v1156_v21  ;;  %1549 = vmatprep.mubr.f32.mxu1 %v3371_v0  ;;  %v1132_v0 = vld [vmem:[#allocation8 + $0x318] sm:$0xff]  ;;  %v1586_v21 = vld [vmem:[#allocation10 + $0x10] sm:$0xff] }
 0x479   :  { %1437 = vmatpush2.msra.mxu0 %v1155_v24  ;;  %1661 = vmatprep.subr.mxu1 %v1615_v52  ;;  %v1587_v17 = vld [vmem:[#allocation10 + $0x18] sm:$0xff]  ;;  %v1585_v24 = vld [vmem:[#allocation10 + $0x8] sm:$0xff]  ;;  %v1620_v52 = vld [vmem:[#allocation10 + $0x120] sm:$0xff] }
 0x47a   :  { %1438 = vmatprep.subr.mxu0 %v1152_v25  ;;  %1662 = vmatpush1.msra.mxu1 %v1614_v53  ;;  %v1584_v25 = vld [vmem:[#allocation10] sm:$0xff]  ;;  %v1619_v53 = vld [vmem:[#allocation10 + $0x118] sm:$0xff] }
 0x47b   :  { %1439 = vmatpush2.msra.mxu0 %v1151_v26  ;;  %1550 = vmatmul.mubr.f32.gmra.mxu1 %v3617_v20  ;;  %v1124_v20 = vld [vmem:[#allocation8 + $0x2d8] sm:$0xff] }
 0x47c   :  { %1440 = vmatprep.subr.mxu0 %v1148_v27  ;;  %1663 = vmatprep.subr.mxu1 %v1613_v55  ;;  %v1647_v26 = vld [vmem:[#allocation10 + $0x1f8] sm:$0xff]  ;;  %v1646_v27 = vld [vmem:[#allocation10 + $0x1f0] sm:$0xff] }
 0x47d   :  { %1441 = vmatpush2.msra.mxu0 %v1147_v28  ;;  %1664 = vmatpush1.msra.mxu1 %v1612_v61  ;;  %v1645_v28 = vld [vmem:[#allocation10 + $0x1e8] sm:$0xff]  ;;  %v1618_v55 = vld [vmem:[#allocation10 + $0x110] sm:$0xff] }
 0x47e   :  { %1442 = vmatprep.subr.mxu0 %v1144_v29  ;;  %1665 = vmatprep.subr.mxu1 %v1611_v63  ;;  %v1644_v29 = vld [vmem:[#allocation10 + $0x1e0] sm:$0xff]  ;;  %v1617_v61 = vld [vmem:[#allocation10 + $0x108] sm:$0xff] }
 0x47f   :  { %1443 = vmatpush2.msra.mxu0 %v1143_v30  ;;  %1666 = vmatpush1.msra.mxu1 %v1610_v54  ;;  %v1643_v30 = vld [vmem:[#allocation10 + $0x1d8] sm:$0xff]  ;;  %v1616_v63 = vld [vmem:[#allocation10 + $0x100] sm:$0xff] }
 0x480   :  { %1444 = vmatprep.subr.mxu0 %v1140_v31  ;;  %1667 = vmatprep.subr.mxu1 %v1609_v58  ;;  %v1642_v31 = vld [vmem:[#allocation10 + $0x1d0] sm:$0xff]  ;;  %v1797_v54 = vld [vmem:[#allocation11 + $0xf8] sm:$0xff] }
 0x481   :  { %1445 = vmatpush2.msra.mxu0 %v1139_v32  ;;  %1668 = vmatpush1.msra.mxu1 %v1608_v1  ;;  %v1641_v32 = vld [vmem:[#allocation10 + $0x1c8] sm:$0xff]  ;;  %v1781_v58 = vld [vmem:[#allocation11 + $0x78] sm:$0xff]  ;;  %v1796_v1 = vld [vmem:[#allocation11 + $0xf0] sm:$0xff] }
 0x482   :  { %1446 = vmatprep.subr.mxu0 %v1136_v22  ;;  %1669 = vmatprep.subr.mxu1 %v1607_v3  ;;  %v1640_v22 = vld [vmem:[#allocation10 + $0x1c0] sm:$0xff]  ;;  %v1780_v3 = vld [vmem:[#allocation11 + $0x70] sm:$0xff] }
 0x483   :  { %1447 = vmatpush2.msra.mxu0 %v1135_v33  ;;  %v1639_v33 = vld [vmem:[#allocation10 + $0x1b8] sm:$0xff] }
 0x484   :  { %1448 = vmatprep.subr.mxu0 %v1132_v0  ;;  %v1638_v0 = vld [vmem:[#allocation10 + $0x1b0] sm:$0xff] }
 0x485   :  { %1449 = vmatpush2.msra.mxu0 %v1131_v35  ;;  %v1637_v35 = vld [vmem:[#allocation10 + $0x1a8] sm:$0xff] }
 0x486   :  { %1450 = vmatprep.subr.mxu0 %v1128_v36  ;;  %v1636_v36 = vld [vmem:[#allocation10 + $0x1a0] sm:$0xff] }
 0x487   :  { %1451 = vmatpush2.msra.mxu0 %v1127_v38  ;;  %v1635_v38 = vld [vmem:[#allocation10 + $0x198] sm:$0xff] }
 0x488   :  { %1452 = vmatprep.subr.mxu0 %v1124_v20  ;;  %v1634_v20 = vld [vmem:[#allocation10 + $0x190] sm:$0xff] }
 0x489   :  { %1453 = vmatpush2.msra.mxu0 %v1123_v39  ;;  %v1633_v39 = vld [vmem:[#allocation10 + $0x188] sm:$0xff] }
 0x48a   :  { %1454 = vmatprep.subr.mxu0 %v1120_v40  ;;  %v1632_v40 = vld [vmem:[#allocation10 + $0x180] sm:$0xff] }
 0x48b   :  { %1455 = vmatpush2.msra.mxu0 %v1119_v41  ;;  %v1631_v41 = vld [vmem:[#allocation10 + $0x178] sm:$0xff] }
 0x48c   :  { %1456 = vmatprep.subr.mxu0 %v1116_v42  ;;  %v1630_v42 = vld [vmem:[#allocation10 + $0x170] sm:$0xff] }
 0x48d   :  { %1457 = vmatpush2.msra.mxu0 %v1115_v43  ;;  %v1629_v43 = vld [vmem:[#allocation10 + $0x168] sm:$0xff] }
 0x48e   :  { %1458 = vmatprep.subr.mxu0 %v1112_v44  ;;  %v1628_v44 = vld [vmem:[#allocation10 + $0x160] sm:$0xff] }
 0x48f   :  { %1459 = vmatpush2.msra.mxu0 %v1111_v45  ;;  %v1627_v45 = vld [vmem:[#allocation10 + $0x158] sm:$0xff] }
 0x490   :  { %1460 = vmatprep.subr.mxu0 %v1108_v46  ;;  %v1626_v46 = vld [vmem:[#allocation10 + $0x150] sm:$0xff] }
 0x491   :  { %1461 = vmatpush2.msra.mxu0 %v1107_v47  ;;  %v1625_v47 = vld [vmem:[#allocation10 + $0x148] sm:$0xff] }
 0x492   :  { %1462 = vmatprep.subr.mxu0 %v1104_v48  ;;  %v1624_v48 = vld [vmem:[#allocation10 + $0x140] sm:$0xff] }
 0x493   :  { %1463 = vmatpush2.msra.mxu0 %v1103_v49  ;;  %v1623_v49 = vld [vmem:[#allocation10 + $0x138] sm:$0xff] }
 0x494   :  { %1464 = vmatprep.subr.mxu0 %v1100_v50  ;;  %v1622_v50 = vld [vmem:[#allocation10 + $0x130] sm:$0xff] }
 0x495   :  { %1465 = vmatpush2.msra.mxu0 %v1099_v51  ;;  %v1621_v51 = vld [vmem:[#allocation10 + $0x128] sm:$0xff] }
 0x496   :  { %1467 = vmatmul.mubr.f32.vlgmr.msra.gmra.mxu0 %v3598_v60  ;;  %v1606_v60 = vld [vmem:[#allocation10 + $0xb0] sm:$0xff]  ;;  %2834 = vmatprep.subr.mxu0 %v1797_v54 }
 0x497   :  { %1472 = vmatprep.mubr.f32.mxu0 %v3614_v19  ;;  %v1605_v19 = vld [vmem:[#allocation10 + $0xa8] sm:$0xff]  ;;  %1670 = vmatpush1.msra.mxu1 %v1606_v60 }
 0x498   :  { %1671 = vmatprep.subr.mxu1 %v1605_v19  ;;  %2835 = vmatpush3.msra.mxu0 %v1781_v58  ;;  %v1795_v60 = vld [vmem:[#allocation11 + $0xe8] sm:$0xff] }
 0x499   :  { %2836 = vmatprep.subr.mxu0 %v1796_v1  ;;  %v1779_v19 = vld [vmem:[#allocation11 + $0x68] sm:$0xff] }
 0x49a   :  { %1473 = vmatmul.mubr.f32.gmra.mxu0 %v3600_v62  ;;  %v1604_v62 = vld [vmem:[#allocation10 + $0xa0] sm:$0xff] }
 0x49b   :  { %1672 = vmatpush1.msra.mxu1 %v1604_v62  ;;  %v1861_v62 = vld [vmem:[#allocation11 + $0x2f8] sm:$0xff]  ;;  %2837 = vmatpush3.msra.mxu0 %v1780_v3 }
 0x49c   :  { %1673 = vmatprep.subr.mxu1 %v1603_v18  ;;  %v1794_v18 = vld [vmem:[#allocation11 + $0xe0] sm:$0xff]  ;;  %2838 = vmatprep.subr.mxu0 %v1795_v60 }
 0x49d   :  { %1674 = vmatpush1.msra.mxu1 %v1602_v4  ;;  %v1778_v4 = vld [vmem:[#allocation11 + $0x60] sm:$0xff]  ;;  %2839 = vmatpush3.msra.mxu0 %v1779_v19 }
 0x49e   :  { %1675 = vmatprep.subr.mxu1 %v1601_v5  ;;  %v1793_v5 = vld [vmem:[#allocation11 + $0xd8] sm:$0xff]  ;;  %2840 = vmatprep.subr.mxu0 %v1794_v18 }
 0x49f   :  { %1676 = vmatpush1.msra.mxu1 %v1600_v6  ;;  %v1777_v6 = vld [vmem:[#allocation11 + $0x58] sm:$0xff]  ;;  %2841 = vmatpush3.msra.mxu0 %v1778_v4 }
 0x4a0   :  { %1677 = vmatprep.subr.mxu1 %v1599_v7  ;;  %v1792_v7 = vld [vmem:[#allocation11 + $0xd0] sm:$0xff]  ;;  %2842 = vmatprep.subr.mxu0 %v1793_v5 }
 0x4a1   :  { %1678 = vmatpush1.msra.mxu1 %v1598_v8  ;;  %v1776_v8 = vld [vmem:[#allocation11 + $0x50] sm:$0xff]  ;;  %2843 = vmatpush3.msra.mxu0 %v1777_v6 }
 0x4a2   :  { %1679 = vmatprep.subr.mxu1 %v1597_v9  ;;  %v1791_v9 = vld [vmem:[#allocation11 + $0xc8] sm:$0xff]  ;;  %2844 = vmatprep.subr.mxu0 %v1792_v7 }
 0x4a3   :  { %1680 = vmatpush1.msra.mxu1 %v1596_v2  ;;  %v1775_v2 = vld [vmem:[#allocation11 + $0x48] sm:$0xff]  ;;  %2845 = vmatpush3.msra.mxu0 %v1776_v8 }
 0x4a4   :  { %1681 = vmatprep.subr.mxu1 %v1595_v10  ;;  %v1790_v10 = vld [vmem:[#allocation11 + $0xc0] sm:$0xff]  ;;  %2846 = vmatprep.subr.mxu0 %v1791_v9 }
 0x4a5   :  { %1682 = vmatpush1.msra.mxu1 %v1594_v11  ;;  %v1774_v11 = vld [vmem:[#allocation11 + $0x40] sm:$0xff]  ;;  %2847 = vmatpush3.msra.mxu0 %v1775_v2 }
 0x4a6   :  { %1683 = vmatprep.subr.mxu1 %v1593_v23  ;;  %v1789_v23 = vld [vmem:[#allocation11 + $0xb8] sm:$0xff]  ;;  %2848 = vmatprep.subr.mxu0 %v1790_v10 }
 0x4a7   :  { %1684 = vmatpush1.msra.mxu1 %v1592_v12  ;;  %v1773_v12 = vld [vmem:[#allocation11 + $0x38] sm:$0xff]  ;;  %2849 = vmatpush3.msra.mxu0 %v1774_v11 }
 0x4a8   :  { %1685 = vmatprep.subr.mxu1 %v1591_v13  ;;  %v1788_v13 = vld [vmem:[#allocation11 + $0xb0] sm:$0xff]  ;;  %2850 = vmatprep.subr.mxu0 %v1789_v23 }
 0x4a9   :  { %1686 = vmatpush1.msra.mxu1 %v1590_v14  ;;  %v1772_v14 = vld [vmem:[#allocation11 + $0x30] sm:$0xff]  ;;  %2851 = vmatpush3.msra.mxu0 %v1773_v12 }
 0x4aa   :  { %1687 = vmatprep.subr.mxu1 %v1589_v15  ;;  %v1787_v15 = vld [vmem:[#allocation11 + $0xa8] sm:$0xff]  ;;  %2852 = vmatprep.subr.mxu0 %v1788_v13  ;;  %v1845_v13 = vld [vmem:[#allocation11 + $0x278] sm:$0xff] }
 0x4ab   :  { %1688 = vmatpush1.msra.mxu1 %v1588_v16  ;;  %v1771_v16 = vld [vmem:[#allocation11 + $0x28] sm:$0xff]  ;;  %2853 = vmatpush3.msra.mxu0 %v1772_v14 }
 0x4ac   :  { %1689 = vmatprep.subr.mxu1 %v1587_v17  ;;  %v1786_v17 = vld [vmem:[#allocation11 + $0xa0] sm:$0xff]  ;;  %2854 = vmatprep.subr.mxu0 %v1787_v15 }
 0x4ad   :  { %1690 = vmatpush1.msra.mxu1 %v1586_v21  ;;  %v1770_v21 = vld [vmem:[#allocation11 + $0x20] sm:$0xff]  ;;  %2855 = vmatpush3.msra.mxu0 %v1771_v16  ;;  %v1860_v16 = vld [vmem:[#allocation11 + $0x2f0] sm:$0xff] }
 0x4ae   :  { %1691 = vmatprep.subr.mxu1 %v1585_v24  ;;  %v1785_v24 = vld [vmem:[#allocation11 + $0x98] sm:$0xff]  ;;  %2856 = vmatprep.subr.mxu0 %v1786_v17 }
 0x4af   :  { %1692 = vmatpush1.msra.mxu1 %v1584_v25  ;;  %2857 = vmatpush3.msra.mxu0 %v1770_v21 }
 0x4b0   :  { %1693 = vmatprep.subr.mxu1 %v1647_v26  ;;  %2858 = vmatprep.subr.mxu0 %v1785_v24  ;;  %v1844_v24 = vld [vmem:[#allocation11 + $0x270] sm:$0xff] }
 0x4b1   :  { %1694 = vmatpush2.msra.mxu1 %v1646_v27 }
 0x4b2   :  { %1695 = vmatprep.subr.mxu1 %v1645_v28 }
 0x4b3   :  { %1696 = vmatpush2.msra.mxu1 %v1644_v29 }
 0x4b4   :  { %1697 = vmatprep.subr.mxu1 %v1643_v30 }
 0x4b5   :  { %1698 = vmatpush2.msra.mxu1 %v1642_v31 }
 0x4b6   :  { %1699 = vmatprep.subr.mxu1 %v1641_v32  ;;  %v1226_v32 = vld [vmem:[#allocation16 + $0xa0] ss:$8 sm:$0xf] }
 0x4b7   :  { %1700 = vmatpush2.msra.mxu1 %v1640_v22  ;;  %v1235_v18 = vrot.slane %v1226_v32, %v3517_v37  ;;  %v1231_v4 = vrot.slane %v1226_v32, %v3514_v34 }
 0x4b8   :  { %1701 = vmatprep.subr.mxu1 %v1639_v33  ;;  %v1239_v33 = vrot.slane %v1226_v32, %v197_v57 }
 0x4b9   :  { %1702 = vmatpush2.msra.mxu1 %v1638_v0 }
 0x4ba   :  { %1703 = vmatprep.subr.mxu1 %v1637_v35  ;;  %v1243_v35 = vrot.slane %v1226_v32, %v201_v59  ;;  %v1857_v32 = vld [vmem:[#allocation11 + $0x2d8] sm:$0xff] }
 0x4bb   :  { %1704 = vmatpush2.msra.mxu1 %v1636_v36 }
 0x4bc   :  { %1705 = vmatprep.subr.mxu1 %v1635_v38 }
 0x4bd   :  { %1706 = vmatpush2.msra.mxu1 %v1634_v20 }
 0x4be   :  { %1707 = vmatprep.subr.mxu1 %v1633_v39 }
 0x4bf   :  { %1708 = vmatpush2.msra.mxu1 %v1632_v40 }
 0x4c0   :  { %1709 = vmatprep.subr.mxu1 %v1631_v41 }
 0x4c1   :  { %1710 = vmatpush2.msra.mxu1 %v1630_v42 }
 0x4c2   :  { %1711 = vmatprep.subr.mxu1 %v1629_v43 }
 0x4c3   :  { %1712 = vmatpush2.msra.mxu1 %v1628_v44 }
 0x4c4   :  { %1713 = vmatprep.subr.mxu1 %v1627_v45 }
 0x4c5   :  { %1714 = vmatpush2.msra.mxu1 %v1626_v46 }
 0x4c6   :  { %1715 = vmatprep.subr.mxu1 %v1625_v47 }
 0x4c7   :  { %1716 = vmatpush2.msra.mxu1 %v1624_v48 }
 0x4c8   :  { %1717 = vmatprep.subr.mxu1 %v1623_v49 }
 0x4c9   :  { %1718 = vmatpush2.msra.mxu1 %v1622_v50 }
 0x4ca   :  { %1719 = vmatprep.subr.mxu1 %v1621_v51 }
 0x4cb   :  { %1720 = vmatpush2.msra.mxu1 %v1620_v52 }
 0x4cc   :  { %1721 = vmatprep.subr.mxu1 %v1619_v53 }
 0x4cd   :  { %1722 = vmatpush2.msra.mxu1 %v1618_v55 }
 0x4ce   :  { %1723 = vmatprep.subr.mxu1 %v1617_v61 }
 0x4cf   :  { %1724 = vmatpush2.msra.mxu1 %v1616_v63 }
 0x4d0   :  { %2910 = vmatprep.subr.mxu1 %v1861_v62 }
 0x513   :  { %v1391_v26 = vpop.f32.mrf.mxu0 }
 0x514   :  { %v1314_v25 = vpop.f32.mrf.mxu1 }
 0x515   :  { %v1393_v29 = vpop.f32.mrf.mxu0  ;;  %v1315_v6 = vadd.f32 %v1314_v25, %v1231_v4  ;;  %v1859_v25 = vld [vmem:[#allocation11 + $0x2e8] sm:$0xff] }
 0x516   :  { %v1316_v27 = vpop.f32.mrf.mxu1 }
 0x517   :  { %v1317_v5 = vadd.f32 %v1316_v27, %v1235_v18  ;;  %v1392_v10 = vadd.f32 %v1391_v26, %v1315_v6  ;;  %v1858_v26 = vld [vmem:[#allocation11 + $0x2e0] sm:$0xff] }
 0x519   :  { %v1394_v8 = vadd.f32 %v1393_v29, %v1317_v5 }
 0x51b   :  { %v3630_v30 = vpop.f32.mrf.mxu0 }
 0x51c   :  { %v1320_v28 = vpop.f32.mrf.mxu1 }
 0x51d   :  { %v1399_v0 = vpop.f32.mrf.mxu0  ;;  %v1321_v11 = vadd.f32 %v1320_v28, %v1231_v4  ;;  %v1842_v28 = vld [vmem:[#allocation11 + $0x260] sm:$0xff] }
 0x51e   :  { %v1322_v31 = vpop.f32.mrf.mxu1 }
 0x51f   :  { %v1323_v9 = vadd.f32 %v1322_v31, %v1235_v18  ;;  %v1398_v21 = vadd.f32 %v3630_v30, %v1321_v11  ;;  %v1843_v31 = vld [vmem:[#allocation11 + $0x268] sm:$0xff]  ;;  %v1856_v30 = vld [vmem:[#allocation11 + $0x2d0] sm:$0xff] }
 0x521   :  { %v1400_v15 = vadd.f32 %v1399_v0, %v1323_v9  ;;  %v1855_v0 = vld [vmem:[#allocation11 + $0x2c8] sm:$0xff] }
 0x537   :  { %v1545_v22 = vpop.f32.mrf.mxu1 }
 0x539   :  { %v1547_v36 = vpop.f32.mrf.mxu1 }
 0x53b   :  { %v1551_v42 = vpop.f32.mrf.mxu1 }
 0x53d   :  { %v1553_v51 = vpop.f32.mrf.mxu1 }
 0x556   :  { %v1468_v38 = vpop.f32.mrf.mxu0 }
 0x557   :  { %v1469_v20 = vadd.f32 %v1468_v38, %v1239_v33  ;;  %v1838_v38 = vld [vmem:[#allocation11 + $0x240] sm:$0xff] }
 0x558   :  { %v1470_v39 = vpop.f32.mrf.mxu0 }
 0x559   :  { %v1546_v40 = vadd.f32 %v1545_v22, %v1469_v20  ;;  %v1471_v41 = vadd.f32 %v1470_v39, %v1243_v35  ;;  %v1841_v22 = vld [vmem:[#allocation11 + $0x258] sm:$0xff] }
 0x55a   :  { %v1474_v43 = vpop.f32.mrf.mxu0  ;;  %v1853_v20 = vld [vmem:[#allocation11 + $0x2b8] sm:$0xff] }
 0x55b   :  { %v1556_v44 = vsub.f32 0.0, %v1546_v40  ;;  %v1548_v45 = vadd.f32 %v1547_v36, %v1471_v41  ;;  %v1475_v46 = vadd.f32 %v1474_v43, %v1239_v33  ;;  %v1840_v33 = vld [vmem:[#allocation11 + $0x250] sm:$0xff]  ;;  %v1854_v36 = vld [vmem:[#allocation11 + $0x2c0] sm:$0xff]  ;;  %v1769_v39 = vld [vmem:[#allocation11 + $0x18] sm:$0xff] }
 0x55c   :  { %v1476_v47 = vpop.f32.mrf.mxu0  ;;  %v1837_v40 = vld [vmem:[#allocation11 + $0x238] sm:$0xff]  ;;  %2859 = vmatpush3.msra.mxu0 %v1769_v39  ;;  %v1784_v41 = vld [vmem:[#allocation11 + $0x90] sm:$0xff] }
 0x55d   :  { %v1560_v48 = vmul.f32 1.442695, %v1556_v44  ;;  %v1557_v49 = vsub.f32 0.0, %v1548_v45  ;;  %v1552_v50 = vadd.f32 %v1551_v42, %v1475_v46  ;;  %v1477_v57 = vadd.f32 %v1476_v47, %v1243_v35  ;;  %v1839_v35 = vld [vmem:[#allocation11 + $0x248] sm:$0xff]  ;;  %v1852_v42 = vld [vmem:[#allocation11 + $0x2b0] sm:$0xff]  ;;  %2860 = vmatprep.subr.mxu0 %v1784_v41  ;;  %v1821_v39 = vld [vmem:[#allocation11 + $0x1b8] sm:$0xff] }
 0x55e   :  { %v1768_v43 = vld [vmem:[#allocation11 + $0x10] sm:$0xff]  ;;  %v1783_v45 = vld [vmem:[#allocation11 + $0x88] sm:$0xff] }
 0x55f   :  { %3104 = vpow2.f32 %v1560_v48  ;;  %v1562_v56 = vmul.f32 1.442695, %v1557_v49  ;;  %v1558_v59 = vsub.f32 0.0, %v1552_v50  ;;  %v1554_v52 = vadd.f32 %v1553_v51, %v1477_v57  ;;  %v1836_v44 = vld [vmem:[#allocation11 + $0x230] sm:$0xff]  ;;  %2861 = vmatpush3.msra.mxu0 %v1768_v43  ;;  %v1851_v46 = vld [vmem:[#allocation11 + $0x2a8] sm:$0xff]  ;;  %v1782_v49 = vld [vmem:[#allocation11 + $0x80] sm:$0xff] }
 0x560   :  { %2862 = vmatprep.subr.mxu0 %v1783_v45  ;;  %v1767_v47 = vld [vmem:[#allocation11 + $0x8] sm:$0xff]  ;;  %v1850_v50 = vld [vmem:[#allocation11 + $0x2a0] sm:$0xff]  ;;  %v1820_v41 = vld [vmem:[#allocation11 + $0x1b0] sm:$0xff] }
 0x561   :  { %3106 = vpow2.f32 %v1562_v56  ;;  %v1564_v53 = vmul.f32 1.442695, %v1558_v59  ;;  %v1559_v55 = vsub.f32 0.0, %v1554_v52  ;;  %v1835_v48 = vld [vmem:[#allocation11 + $0x228] sm:$0xff]  ;;  %2863 = vmatpush3.msra.mxu0 %v1767_v47  ;;  %v1766_v57 = vld [vmem:[#allocation11] sm:$0xff]  ;;  %v1829_v56 = vld [vmem:[#allocation11 + $0x1f8] sm:$0xff] }
 0x562   :  { %2864 = vmatprep.subr.mxu0 %v1782_v49  ;;  %v1834_v51 = vld [vmem:[#allocation11 + $0x220] sm:$0xff]  ;;  %v1849_v59 = vld [vmem:[#allocation11 + $0x298] sm:$0xff]  ;;  %v1819_v43 = vld [vmem:[#allocation11 + $0x1a8] sm:$0xff] }
 0x563   :  { %3108 = vpow2.f32 %v1564_v53  ;;  %v1566_v61 = vmul.f32 1.442695, %v1559_v55  ;;  %2865 = vmatpush3.msra.mxu0 %v1766_v57  ;;  %v1833_v52 = vld [vmem:[#allocation11 + $0x218] sm:$0xff]  ;;  %v1848_v53 = vld [vmem:[#allocation11 + $0x290] sm:$0xff]  ;;  %v1818_v45 = vld [vmem:[#allocation11 + $0x1a0] sm:$0xff] }
 0x564   :  { %2872 = vmatprep.subr.mxu0 %v1829_v56  ;;  %v1832_v55 = vld [vmem:[#allocation11 + $0x210] sm:$0xff]  ;;  %v1817_v47 = vld [vmem:[#allocation11 + $0x198] sm:$0xff]  ;;  %v1815_v57 = vld [vmem:[#allocation11 + $0x188] sm:$0xff] }
 0x565   :  { %3110 = vpow2.f32 %v1566_v61  ;;  %v1847_v61 = vld [vmem:[#allocation11 + $0x288] sm:$0xff]  ;;  %v1816_v49 = vld [vmem:[#allocation11 + $0x190] sm:$0xff] }
 0x56c   :  { %v3105_v63 = vpop.eup %3104 }
 0x56d   :  { %v1568_v54 = vadd.f32 1.0, %v3105_v63  ;;  %v1831_v63 = vld [vmem:[#allocation11 + $0x208] sm:$0xff] }
 0x56e   :  { %v3107_v58 = vpop.eup %3106 }
 0x56f   :  { %v1569_v1 = vadd.f32 1.0, %v3107_v58  ;;  %3112 = vrcp.f32 %v1568_v54  ;;  %v1846_v54 = vld [vmem:[#allocation11 + $0x280] sm:$0xff] }
 0x570   :  { %v3109_v3 = vpop.eup %3108  ;;  %v1830_v58 = vld [vmem:[#allocation11 + $0x200] sm:$0xff] }
 0x571   :  { %3114 = vrcp.f32 %v1569_v1  ;;  %v1570_v60 = vadd.f32 1.0, %v3109_v3  ;;  %v1649_v1 = vld [vmem:[#allocation16 + $0xc0] ss:$8 sm:$0x3] }
 0x572   :  { %v3111_v19 = vpop.eup %3110  ;;  %v1654_v3 = vrot.slane %v1649_v1, %v3514_v34 }
 0x573   :  { %v1571_v62 = vadd.f32 1.0, %v3111_v19  ;;  %3116 = vrcp.f32 %v1570_v60  ;;  %v1658_v60 = vrot.slane %v1649_v1, %v3517_v37 }
 0x575   :  { %3118 = vrcp.f32 %v1571_v62 }
 0x57c   :  { %v3113_v7 = vpop.eup %3112 }
 0x57d   :  { %v1580_v12 = vmul.f32 %v3113_v7, %v1392_v10 }
 0x57e   :  { %v3115_v2 = vpop.eup %3114 }
 0x57f   :  { %v1581_v23 = vmul.f32 %v3115_v2, %v1394_v8  ;;  %v1813_v2 = vld [vmem:[#allocation11 + $0x178] sm:$0xff] }
 0x580   :  { %v3117_v14 = vpop.eup %3116 }
 0x581   :  { %1725 = vmatprep.mubr.f32.mxu1 %v1581_v23  ;;  %v1582_v29 = vmul.f32 %v3117_v14, %v1398_v21  ;;  %v1828_v23 = vld [vmem:[#allocation11 + $0x1f0] sm:$0xff]  ;;  %v1827_v14 = vld [vmem:[#allocation11 + $0x1e8] sm:$0xff] }
 0x582   :  { %v3119_v17 = vpop.eup %3118  ;;  %1726 = vmatmul.mubr.f32.vlgmr.msra.gmra.mxu1 %v1580_v12  ;;  %v1812_v12 = vld [vmem:[#allocation11 + $0x170] sm:$0xff] }
 0x583   :  { %v1583_v27 = vmul.f32 %v3119_v17, %v1400_v15  ;;  %2911 = vmatpush3.msra.mxu1 %v1845_v13 }
 0x584   :  { %2912 = vmatprep.subr.mxu1 %v1860_v16  ;;  %v1811_v16 = vld [vmem:[#allocation11 + $0x168] sm:$0xff] }
 0x585   :  { %1731 = vmatprep.mubr.f32.mxu1 %v1583_v27  ;;  %2913 = vmatpush3.msra.mxu1 %v1844_v24 }
 0x586   :  { %1732 = vmatmul.mubr.f32.gmra.mxu1 %v1582_v29  ;;  %2914 = vmatprep.subr.mxu1 %v1859_v25  ;;  %v1826_v25 = vld [vmem:[#allocation11 + $0x1e0] sm:$0xff] }
 0x587   :  { %2915 = vmatpush3.msra.mxu1 %v1843_v31  ;;  %v1810_v29 = vld [vmem:[#allocation11 + $0x160] sm:$0xff] }
 0x588   :  { %2916 = vmatprep.subr.mxu1 %v1858_v26 }
 0x589   :  { %2917 = vmatpush3.msra.mxu1 %v1842_v28 }
 0x58a   :  { %2918 = vmatprep.subr.mxu1 %v1857_v32  ;;  %v1825_v32 = vld [vmem:[#allocation11 + $0x1d8] sm:$0xff] }
 0x58b   :  { %2919 = vmatpush3.msra.mxu1 %v1841_v22  ;;  %v1809_v22 = vld [vmem:[#allocation11 + $0x158] sm:$0xff] }
 0x58c   :  { %2920 = vmatprep.subr.mxu1 %v1856_v30 }
 0x58d   :  { %2921 = vmatpush3.msra.mxu1 %v1840_v33  ;;  %v1824_v33 = vld [vmem:[#allocation11 + $0x1d0] sm:$0xff] }
 0x58e   :  { %2922 = vmatprep.subr.mxu1 %v1855_v0  ;;  %v1808_v0 = vld [vmem:[#allocation11 + $0x150] sm:$0xff] }
 0x58f   :  { %2923 = vmatpush3.msra.mxu1 %v1839_v35  ;;  %v1823_v35 = vld [vmem:[#allocation11 + $0x1c8] sm:$0xff] }
 0x590   :  { %2924 = vmatprep.subr.mxu1 %v1854_v36  ;;  %v1807_v36 = vld [vmem:[#allocation11 + $0x148] sm:$0xff] }
 0x591   :  { %2925 = vmatpush3.msra.mxu1 %v1838_v38  ;;  %v1822_v38 = vld [vmem:[#allocation11 + $0x1c0] sm:$0xff] }
 0x592   :  { %2926 = vmatprep.subr.mxu1 %v1853_v20  ;;  %v1806_v20 = vld [vmem:[#allocation11 + $0x140] sm:$0xff] }
 0x593   :  { %2927 = vmatpush3.msra.mxu1 %v1837_v40  ;;  %v1805_v40 = vld [vmem:[#allocation11 + $0x138] sm:$0xff] }
 0x594   :  { %2928 = vmatprep.subr.mxu1 %v1852_v42  ;;  %v1804_v42 = vld [vmem:[#allocation11 + $0x130] sm:$0xff] }
 0x595   :  { %2929 = vmatpush3.msra.mxu1 %v1836_v44  ;;  %v1803_v44 = vld [vmem:[#allocation11 + $0x128] sm:$0xff] }
 0x596   :  { %2930 = vmatprep.subr.mxu1 %v1851_v46  ;;  %v1802_v46 = vld [vmem:[#allocation11 + $0x120] sm:$0xff] }
 0x597   :  { %2931 = vmatpush3.msra.mxu1 %v1835_v48  ;;  %v1801_v48 = vld [vmem:[#allocation11 + $0x118] sm:$0xff] }
 0x598   :  { %2932 = vmatprep.subr.mxu1 %v1850_v50  ;;  %v1800_v50 = vld [vmem:[#allocation11 + $0x110] sm:$0xff] }
 0x599   :  { %2933 = vmatpush3.msra.mxu1 %v1834_v51  ;;  %v1799_v51 = vld [vmem:[#allocation11 + $0x108] sm:$0xff] }
 0x59a   :  { %2934 = vmatprep.subr.mxu1 %v1849_v59  ;;  %v1814_v59 = vld [vmem:[#allocation11 + $0x180] sm:$0xff] }
 0x59b   :  { %2935 = vmatpush3.msra.mxu1 %v1833_v52  ;;  %v1798_v52 = vld [vmem:[#allocation11 + $0x100] sm:$0xff] }
 0x59c   :  { %2936 = vmatprep.subr.mxu1 %v1848_v53 }
 0x59d   :  { %2937 = vmatpush3.msra.mxu1 %v1832_v55 }
 0x59e   :  { %2938 = vmatprep.subr.mxu1 %v1847_v61 }
 0x59f   :  { %2939 = vmatpush3.msra.mxu1 %v1831_v63 }
 0x5a0   :  { %2940 = vmatprep.subr.mxu1 %v1846_v54 }
 0x5a1   :  { %2941 = vmatpush3.msra.mxu1 %v1830_v58 }
 0x642   :  { %v1727_v19 = vpop.f32.mrf.mxu1 }
 0x643   :  { %v1728_v62 = vadd.f32 %v1727_v19, %v1654_v3  ;;  %v1862_v19 = vld [vmem:[#allocation16 + $0xe0] ss:$0 sm:$0xff] }
 0x644   :  { %v1729_v18 = vpop.f32.mrf.mxu1 }
 0x645   :  { %v1730_v4 = vadd.f32 %v1729_v18, %v1658_v60  ;;  %v3641_v8 = vmax.f32 %v1728_v62, 0.0 }
 0x646   :  { %v1733_v5 = vpop.f32.mrf.mxu1 }
 0x647   :  { %v1739_v6 = vmax.f32 %v1730_v4, 0.0  ;;  %v1734_v7 = vadd.f32 %v1733_v5, %v1654_v3  ;;  %v1756_v31 = vrot.slane %v3641_v8, 2  ;;  %v1746_v53 = vrot.slane %v3641_v8, 1 }
 0x648   :  { %v1735_v9 = vpop.f32.mrf.mxu1 }
 0x649   :  { %v3643_v10 = vmax.f32 %v1734_v7, 0.0  ;;  %v1736_v11 = vadd.f32 %v1735_v9, %v1658_v60  ;;  %1927 = vmatprep.mubr.f32.mxu0 %v1739_v6  ;;  %v1749_v15 = vrot.slane %v1739_v6, 1  ;;  %v1759_v17 = vrot.slane %v1739_v6, 2 }
 0x64a   :  { %1928 = vmatmul.mubr.f32.vlgmr.msra.gmra.mxu0 %v3641_v8 }
 0x64b   :  { %v3646_v13 = vmax.f32 %v1736_v11, 0.0  ;;  %2873 = vmatpush3.msra.mxu0 %v1813_v2  ;;  %v1757_v21 = vrot.slane %v3643_v10, 2  ;;  %v1747_v56 = vrot.slane %v3643_v10, 1 }
 0x64c   :  { %2874 = vmatprep.subr.mxu0 %v1828_v23 }
 0x64d   :  { %v1750_v24 = vrot.slane %v3646_v13, 1  ;;  %v1760_v27 = vrot.slane %v3646_v13, 2  ;;  %2875 = vmatpush3.msra.mxu0 %v1812_v12  ;;  %1932 = vmatprep.mubr.f32.mxu0 %v3646_v13  ;;  %v1758_v30 = vsel %vm614_vm1, %v1756_v31, %v1757_v21  ;;  %v1748_v55 = vsel %vm597_vm2, %v1746_v53, %v1747_v56  ;;  %v2232_v31 = vld [vmem:[#allocation13 + $0x2f0] sm:$0xff]  ;;  %v2153_v53 = vld [vmem:[#allocation13 + $0x78] sm:$0xff] }
 0x64e   :  { %2876 = vmatprep.subr.mxu0 %v1827_v14  ;;  %1933 = vmatmul.mubr.f32.gmra.mxu0 %v3643_v10 }
 0x64f   :  { %2877 = vmatpush3.msra.mxu0 %v1811_v16  ;;  %v1751_v26 = vsel %vm597_vm2, %v1749_v15, %v1750_v24  ;;  %v1761_v28 = vsel %vm614_vm1, %v1759_v17, %v1760_v27 }
 0x650   :  { %2878 = vmatprep.subr.mxu0 %v1826_v25  ;;  %2002 = vmatprep.mubr.f32.mxu0 %v1751_v26  ;;  %v2233_v25 = vld [vmem:[#allocation13 + $0x2f8] sm:$0xff]  ;;  %v2167_v26 = vld [vmem:[#allocation13 + $0xe8] sm:$0xff] }
 0x651   :  { %2879 = vmatpush3.msra.mxu0 %v1810_v29  ;;  %2077 = vmatprep.mubr.f32.mxu1 %v1761_v28  ;;  %v2168_v29 = vld [vmem:[#allocation13 + $0xf0] sm:$0xff]  ;;  %v2231_v28 = vld [vmem:[#allocation13 + $0x2e8] sm:$0xff] }
 0x652   :  { %2880 = vmatprep.subr.mxu0 %v1825_v32  ;;  %2078 = vmatmul.mubr.f32.vlgmr.msra.gmra.mxu1 %v1758_v30  ;;  %v2166_v32 = vld [vmem:[#allocation13 + $0xe0] sm:$0xff]  ;;  %v2165_v30 = vld [vmem:[#allocation13 + $0xd8] sm:$0xff] }
 0x653   :  { %2881 = vmatpush3.msra.mxu0 %v1809_v22  ;;  %2082 = vmatprep.mubr.f32.mxu1 %v1760_v27  ;;  %v2169_v27 = vld [vmem:[#allocation13 + $0xf8] sm:$0xff]  ;;  %v2230_v22 = vld [vmem:[#allocation13 + $0x2e0] sm:$0xff] }
 0x654   :  { %2882 = vmatprep.subr.mxu0 %v1824_v33  ;;  %2356 = vmatprep.subr.mxu1 %v2233_v25  ;;  %v2229_v33 = vld [vmem:[#allocation13 + $0x2d8] sm:$0xff]  ;;  %v2204_v25 = vld [vmem:[#allocation13 + $0x210] sm:$0xff] }
 0x655   :  { %2883 = vmatpush3.msra.mxu0 %v1808_v0  ;;  %2357 = vmatpush1.msra.mxu1 %v2232_v31  ;;  %v2164_v0 = vld [vmem:[#allocation13 + $0xd0] sm:$0xff] }
 0x656   :  { %2884 = vmatprep.subr.mxu0 %v1823_v35  ;;  %2083 = vmatmul.mubr.f32.gmra.mxu1 %v1757_v21  ;;  %v2228_v35 = vld [vmem:[#allocation13 + $0x2d0] sm:$0xff] }
 0x657   :  { %2885 = vmatpush3.msra.mxu0 %v1807_v36  ;;  %2358 = vmatprep.subr.mxu1 %v2231_v28  ;;  %v2163_v36 = vld [vmem:[#allocation13 + $0xc8] sm:$0xff] }
 0x658   :  { %2886 = vmatprep.subr.mxu0 %v1822_v38  ;;  %2359 = vmatpush1.msra.mxu1 %v2230_v22  ;;  %v2227_v38 = vld [vmem:[#allocation13 + $0x2c8] sm:$0xff] }
 0x659   :  { %2887 = vmatpush3.msra.mxu0 %v1806_v20  ;;  %2360 = vmatprep.subr.mxu1 %v2229_v33  ;;  %v2162_v20 = vld [vmem:[#allocation13 + $0xc0] sm:$0xff] }
 0x65a   :  { %2888 = vmatprep.subr.mxu0 %v1821_v39  ;;  %v2226_v39 = vld [vmem:[#allocation13 + $0x2c0] sm:$0xff]  ;;  %2361 = vmatpush1.msra.mxu1 %v2228_v35  ;;  %v2139_v35 = vld [vmem:[#allocation13 + $0x8] sm:$0xff] }
 0x65b   :  { %2889 = vmatpush3.msra.mxu0 %v1805_v40  ;;  %v2161_v40 = vld [vmem:[#allocation13 + $0xb8] sm:$0xff]  ;;  %2362 = vmatprep.subr.mxu1 %v2227_v38 }
 0x65c   :  { %2890 = vmatprep.subr.mxu0 %v1820_v41  ;;  %v2225_v41 = vld [vmem:[#allocation13 + $0x2b8] sm:$0xff]  ;;  %2363 = vmatpush1.msra.mxu1 %v2226_v39  ;;  %v2199_v39 = vld [vmem:[#allocation13 + $0x1e8] sm:$0xff] }
 0x65d   :  { %2891 = vmatpush3.msra.mxu0 %v1804_v42  ;;  %v2160_v42 = vld [vmem:[#allocation13 + $0xb0] sm:$0xff]  ;;  %2364 = vmatprep.subr.mxu1 %v2225_v41  ;;  %v2201_v38 = vld [vmem:[#allocation13 + $0x1f8] sm:$0xff]  ;;  %v2198_v41 = vld [vmem:[#allocation13 + $0x1e0] sm:$0xff] }
 0x65e   :  { %2892 = vmatprep.subr.mxu0 %v1819_v43  ;;  %v2224_v43 = vld [vmem:[#allocation13 + $0x2b0] sm:$0xff] }
 0x65f   :  { %2893 = vmatpush3.msra.mxu0 %v1803_v44  ;;  %v2159_v44 = vld [vmem:[#allocation13 + $0xa8] sm:$0xff]  ;;  %2365 = vmatpush1.msra.mxu1 %v2224_v43  ;;  %v2197_v43 = vld [vmem:[#allocation13 + $0x1d8] sm:$0xff] }
 0x660   :  { %2894 = vmatprep.subr.mxu0 %v1818_v45  ;;  %v2223_v45 = vld [vmem:[#allocation13 + $0x2a8] sm:$0xff] }
 0x661   :  { %2895 = vmatpush3.msra.mxu0 %v1802_v46  ;;  %v2158_v46 = vld [vmem:[#allocation13 + $0xa0] sm:$0xff]  ;;  %2366 = vmatprep.subr.mxu1 %v2223_v45  ;;  %v2196_v45 = vld [vmem:[#allocation13 + $0x1d0] sm:$0xff] }
 0x662   :  { %2896 = vmatprep.subr.mxu0 %v1817_v47  ;;  %v2222_v47 = vld [vmem:[#allocation13 + $0x2a0] sm:$0xff] }
 0x663   :  { %2897 = vmatpush3.msra.mxu0 %v1801_v48  ;;  %v2157_v48 = vld [vmem:[#allocation13 + $0x98] sm:$0xff]  ;;  %2367 = vmatpush1.msra.mxu1 %v2222_v47  ;;  %v2195_v47 = vld [vmem:[#allocation13 + $0x1c8] sm:$0xff] }
 0x664   :  { %2898 = vmatprep.subr.mxu0 %v1816_v49  ;;  %v2221_v49 = vld [vmem:[#allocation13 + $0x298] sm:$0xff] }
 0x665   :  { %2899 = vmatpush3.msra.mxu0 %v1800_v50  ;;  %v2156_v50 = vld [vmem:[#allocation13 + $0x90] sm:$0xff]  ;;  %2368 = vmatprep.subr.mxu1 %v2221_v49  ;;  %v2194_v49 = vld [vmem:[#allocation13 + $0x1c0] sm:$0xff] }
 0x666   :  { %2900 = vmatprep.subr.mxu0 %v1815_v57  ;;  %v2220_v57 = vld [vmem:[#allocation13 + $0x290] sm:$0xff] }
 0x667   :  { %2901 = vmatpush3.msra.mxu0 %v1799_v51  ;;  %v2155_v51 = vld [vmem:[#allocation13 + $0x88] sm:$0xff]  ;;  %2369 = vmatpush1.msra.mxu1 %v2220_v57  ;;  %v2193_v57 = vld [vmem:[#allocation13 + $0x1b8] sm:$0xff] }
 0x668   :  { %2902 = vmatprep.subr.mxu0 %v1814_v59  ;;  %v2154_v59 = vld [vmem:[#allocation13 + $0x80] sm:$0xff] }
 0x669   :  { %2903 = vmatpush3.msra.mxu0 %v1798_v52  ;;  %v2218_v52 = vld [vmem:[#allocation13 + $0x280] sm:$0xff] }
 0x66a   :  { %2003 = vmatmul.mubr.f32.vlgmr.msra.gmra.mxu0 %v1748_v55  ;;  %2279 = vmatprep.subr.mxu0 %v2169_v27  ;;  %v2217_v55 = vld [vmem:[#allocation13 + $0x278] sm:$0xff]  ;;  %v2140_v27 = vld [vmem:[#allocation13 + $0x10] sm:$0xff] }
 0x66b   :  { %2007 = vmatprep.mubr.f32.mxu0 %v1750_v24  ;;  %2280 = vmatpush1.msra.mxu0 %v2168_v29 }
 0x66c   :  { %2281 = vmatprep.subr.mxu0 %v2167_v26 }
 0x66d   :  { %2282 = vmatpush1.msra.mxu0 %v2166_v32 }
 0x66e   :  { %2008 = vmatmul.mubr.f32.gmra.mxu0 %v1747_v56  ;;  %2283 = vmatprep.subr.mxu0 %v2165_v30  ;;  %v2219_v56 = vld [vmem:[#allocation13 + $0x288] sm:$0xff] }
 0x66f   :  { %2284 = vmatpush1.msra.mxu0 %v2164_v0  ;;  %2370 = vmatprep.subr.mxu1 %v2219_v56  ;;  %v2192_v56 = vld [vmem:[#allocation13 + $0x1b0] sm:$0xff] }
 0x670   :  { %2285 = vmatprep.subr.mxu0 %v2163_v36  ;;  %2371 = vmatpush1.msra.mxu1 %v2218_v52  ;;  %v2202_v36 = vld [vmem:[#allocation13 + $0x200] sm:$0xff]  ;;  %v2191_v52 = vld [vmem:[#allocation13 + $0x1a8] sm:$0xff] }
 0x671   :  { %2286 = vmatpush1.msra.mxu0 %v2162_v20  ;;  %2372 = vmatprep.subr.mxu1 %v2217_v55  ;;  %v2265_v20 = vld [vmem:[#allocation13 + $0x3f8] sm:$0xff]  ;;  %v2190_v55 = vld [vmem:[#allocation13 + $0x1a0] sm:$0xff] }
 0x672   :  { %2287 = vmatprep.subr.mxu0 %v2161_v40  ;;  %v2263_v40 = vld [vmem:[#allocation13 + $0x3e8] sm:$0xff] }
 0x673   :  { %2288 = vmatpush1.msra.mxu0 %v2160_v42  ;;  %v2262_v42 = vld [vmem:[#allocation13 + $0x3e0] sm:$0xff] }
 0x674   :  { %2289 = vmatprep.subr.mxu0 %v2159_v44  ;;  %v2261_v44 = vld [vmem:[#allocation13 + $0x3d8] sm:$0xff] }
 0x675   :  { %2290 = vmatpush1.msra.mxu0 %v2158_v46  ;;  %v2260_v46 = vld [vmem:[#allocation13 + $0x3d0] sm:$0xff] }
 0x676   :  { %2291 = vmatprep.subr.mxu0 %v2157_v48  ;;  %v2259_v48 = vld [vmem:[#allocation13 + $0x3c8] sm:$0xff] }
 0x677   :  { %2292 = vmatpush1.msra.mxu0 %v2156_v50  ;;  %v2258_v50 = vld [vmem:[#allocation13 + $0x3c0] sm:$0xff] }
 0x678   :  { %2293 = vmatprep.subr.mxu0 %v2155_v51  ;;  %v2257_v51 = vld [vmem:[#allocation13 + $0x3b8] sm:$0xff] }
 0x679   :  { %2294 = vmatpush1.msra.mxu0 %v2154_v59  ;;  %v2256_v59 = vld [vmem:[#allocation13 + $0x3b0] sm:$0xff] }
 0x67a   :  { %2295 = vmatprep.subr.mxu0 %v2153_v53  ;;  %v2255_v53 = vld [vmem:[#allocation13 + $0x3a8] sm:$0xff] }
 0x70a   :  { %v2866_v61 = vpop.f32.mrf.mxu0 }
 0x70c   :  { %v2867_v63 = vpop.f32.mrf.mxu0 }
 0x70d   :  { %v2868_v60 = vadd.f32 %v2867_v63, %v2866_v61  ;;  %v2152_v61 = vld [vmem:[#allocation13 + $0x70] sm:$0xff] }
 0x70e   :  { %v2869_v54 = vpop.f32.mrf.mxu0  ;;  %v2216_v63 = vld [vmem:[#allocation13 + $0x270] sm:$0xff]  ;;  %2296 = vmatpush1.msra.mxu0 %v2152_v61  ;;  %v2254_v61 = vld [vmem:[#allocation13 + $0x3a0] sm:$0xff] }
 0x70f   :  { %v1930_v5 = vadd.f32 %v2868_v60, %v1862_v19  ;;  %2373 = vmatpush1.msra.mxu1 %v2216_v63  ;;  %v2149_v60 = vld [vmem:[#allocation13 + $0x58] sm:$0xff] }
 0x710   :  { %v2870_v1 = vpop.f32.mrf.mxu0  ;;  %v2189_v63 = vld [vmem:[#allocation13 + $0x198] sm:$0xff] }
 0x711   :  { %v2871_v6 = vadd.f32 %v2870_v1, %v2869_v54  ;;  %v2151_v54 = vld [vmem:[#allocation13 + $0x68] sm:$0xff]  ;;  %v2150_v1 = vld [vmem:[#allocation13 + $0x60] sm:$0xff] }
 0x712   :  { %v2942_v58 = vpop.f32.mrf.mxu1  ;;  %2297 = vmatprep.subr.mxu0 %v2151_v54  ;;  %v2253_v54 = vld [vmem:[#allocation13 + $0x398] sm:$0xff] }
 0x713   :  { %v1935_v23 = vadd.f32 %v2871_v6, %v1862_v19  ;;  %v2213_v19 = vld [vmem:[#allocation13 + $0x258] sm:$0xff]  ;;  %2298 = vmatpush1.msra.mxu0 %v2150_v1  ;;  %v2146_v6 = vld [vmem:[#allocation13 + $0x40] sm:$0xff]  ;;  %v2252_v1 = vld [vmem:[#allocation13 + $0x390] sm:$0xff] }
 0x714   :  { %v2943_v3 = vpop.f32.mrf.mxu1  ;;  %2299 = vmatprep.subr.mxu0 %v2149_v60  ;;  %v2251_v60 = vld [vmem:[#allocation13 + $0x388] sm:$0xff] }
 0x715   :  { %v2944_v9 = vadd.f32 %v2943_v3, %v2942_v58  ;;  %v2215_v58 = vld [vmem:[#allocation13 + $0x268] sm:$0xff]  ;;  %v2214_v3 = vld [vmem:[#allocation13 + $0x260] sm:$0xff] }
 0x716   :  { %v2945_v18 = vpop.f32.mrf.mxu1  ;;  %2374 = vmatprep.subr.mxu1 %v2215_v58  ;;  %v2188_v58 = vld [vmem:[#allocation13 + $0x190] sm:$0xff] }
 0x717   :  { %2375 = vmatpush1.msra.mxu1 %v2214_v3  ;;  %v2187_v3 = vld [vmem:[#allocation13 + $0x188] sm:$0xff] }
 0x718   :  { %v2946_v10 = vpop.f32.mrf.mxu1  ;;  %2376 = vmatprep.subr.mxu1 %v2213_v19  ;;  %v2186_v19 = vld [vmem:[#allocation13 + $0x180] sm:$0xff] }
 0x719   :  { %v2947_v14 = vadd.f32 %v2946_v10, %v2945_v18  ;;  %v2212_v18 = vld [vmem:[#allocation13 + $0x250] sm:$0xff] }
 0x71a   :  { %2377 = vmatpush1.msra.mxu1 %v2212_v18  ;;  %v2208_v10 = vld [vmem:[#allocation13 + $0x230] sm:$0xff]  ;;  %v2185_v18 = vld [vmem:[#allocation13 + $0x178] sm:$0xff] }
 0x72a   :  { %v2904_v62 = vpop.f32.mrf.mxu0 }
 0x72c   :  { %v2905_v4 = vpop.f32.mrf.mxu0 }
 0x72d   :  { %v2906_v7 = vadd.f32 %v2905_v4, %v2904_v62  ;;  %v2148_v62 = vld [vmem:[#allocation13 + $0x50] sm:$0xff]  ;;  %v2147_v4 = vld [vmem:[#allocation13 + $0x48] sm:$0xff] }
 0x72e   :  { %v2907_v8 = vpop.f32.mrf.mxu0  ;;  %2300 = vmatpush1.msra.mxu0 %v2148_v62  ;;  %v2250_v62 = vld [vmem:[#allocation13 + $0x380] sm:$0xff] }
 0x72f   :  { %v2005_v2 = vadd.f32 %v2906_v7, %v1930_v5  ;;  %v2211_v5 = vld [vmem:[#allocation13 + $0x248] sm:$0xff]  ;;  %v2210_v7 = vld [vmem:[#allocation13 + $0x240] sm:$0xff]  ;;  %2301 = vmatprep.subr.mxu0 %v2147_v4  ;;  %v2249_v4 = vld [vmem:[#allocation13 + $0x378] sm:$0xff] }
 0x730   :  { %v2908_v11 = vpop.f32.mrf.mxu0  ;;  %2378 = vmatprep.subr.mxu1 %v2211_v5  ;;  %2302 = vmatpush1.msra.mxu0 %v2146_v6  ;;  %v2184_v5 = vld [vmem:[#allocation13 + $0x170] sm:$0xff] }
 0x731   :  { %v2909_v12 = vadd.f32 %v2908_v11, %v2907_v8  ;;  %v3664_v13 = vadd.f32 %v2944_v9, %v2005_v2  ;;  %v2145_v8 = vld [vmem:[#allocation13 + $0x38] sm:$0xff]  ;;  %v2144_v2 = vld [vmem:[#allocation13 + $0x30] sm:$0xff]  ;;  %2379 = vmatpush1.msra.mxu1 %v2210_v7  ;;  %v2143_v11 = vld [vmem:[#allocation13 + $0x28] sm:$0xff] }
 0x732   :  { %v2209_v9 = vld [vmem:[#allocation13 + $0x238] sm:$0xff]  ;;  %2303 = vmatprep.subr.mxu0 %v2145_v8  ;;  %v2248_v6 = vld [vmem:[#allocation13 + $0x370] sm:$0xff]  ;;  %v2183_v7 = vld [vmem:[#allocation13 + $0x168] sm:$0xff] }
 0x733   :  { %v2010_v15 = vadd.f32 %v2909_v12, %v1935_v23  ;;  %v2088_v16 = vmax.f32 %v3664_v13, 0.0  ;;  %v2207_v23 = vld [vmem:[#allocation13 + $0x228] sm:$0xff]  ;;  %2380 = vmatprep.subr.mxu1 %v2209_v9  ;;  %v2142_v12 = vld [vmem:[#allocation13 + $0x20] sm:$0xff]  ;;  %2304 = vmatpush1.msra.mxu0 %v2144_v2 }
 0x734   :  { %2381 = vmatpush1.msra.mxu1 %v2208_v10  ;;  %2305 = vmatprep.subr.mxu0 %v2143_v11  ;;  %v2203_v13 = vld [vmem:[#allocation13 + $0x208] sm:$0xff]  ;;  %v2182_v9 = vld [vmem:[#allocation13 + $0x160] sm:$0xff]  ;;  %v2181_v10 = vld [vmem:[#allocation13 + $0x158] sm:$0xff] }
 0x735   :  { %2092 = vadd.xlane.f32.xlu1 %v2088_v16  ;;  %v3669_v17 = vadd.f32 %v2947_v14, %v2010_v15  ;;  %v2206_v14 = vld [vmem:[#allocation13 + $0x220] sm:$0xff]  ;;  %v2141_v15 = vld [vmem:[#allocation13 + $0x18] sm:$0xff]  ;;  %2382 = vmatprep.subr.mxu1 %v2207_v23  ;;  %v2247_v8 = vld [vmem:[#allocation13 + $0x368] sm:$0xff] }
 0x736   :  { %2306 = vmatpush1.msra.mxu0 %v2142_v12  ;;  %2383 = vmatpush1.msra.mxu1 %v2206_v14  ;;  %v2246_v2 = vld [vmem:[#allocation13 + $0x360] sm:$0xff]  ;;  %v2245_v11 = vld [vmem:[#allocation13 + $0x358] sm:$0xff]  ;;  %v2180_v23 = vld [vmem:[#allocation13 + $0x150] sm:$0xff] }
 0x737   :  { %v2089_v21 = vmax.f32 %v3669_v17, 0.0  ;;  %2307 = vmatprep.subr.mxu0 %v2141_v15  ;;  %v2200_v17 = vld [vmem:[#allocation13 + $0x1f0] sm:$0xff]  ;;  %v2179_v14 = vld [vmem:[#allocation13 + $0x148] sm:$0xff] }
 0x738   :  { %2308 = vmatpush1.msra.mxu0 %v2140_v27  ;;  %v2244_v12 = vld [vmem:[#allocation13 + $0x350] sm:$0xff]  ;;  %v2243_v15 = vld [vmem:[#allocation13 + $0x348] sm:$0xff]  ;;  %v2242_v27 = vld [vmem:[#allocation13 + $0x340] sm:$0xff] }
 0x739   :  { %v2094_v24 = vsel %vm614_vm1, %v2089_v21, 0.0  ;;  %2309 = vmatprep.subr.mxu0 %v2139_v35  ;;  %v2173_v35 = vld [vmem:[#allocation13 + $0x118] sm:$0xff] }
 0x73a   :  { %2095 = vadd.xlane.f32.xlu0 %v2094_v24  ;;  %v2205_v24 = vld [vmem:[#allocation13 + $0x218] sm:$0xff] }
 0x73b   :  { %2384 = vmatprep.subr.mxu1 %v2205_v24  ;;  %v2178_v24 = vld [vmem:[#allocation13 + $0x140] sm:$0xff] }
 0x73c   :  { %2385 = vmatpush1.msra.mxu1 %v2204_v25  ;;  %v2177_v25 = vld [vmem:[#allocation13 + $0x138] sm:$0xff] }
 0x73d   :  { %2386 = vmatprep.subr.mxu1 %v2203_v13  ;;  %v2237_v13 = vld [vmem:[#allocation13 + $0x318] sm:$0xff] }
 0x73e   :  { %2387 = vmatpush1.msra.mxu1 %v2202_v36  ;;  %v2236_v36 = vld [vmem:[#allocation13 + $0x310] sm:$0xff] }
 0x73f   :  { %2388 = vmatprep.subr.mxu1 %v2265_v20  ;;  %v2235_v20 = vld [vmem:[#allocation13 + $0x308] sm:$0xff] }
 0x7be   :  { %v2093_v29 = vpop.xlane.xlu1 %2092 }
 0x7bf   :  { %v2097_v31 = vmul.f32 0.0078125, %v2093_v29  ;;  %v2241_v29 = vld [vmem:[#allocation13 + $0x338] sm:$0xff] }
 0x7c1   :  { %v3677_v26 = vsub.f32 %v2088_v16, %v2097_v31  ;;  %v2138_v16 = vld [vmem:[#allocation13] sm:$0xff]  ;;  %v2176_v31 = vld [vmem:[#allocation13 + $0x130] sm:$0xff] }
 0x7c2   :  { %2310 = vmatpush1.msra.mxu0 %v2138_v16  ;;  %v2172_v16 = vld [vmem:[#allocation13 + $0x110] sm:$0xff] }
 0x7c3   :  { %v2096_v28 = vpop.xlane.xlu0 %2095  ;;  %v2101_v32 = vmul.f32 %v3677_v26, %v3677_v26  ;;  %2311 = vmatprep.subr.mxu0 %v2201_v38  ;;  %v2171_v38 = vld [vmem:[#allocation13 + $0x108] sm:$0xff] }
 0x7c4   :  { %v2098_v22 = vmul.f32 0.0078125, %v2096_v28  ;;  %2312 = vmatpush2.msra.mxu0 %v2200_v17  ;;  %v2240_v28 = vld [vmem:[#allocation13 + $0x330] sm:$0xff]  ;;  %v2170_v17 = vld [vmem:[#allocation13 + $0x100] sm:$0xff] }
 0x7c5   :  { %2103 = vadd.xlane.f32.xlu0 %v2101_v32  ;;  %2313 = vmatprep.subr.mxu0 %v2199_v39  ;;  %v2175_v32 = vld [vmem:[#allocation13 + $0x128] sm:$0xff] }
 0x7c6   :  { %v3683_v30 = vsub.f32 %v2089_v21, %v2098_v22  ;;  %v2264_v21 = vld [vmem:[#allocation13 + $0x3f0] sm:$0xff]  ;;  %2314 = vmatpush2.msra.mxu0 %v2198_v41  ;;  %v2239_v22 = vld [vmem:[#allocation13 + $0x328] sm:$0xff] }
 0x7c7   :  { %2389 = vmatpush2.msra.mxu1 %v2264_v21  ;;  %2315 = vmatprep.subr.mxu0 %v2197_v43  ;;  %v2234_v21 = vld [vmem:[#allocation13 + $0x300] sm:$0xff] }
 0x7c8   :  { %v2102_v33 = vmul.f32 %v3683_v30, %v3683_v30  ;;  %2390 = vmatprep.subr.mxu1 %v2263_v40  ;;  %2316 = vmatpush2.msra.mxu0 %v2196_v45 }
 0x7c9   :  { %2391 = vmatpush2.msra.mxu1 %v2262_v42  ;;  %2317 = vmatprep.subr.mxu0 %v2195_v47  ;;  %v2090_v47 = vld [vmem:[#allocation16 + $0x100] ss:$0 sm:$0xff] }
 0x7ca   :  { %v2105_v0 = vsel %vm614_vm1, %v2102_v33, 0.0  ;;  %2392 = vmatprep.subr.mxu1 %v2261_v44  ;;  %2318 = vmatpush2.msra.mxu0 %v2194_v49  ;;  %v2174_v33 = vld [vmem:[#allocation13 + $0x120] sm:$0xff] }
 0x7cb   :  { %2106 = vadd.xlane.f32.xlu1 %v2105_v0  ;;  %2393 = vmatpush2.msra.mxu1 %v2260_v46  ;;  %v2238_v0 = vld [vmem:[#allocation13 + $0x320] sm:$0xff] }
 0x7cc   :  { %2394 = vmatprep.subr.mxu1 %v2259_v48  ;;  %2319 = vmatprep.subr.mxu0 %v2193_v57  ;;  %v2091_v49 = vld [vmem:[#allocation16 + $0x120] ss:$0 sm:$0xff] }
 0x7cd   :  { %2395 = vmatpush2.msra.mxu1 %v2258_v50  ;;  %2320 = vmatpush2.msra.mxu0 %v2192_v56 }
 0x7ce   :  { %2396 = vmatprep.subr.mxu1 %v2257_v51  ;;  %2321 = vmatprep.subr.mxu0 %v2191_v52 }
 0x7cf   :  { %2397 = vmatpush2.msra.mxu1 %v2256_v59  ;;  %2322 = vmatpush2.msra.mxu0 %v2190_v55 }
 0x7d0   :  { %2398 = vmatprep.subr.mxu1 %v2255_v53  ;;  %2323 = vmatprep.subr.mxu0 %v2189_v63 }
 0x7d1   :  { %2399 = vmatpush2.msra.mxu1 %v2254_v61  ;;  %2324 = vmatpush2.msra.mxu0 %v2188_v58 }
 0x7d2   :  { %2400 = vmatprep.subr.mxu1 %v2253_v54  ;;  %2325 = vmatprep.subr.mxu0 %v2187_v3 }
 0x7d3   :  { %2401 = vmatpush2.msra.mxu1 %v2252_v1  ;;  %2326 = vmatpush2.msra.mxu0 %v2186_v19 }
 0x7d4   :  { %2402 = vmatprep.subr.mxu1 %v2251_v60  ;;  %2327 = vmatprep.subr.mxu0 %v2185_v18 }
 0x7d5   :  { %2403 = vmatpush2.msra.mxu1 %v2250_v62  ;;  %2328 = vmatpush2.msra.mxu0 %v2184_v5 }
 0x7d6   :  { %2404 = vmatprep.subr.mxu1 %v2249_v4  ;;  %2329 = vmatprep.subr.mxu0 %v2183_v7 }
 0x7d7   :  { %2405 = vmatpush2.msra.mxu1 %v2248_v6  ;;  %2330 = vmatpush2.msra.mxu0 %v2182_v9 }
 0x7d8   :  { %2406 = vmatprep.subr.mxu1 %v2247_v8  ;;  %2331 = vmatprep.subr.mxu0 %v2181_v10 }
 0x7d9   :  { %2407 = vmatpush2.msra.mxu1 %v2246_v2  ;;  %2332 = vmatpush2.msra.mxu0 %v2180_v23 }
 0x7da   :  { %2408 = vmatprep.subr.mxu1 %v2245_v11  ;;  %2333 = vmatprep.subr.mxu0 %v2179_v14 }
 0x7db   :  { %2409 = vmatpush2.msra.mxu1 %v2244_v12  ;;  %2334 = vmatpush2.msra.mxu0 %v2178_v24 }
 0x7dc   :  { %2410 = vmatprep.subr.mxu1 %v2243_v15  ;;  %2335 = vmatprep.subr.mxu0 %v2177_v25 }
 0x7dd   :  { %2411 = vmatpush2.msra.mxu1 %v2242_v27  ;;  %2336 = vmatpush2.msra.mxu0 %v2176_v31 }
 0x7de   :  { %2412 = vmatprep.subr.mxu1 %v2241_v29  ;;  %2337 = vmatprep.subr.mxu0 %v2175_v32 }
 0x7df   :  { %2413 = vmatpush2.msra.mxu1 %v2240_v28  ;;  %2338 = vmatpush2.msra.mxu0 %v2174_v33 }
 0x7e0   :  { %2414 = vmatprep.subr.mxu1 %v2239_v22  ;;  %2339 = vmatprep.subr.mxu0 %v2173_v35 }
 0x7e1   :  { %2415 = vmatpush2.msra.mxu1 %v2238_v0  ;;  %2340 = vmatpush2.msra.mxu0 %v2172_v16  ;;  %v2493_v16 = vld [vmem:[#allocation14 + $0x78] sm:$0xff] }
 0x7e2   :  { %2416 = vmatprep.subr.mxu1 %v2237_v13  ;;  %2341 = vmatprep.subr.mxu0 %v2171_v38 }
 0x7e3   :  { %2417 = vmatpush2.msra.mxu1 %v2236_v36  ;;  %2342 = vmatpush2.msra.mxu0 %v2170_v17 }
 0x7e4   :  { %2418 = vmatprep.subr.mxu1 %v2235_v20  ;;  %2984 = vmatprep.subr.mxu0 %v2493_v16 }
 0x7e5   :  { %2419 = vmatpush2.msra.mxu1 %v2234_v21 }
 0x84e   :  { %v2104_v39 = vpop.xlane.xlu0 %2103 }
 0x84f   :  { %v2108_v40 = vmul.f32 0.0078125, %v2104_v39 }
 0x851   :  { %v2110_v41 = vadd.f32 1e-05, %v2108_v40 }
 0x853   :  { %3120 = vrsqrt.f32 %v2110_v41 }
 0x854   :  { %v2107_v42 = vpop.xlane.xlu1 %2106 }
 0x855   :  { %v2109_v43 = vmul.f32 0.0078125, %v2107_v42  ;;  %v2492_v42 = vld [vmem:[#allocation14 + $0x70] sm:$0xff] }
 0x857   :  { %v2111_v44 = vadd.f32 1e-05, %v2109_v43  ;;  %v2491_v43 = vld [vmem:[#allocation14 + $0x68] sm:$0xff] }
 0x859   :  { %3122 = vrsqrt.f32 %v2111_v44  ;;  %v2490_v44 = vld [vmem:[#allocation14 + $0x60] sm:$0xff] }
 0x860   :  { %v3121_v45 = vpop.eup %3120 }
 0x861   :  { %v2114_v46 = vmul.f32 %v3121_v45, %v3677_v26  ;;  %v2489_v45 = vld [vmem:[#allocation14 + $0x58] sm:$0xff] }
 0x863   :  { %v2116_v48 = vmul.f32 %v2114_v46, %v2090_v47  ;;  %v2488_v46 = vld [vmem:[#allocation14 + $0x50] sm:$0xff] }
 0x865   :  { %v2118_v51 = vadd.f32 %v2116_v48, %v2091_v49  ;;  %v2486_v48 = vld [vmem:[#allocation14 + $0x40] sm:$0xff] }
 0x866   :  { %v3123_v50 = vpop.eup %3122 }
 0x867   :  { %v2115_v57 = vmul.f32 %v3123_v50, %v3683_v30  ;;  %v2122_v52 = vrot.slane %v2118_v51, 1  ;;  %v2133_v53 = vrot.slane %v2118_v51, 3  ;;  %v2127_v63 = vrot.slane %v2118_v51, 2  ;;  %v2267_v30 = vld [vmem:[#allocation16 + $0x140] ss:$8 sm:$0x3] }
 0x868   :  { %v2276_v3 = vrot.slane %v2267_v30, %v3517_v37  ;;  %v2272_v25 = vrot.slane %v2267_v30, %v3514_v34  ;;  %v2484_v50 = vld [vmem:[#allocation14 + $0x30] sm:$0xff]  ;;  %v2447_v30 = vld [vmem:[#allocation16 + $0x180] ss:$0 sm:$0xff] }
 0x869   :  { %v2117_v56 = vmul.f32 %v2115_v57, %v2090_v47  ;;  %v2487_v47 = vld [vmem:[#allocation14 + $0x48] sm:$0xff] }
 0x86a   :  { %v2483_v57 = vld [vmem:[#allocation14 + $0x28] sm:$0xff] }
 0x86b   :  { %v2119_v59 = vadd.f32 %v2117_v56, %v2091_v49  ;;  %v2485_v49 = vld [vmem:[#allocation14 + $0x38] sm:$0xff] }
 0x86c   :  { %v2481_v56 = vld [vmem:[#allocation14 + $0x18] sm:$0xff] }
 0x86d   :  { %v2123_v55 = vrot.slane %v2119_v59, 1  ;;  %v2134_v61 = vrot.slane %v2119_v59, 3  ;;  %v2128_v54 = vrot.slane %v2119_v59, 2 }
 0x86f   :  { %v2124_v58 = vsel %vm597_vm2, %v2122_v52, %v2123_v55  ;;  %v2135_v1 = vsel %vm2132_vm4, %v2133_v53, %v2134_v61  ;;  %v2129_v26 = vsel %vm614_vm1, %v2127_v63, %v2128_v54  ;;  %v2479_v52 = vld [vmem:[#allocation14 + $0x8] sm:$0xff]  ;;  %v2478_v53 = vld [vmem:[#allocation14] sm:$0xff] }
 0x870   :  { %2343 = vmatprep.mubr.f32.mxu0 %v2124_v58  ;;  %2420 = vmatprep.mubr.f32.mxu1 %v2135_v1 }
 0x871   :  { %2344 = vmatmul.mubr.f32.vlgmr.msra.gmra.mxu0 %v2118_v51  ;;  %2421 = vmatmul.mubr.f32.vlgmr.msra.gmra.mxu1 %v2129_v26  ;;  %v2482_v51 = vld [vmem:[#allocation14 + $0x20] sm:$0xff] }
 0x872   :  { %2349 = vmatprep.mubr.f32.mxu0 %v2123_v55  ;;  %2426 = vmatprep.mubr.f32.mxu1 %v2134_v61 }
 0x873   :  { %2985 = vmatpush3.msra.mxu0 %v2493_v16 }
 0x874   :  { %2986 = vmatprep.subr.mxu0 %v2492_v42 }
 0x875   :  { %2350 = vmatmul.mubr.f32.gmra.mxu0 %v2119_v59  ;;  %2427 = vmatmul.mubr.f32.gmra.mxu1 %v2128_v54  ;;  %v2480_v59 = vld [vmem:[#allocation14 + $0x10] sm:$0xff] }
 0x876   :  { %2987 = vmatpush3.msra.mxu0 %v2492_v42 }
 0x877   :  { %2988 = vmatprep.subr.mxu0 %v2491_v43 }
 0x878   :  { %2989 = vmatpush3.msra.mxu0 %v2491_v43 }
 0x879   :  { %2990 = vmatprep.subr.mxu0 %v2490_v44 }
 0x87a   :  { %2991 = vmatpush3.msra.mxu0 %v2490_v44 }
 0x87b   :  { %2992 = vmatprep.subr.mxu0 %v2489_v45 }
 0x87c   :  { %2993 = vmatpush3.msra.mxu0 %v2489_v45 }
 0x87d   :  { %2994 = vmatprep.subr.mxu0 %v2488_v46 }
 0x87e   :  { %2995 = vmatpush3.msra.mxu0 %v2488_v46 }
 0x87f   :  { %2996 = vmatprep.subr.mxu0 %v2487_v47 }
 0x880   :  { %2997 = vmatpush3.msra.mxu0 %v2487_v47 }
 0x881   :  { %2998 = vmatprep.subr.mxu0 %v2486_v48 }
 0x882   :  { %2999 = vmatpush3.msra.mxu0 %v2486_v48 }
 0x883   :  { %3000 = vmatprep.subr.mxu0 %v2485_v49 }
 0x884   :  { %3001 = vmatpush3.msra.mxu0 %v2485_v49 }
 0x885   :  { %3002 = vmatprep.subr.mxu0 %v2484_v50 }
 0x886   :  { %3003 = vmatpush3.msra.mxu0 %v2484_v50 }
 0x887   :  { %3004 = vmatprep.subr.mxu0 %v2483_v57 }
 0x888   :  { %3005 = vmatpush3.msra.mxu0 %v2483_v57 }
 0x889   :  { %3006 = vmatprep.subr.mxu0 %v2482_v51 }
 0x88a   :  { %3007 = vmatpush3.msra.mxu0 %v2482_v51 }
 0x88b   :  { %3008 = vmatprep.subr.mxu0 %v2481_v56 }
 0x88c   :  { %3009 = vmatpush3.msra.mxu0 %v2481_v56 }
 0x88d   :  { %3010 = vmatprep.subr.mxu0 %v2480_v59 }
 0x88e   :  { %3011 = vmatpush3.msra.mxu0 %v2480_v59 }
 0x88f   :  { %3012 = vmatprep.subr.mxu0 %v2479_v52 }
 0x890   :  { %3013 = vmatpush3.msra.mxu0 %v2479_v52 }
 0x891   :  { %3014 = vmatprep.subr.mxu0 %v2478_v53 }
 0x892   :  { %3015 = vmatpush3.msra.mxu0 %v2478_v53 }
 0x931   :  { %v2345_v60 = vpop.f32.mrf.mxu0  ;;  %v2422_v19 = vpop.f32.mrf.mxu1 }
 0x932   :  { %v2346_v29 = vadd.f32 %v2345_v60, %v2272_v25  ;;  %v2448_v60 = vld [vmem:[#allocation16 + $0x1a0] ss:$0 sm:$0xff] }
 0x933   :  { %v2347_v62 = vpop.f32.mrf.mxu0  ;;  %v2424_v18 = vpop.f32.mrf.mxu1 }
 0x934   :  { %v2348_v4 = vadd.f32 %v2347_v62, %v2276_v3  ;;  %v2423_v31 = vadd.f32 %v2422_v19, %v2346_v29  ;;  %v2583_v29 = vld [vmem:[#allocation16 + $0x1e0] sm:$0xff] }
 0x935   :  { %v2351_v5 = vpop.f32.mrf.mxu0  ;;  %v2428_v6 = vpop.f32.mrf.mxu1 }
 0x936   :  { %v2425_v7 = vadd.f32 %v2424_v18, %v2348_v4  ;;  %v2352_v28 = vadd.f32 %v2351_v5, %v2272_v25  ;;  %v2584_v25 = vld [vmem:[#allocation16 + $0x200] sm:$0xff] }
 0x937   :  { %v2353_v8 = vpop.f32.mrf.mxu0  ;;  %v2430_v10 = vpop.f32.mrf.mxu1 }
 0x938   :  { %v2433_v9 = vsub.f32 0.0, %v2425_v7  ;;  %v2354_v2 = vadd.f32 %v2353_v8, %v2276_v3  ;;  %v2429_v33 = vadd.f32 %v2428_v6, %v2352_v28  ;;  %v2597_v7 = vld [vmem:[#allocation16 + $0x3a0] sm:$0xff] }
 0x939   :  { %3019 = vmatprep.subr.mxu1 %v2597_v7  ;;  %v2596_v8 = vld [vmem:[#allocation16 + $0x380] sm:$0xff] }
 0x93a   :  { %v2435_v11 = vmul.f32 1.442695, %v2433_v9  ;;  %v2431_v23 = vadd.f32 %v2430_v10, %v2354_v2  ;;  %3020 = vmatpush3.msra.mxu1 %v2597_v7  ;;  %v2595_v9 = vld [vmem:[#allocation16 + $0x360] sm:$0xff] }
 0x93b   :  { %3021 = vmatprep.subr.mxu1 %v2596_v8  ;;  %v2594_v2 = vld [vmem:[#allocation16 + $0x340] sm:$0xff] }
 0x93c   :  { %3124 = vpow2.f32 %v2435_v11  ;;  %v2434_v12 = vsub.f32 0.0, %v2431_v23  ;;  %3022 = vmatpush3.msra.mxu1 %v2596_v8  ;;  %v2593_v10 = vld [vmem:[#allocation16 + $0x320] sm:$0xff] }
 0x93d   :  { %3023 = vmatprep.subr.mxu1 %v2595_v9  ;;  %v2592_v11 = vld [vmem:[#allocation16 + $0x300] sm:$0xff] }
 0x93e   :  { %v2437_v14 = vmul.f32 1.442695, %v2434_v12  ;;  %3024 = vmatpush3.msra.mxu1 %v2595_v9  ;;  %v2591_v23 = vld [vmem:[#allocation16 + $0x2e0] sm:$0xff] }
 0x93f   :  { %3025 = vmatprep.subr.mxu1 %v2594_v2  ;;  %v2590_v12 = vld [vmem:[#allocation16 + $0x2c0] sm:$0xff] }
 0x940   :  { %3126 = vpow2.f32 %v2437_v14  ;;  %3026 = vmatpush3.msra.mxu1 %v2594_v2  ;;  %v2589_v14 = vld [vmem:[#allocation16 + $0x2a0] sm:$0xff] }
 0x941   :  { %3027 = vmatprep.subr.mxu1 %v2593_v10  ;;  %v2598_v28 = vld [vmem:[#allocation16 + $0x3c0] ss:$0 sm:$0xff] }
 0x942   :  { %3028 = vmatpush3.msra.mxu1 %v2593_v10 }
 0x943   :  { %3029 = vmatprep.subr.mxu1 %v2592_v11 }
 0x944   :  { %3030 = vmatpush3.msra.mxu1 %v2592_v11 }
 0x945   :  { %3031 = vmatprep.subr.mxu1 %v2591_v23 }
 0x946   :  { %3032 = vmatpush3.msra.mxu1 %v2591_v23 }
 0x947   :  { %3033 = vmatprep.subr.mxu1 %v2590_v12 }
 0x948   :  { %3034 = vmatpush3.msra.mxu1 %v2590_v12 }
 0x949   :  { %v3125_v15 = vpop.eup %3124  ;;  %3035 = vmatprep.subr.mxu1 %v2589_v14 }
 0x94a   :  { %v2439_v37 = vadd.f32 1.0, %v3125_v15  ;;  %3036 = vmatpush3.msra.mxu1 %v2589_v14  ;;  %v2588_v15 = vld [vmem:[#allocation16 + $0x280] sm:$0xff] }
 0x94b   :  { %3037 = vmatprep.subr.mxu1 %v2588_v15 }
 0x94c   :  { %3128 = vrcp.f32 %v2439_v37  ;;  %v2587_v37 = vld [vmem:[#allocation16 + $0x260] sm:$0xff]  ;;  %3038 = vmatpush3.msra.mxu1 %v2588_v15 }
 0x94d   :  { %v3127_v24 = vpop.eup %3126  ;;  %3039 = vmatprep.subr.mxu1 %v2587_v37 }
 0x94e   :  { %v2440_v27 = vadd.f32 1.0, %v3127_v24  ;;  %v2586_v24 = vld [vmem:[#allocation16 + $0x240] sm:$0xff]  ;;  %3040 = vmatpush3.msra.mxu1 %v2587_v37 }
 0x94f   :  { %3041 = vmatprep.subr.mxu1 %v2586_v24 }
 0x950   :  { %3130 = vrcp.f32 %v2440_v27  ;;  %v2585_v27 = vld [vmem:[#allocation16 + $0x220] sm:$0xff]  ;;  %3042 = vmatpush3.msra.mxu1 %v2586_v24 }
 0x951   :  { %3043 = vmatprep.subr.mxu1 %v2585_v27 }
 0x952   :  { %3044 = vmatpush3.msra.mxu1 %v2585_v27 }
 0x953   :  { %3045 = vmatprep.subr.mxu1 %v2584_v25 }
 0x954   :  { %3046 = vmatpush3.msra.mxu1 %v2584_v25 }
 0x955   :  { %3047 = vmatprep.subr.mxu1 %v2583_v29 }
 0x956   :  { %3048 = vmatpush3.msra.mxu1 %v2583_v29 }
 0x959   :  { %v3129_v32 = vpop.eup %3128 }
 0x95a   :  { %v2445_v22 = vmul.f32 %v3129_v32, %v2423_v31  ;;  %v2582_v31 = vld [vmem:[#allocation16 + $0x1c0] sm:$0xff]  ;;  %v3372_v32 = vmov 0  }
 0x95b   :  { %3049 = vmatprep.subr.mxu1 %v2582_v31  ;;  %3073 = vset.pattern.permute.xlu0 %v3372_v32 }
 0x95c   :  { %2449 = vadd.xlane.f32.xlu0 %v2445_v22  ;;  %3050 = vmatpush3.msra.mxu1 %v2582_v31 }
 0x95d   :  { %v3131_v0 = vpop.eup %3130 }
 0x95e   :  { %v2446_v35 = vmul.f32 %v3131_v0, %v2429_v33 }
 0x960   :  { %v2452_v13 = vsel %vm2451_vm5, %v2446_v35, 0.0 }
 0x961   :  { %2453 = vadd.xlane.f32.xlu1 %v2452_v13 }
 0x9e5   :  { %v2450_v36 = vpop.xlane.xlu0 %2449 }
 0x9e6   :  { %v2455_v38 = vmul.f32 0.0078125, %v2450_v36 }
 0x9e8   :  { %v3695_v34 = vsub.f32 %v2445_v22, %v2455_v38  ;;  %v2494_v22 = vld [vmem:[#allocation16 + $0x160] ss:$0 sm:$0xff] }
 0x9ea   :  { %v2454_v20 = vpop.xlane.xlu1 %2453  ;;  %v2459_v17 = vmul.f32 %v3695_v34, %v3695_v34 }
 0x9eb   :  { %v2456_v21 = vmul.f32 0.0078125, %v2454_v20 }
 0x9ec   :  { %2461 = vadd.xlane.f32.xlu0 %v2459_v17 }
 0x9ed   :  { %v3699_v39 = vsub.f32 %v2446_v35, %v2456_v21 }
 0x9ef   :  { %v2460_v40 = vmul.f32 %v3699_v39, %v3699_v39 }
 0x9f1   :  { %v2463_v41 = vsel %vm2451_vm5, %v2460_v40, 0.0 }
 0x9f2   :  { %2464 = vadd.xlane.f32.xlu1 %v2463_v41 }
 0xa02   :  { %2601 = vperm.xlu0 %3073, %v2598_v28  }
 0xa75   :  { %v2462_v55 = vpop.xlane.xlu0 %2461 }
 0xa76   :  { %v2466_v61 = vmul.f32 0.0078125, %v2462_v55 }
 0xa78   :  { %v2468_v63 = vadd.f32 1e-05, %v2466_v61 }
 0xa7a   :  { %3132 = vrsqrt.f32 %v2468_v63 }
 0xa7b   :  { %v2465_v54 = vpop.xlane.xlu1 %2464 }
 0xa7c   :  { %v2467_v58 = vmul.f32 0.0078125, %v2465_v54 }
 0xa7d   :  { %v2602_v42 = vpop.permute.xlu0 %2601 }
 0xa7e   :  { %v2469_v1 = vadd.f32 1e-05, %v2467_v58 }
 0xa80   :  { %3134 = vrsqrt.f32 %v2469_v1 }
 0xa87   :  { %v3133_v26 = vpop.eup %3132 }
 0xa88   :  { %v2472_v3 = vmul.f32 %v3133_v26, %v3695_v34 }
 0xa8a   :  { %v2474_v19 = vmul.f32 %v2472_v3, %v2447_v30 }
 0xa8c   :  { %v2476_v62 = vadd.f32 %v2474_v19, %v2448_v60 }
 0xa8d   :  { %v3135_v18 = vpop.eup %3134 }
 0xa8e   :  { %v2473_v4 = vmul.f32 %v3135_v18, %v3699_v39  ;;  %3016 = vmatprep.mubr.f32.mxu0 %v2476_v62 }
 0xa90   :  { %v2475_v5 = vmul.f32 %v2473_v4, %v2447_v30 }
 0xa92   :  { %v2477_v6 = vadd.f32 %v2475_v5, %v2448_v60 }
 0xa94   :  { %3017 = vmatmul.mubr.f32.vlgmr.msra.gmra.mxu0 %v2477_v6 }
 0xb54   :  { %v3018_v33 = vpop.f32.mrf.mxu0 }
 0xb55   :  { %v2567_v0 = vadd.f32 %v3018_v33, %v2494_v22 }
 0xb56   :  { %v2561_v35 = vpop.f32.mrf.mxu0 }
 0xb57   :  { %v2571_v13 = vsub.f32 0.0, %v2567_v0  ;;  %v2562_v16 = vadd.f32 %v2561_v35, %v2494_v22 }
 0xb59   :  { %v2574_v36 = vmul.f32 1.442695, %v2571_v13  ;;  %v2570_v38 = vsub.f32 0.0, %v2562_v16 }
 0xb5b   :  { %3136 = vpow2.f32 %v2574_v36  ;;  %v2572_v34 = vmul.f32 1.442695, %v2570_v38 }
 0xb5d   :  { %3138 = vpow2.f32 %v2572_v34 }
 0xb68   :  { %v3137_v20 = vpop.eup %3136 }
 0xb69   :  { %v2577_v21 = vadd.f32 1.0, %v3137_v20 }
 0xb6a   :  { %v3139_v17 = vpop.eup %3138 }
 0xb6b   :  { %v2576_v39 = vadd.f32 1.0, %v3139_v17 }
 0xb6d   :  { %3140 = vrcp.f32 %v2576_v39 }
 0xb6e   :  { %3142 = vrcp.f32 %v2577_v21 }
 0xb7a   :  { %v3141_v40 = vpop.eup %3140 }
 0xb7b   :  { %v3143_v41 = vpop.eup %3142  ;;  %3051 = vmatprep.mubr.f32.mxu1 %v3141_v40 }
 0xb7c   :  { %3052 = vmatmul.mubr.f32.vlgmr.msra.gmra.mxu1 %v3143_v41 }
 0xc3c   :  { %v3053_v43 = vpop.f32.mrf.mxu1 }
 0xc3d   :  { %v2676_v44 = vadd.f32 %v3053_v43, %v2602_v42 }
 0xc3e   :  { %v2670_v45 = vpop.f32.mrf.mxu1 }
 0xc3f   :  { %2683 = vst.msk [vmem:[#allocation17 - $0x1] sm:$0x4] %vm2682_vm6, %v2676_v44  ;;  %v2671_v46 = vadd.f32 %v2670_v45, %v2602_v42 }
 0xc41   :  { %2680 = vst.msk [vmem:[#allocation17] sm:$0x1] %vm2679_vm7, %v2671_v46 }
 0xc42   :  { %3335 = shalt.err (!%p3332_p7)
}
 0xc43   :  { %s3374_s25 = smov 1  }
 0xc44   :  { %2695 = dma.vmem_to_hbm [thread:$0]  %s2690_s22, 32, %s3721_s10, [#allocation4], %s3358_s17, %s3358_s17, %s3374_s25  }
 0xc45   :  { %3354 = dma.done.wait [#allocation4], 32  }
 0xc46   :  { %3355 = vsyncadd [#allocation4], 4294967264 }
 0xc47   :  { %2699 = vsyncpa [#allocation3], 1 }
 0xc48   :  { %2700 = vsyncpa [#allocation6], 1 }
 0xc49   :  { %2701 = vsyncpa [#allocation9], 1 }
 0xc4a   :  { %2702 = vsyncpa [#allocation12], 1 }
 0xc4b   :  { %2703 = vsyncpa [#allocation15], 1 }
 0xc4c   :  { %2704 = vsyncpa [#allocation4], 1 }

</bundles_post_ra>
